<compile_context>
chip_gen: v7x
topology: tpu7x:2x2x1
jax: 0.10.0
libtpu: 0.0.40
codegen_flags: <defaults>
</compile_context>

<pallas_src>
import numpy as np

import jax
import jax.numpy as jnp
from jax import lax
from jax.experimental import pallas as pl
from jax.experimental.pallas import tpu as pltpu


CFG = [8, "M", 16, "M", 32, 32, "M"]   # small VGG-style feature config
IN_CHANNELS = 3
BN_EPS = 1e-5
PAD_C = 128                            # activation channels padded to one lane tile


def _round_up(x, m):
  return (x + m - 1) // m * m


# ----------------------------------------------------------------------------
# Host-side constant builders
# ----------------------------------------------------------------------------
def _fold_conv_bn(p, cin, cout):
  """Fold conv bias + eval BatchNorm into the conv weights.
  Returns ((9, PAD_C, PAD_C) bf16 weights, (1, PAD_C) f32 shift)."""
  s = p["gamma"] / jnp.sqrt(p["var"] + BN_EPS)                 # (cout,)
  w = p["w_hwio"].reshape(9, cin, cout) * s                    # scale per out-chan
  b = p["bias"] * s + (p["beta"] - p["mean"] * s)              # folded bias/shift
  wp = jnp.zeros((9, PAD_C, PAD_C), jnp.float32).at[:, :cin, :cout].set(w)
  bp = jnp.zeros((1, PAD_C), jnp.float32).at[0, :cout].set(b)
  return wp.astype(jnp.bfloat16), bp


def _pool_dsel(H, W):
  """(Ho*Wo, H*W) exact 0/1 gather matrix picking the top-left member of each
  2x2 window (the window max itself is computed on the VPU beforehand)."""
  Ho, Wo = H // 2, W // 2
  m = np.zeros((Ho * Wo, H * W), np.float32)
  for qi in range(Ho):
    for qj in range(Wo):
      m[qi * Wo + qj, (2 * qi) * W + (2 * qj)] = 1.0
  return jnp.asarray(m, jnp.bfloat16)


# ----------------------------------------------------------------------------
# In-kernel building blocks (activations are lane-dense (HW, PAD_C) f32 values;
# the per-spatial-size scratch holds a zero-bordered copy for shifted reads).
# ----------------------------------------------------------------------------
def _store_act(pad_ref, act, L, HW):
  """Write `act` into pad_ref rows [L, L+HW), zero-extending lanes to PAD_C."""
  c = act.shape[-1]
  if c == PAD_C:
    pad_ref[pl.ds(L, HW), :] = act
  else:
    pad_ref[pl.ds(L, HW), :] = jnp.zeros((HW, PAD_C), jnp.float32)
    pad_ref[pl.ds(L, HW), pl.ds(0, c)] = act       # masked lane store (layer 1)


def _conv_bn_relu(pad_ref, act, w_ref, b_ref, H, W, L):
  """3x3 SAME conv + folded BN + ReLU.  The 9 im2col taps are statically
  shifted reads of the zero-bordered scratch; only the two column-wrap cases
  need a VPU mask.  One bf16 MXU matmul per tap, f32 accumulation."""
  HW = H * W
  R = _round_up(W + 1, 8)
  # zero the borders, write the activation into the middle
  pad_ref[pl.ds(0, L), :] = jnp.zeros((L, PAD_C), jnp.float32)
  pad_ref[pl.ds(L + HW, R), :] = jnp.zeros((R, PAD_C), jnp.float32)
  _store_act(pad_ref, act, L, HW)
  # column index j = p % W (W is a power of two) for the column-wrap masks
  col = jnp.bitwise_and(lax.broadcasted_iota(jnp.int32, (HW, PAD_C), 0), W - 1)
  left_ok = col >= 1            # tap reads column j-1  -> needs j >= 1
  right_ok = col <= W - 2       # tap reads column j+1  -> needs j <= W-2
  acc = jnp.zeros((HW, PAD_C), jnp.float32)
  for kh in range(3):
    for kw in range(3):
      s = (kh - 1) * W + (kw - 1)
      tap = pad_ref[pl.ds(L + s, HW), :]
      if kw == 0:
        tap = jnp.where(left_ok, tap, 0.0)
      elif kw == 2:
        tap = jnp.where(right_ok, tap, 0.0)
      acc = acc + jnp.dot(tap.astype(jnp.bfloat16), w_ref[kh * 3 + kw],
                          preferred_element_type=jnp.float32)
  return jnp.maximum(acc + b_ref[...], 0.0)                    # (HW, PAD_C) f32


def _maxpool2x2(pad_ref, act, dsel_ref, H, W, L):
  """MaxPool2d(2,2): 3 VPU maxes over statically shifted reads, then one exact
  0/1 gather matmul to compact rows HW -> HW/4.  The scratch borders are still
  zero from the conv that just ran at this spatial size, so out-of-window reads
  are finite and get multiplied by exact zeros in the gather."""
  HW = H * W
  pad_ref[pl.ds(L, HW), :] = act
  m = jnp.maximum(
      jnp.maximum(act, pad_ref[pl.ds(L + 1, HW), :]),
      jnp.maximum(pad_ref[pl.ds(L + W, HW), :],
                  pad_ref[pl.ds(L + W + 1, HW), :]))
  return jnp.dot(dsel_ref[...], m.astype(jnp.bfloat16),
                 preferred_element_type=jnp.float32)           # (HW/4, PAD_C)


# ----------------------------------------------------------------------------
# Fused network builder
# ----------------------------------------------------------------------------
def build_fused_vgg(layers, H0, W0):
  consts, plan, pads, size_slot = [], [], [], {}
  H, W, cin = H0, W0, IN_CHANNELS
  for kind, p in layers:
    assert W & (W - 1) == 0, "W must be a power of two for the column mask"
    if (H, W) not in size_slot:
      L = _round_up(W + 1, 8)                      # sublane-aligned left border
      size_slot[(H, W)] = len(pads)
      pads.append((L + H * W + _round_up(W + 1, 8), L))
    slot = size_slot[(H, W)]
    L = pads[slot][1]
    if kind == "M":
      consts.append(_pool_dsel(H, W))
      plan.append(("pool", len(consts) - 1, slot, H, W, L))
      H, W = H // 2, W // 2
    else:
      cout = p["w_hwio"].shape[-1]
      wq, bq = _fold_conv_bn(p, cin, cout)
      consts += [wq, bq]
      plan.append(("conv", len(consts) - 2, len(consts) - 1, slot, H, W, L))
      cin = cout
  HWf, n_const = H * W, len(consts)

  def kernel(x_ref, *refs):
    c = refs[:n_const]
    o_ref = refs[n_const]
    pad_refs = refs[n_const + 1:]
    act = x_ref[0]                       # (H0*W0, IN_CHANNELS) f32, no host pad
    for op in plan:                      # static unroll; everything stays in VMEM
      if op[0] == "conv":
        _, wi, bi, slot, h, w, l = op
        act = _conv_bn_relu(pad_refs[slot], act, c[wi], c[bi], h, w, l)
      else:
        _, di, slot, h, w, l = op
        act = _maxpool2x2(pad_refs[slot], act, c[di], h, w, l)
    o_ref[0] = act                       # lane-dense (HWf, PAD_C) unmasked store

  def fwd(x_flat):                       # (N, H0*W0, IN_CHANNELS) f32
    N = x_flat.shape[0]
    in_specs = [pl.BlockSpec((1, H0 * W0, IN_CHANNELS), lambda n: (n, 0, 0))]
    for a in consts:
      # constants: one full block, identical for every grid step.
      # (perf TODO: pipeline_mode=pl.Buffered(1) would drop the redundant
      #  second prefetch buffer; left at the default for lowering portability —
      #  the doubled footprint is only ~2.4 MB here.)
      in_specs.append(pl.BlockSpec(a.shape, lambda n, _r=a.ndim: (0,) * _r))
    return pl.pallas_call(
        kernel,
        out_shape=jax.ShapeDtypeStruct((N, HWf, PAD_C), jnp.float32),
        grid=(N,),
        in_specs=in_specs,
        out_specs=pl.BlockSpec((1, HWf, PAD_C), lambda n: (n, 0, 0)),
        scratch_shapes=[pltpu.VMEM((rows, PAD_C), jnp.float32)
                        for rows, _ in pads],
        compiler_params=pltpu.CompilerParams(
            dimension_semantics=("parallel",),      # one image per TensorCore
            vmem_limit_bytes=32 * 1024 * 1024),
    )(x_flat, *consts)

  return fwd, (H, W), cin


# ----------------------------------------------------------------------------
# Deterministic parameter init (matches VGG._initialize_weights semantics)
# ----------------------------------------------------------------------------
def init_params(key):
  layers = []
  cin = IN_CHANNELS
  for v in CFG:
    if v == "M":
      layers.append(("M", None))
      continue
    cout = v
    key, wk = jax.random.split(key)
    # Kaiming normal, mode='fan_out', nonlinearity='relu': std = sqrt(2/(cout*9))
    std = (2.0 / (cout * 3 * 3)) ** 0.5
    w_oihw = jax.random.normal(wk, (cout, cin, 3, 3), jnp.float32) * std
    w_hwio = jnp.transpose(w_oihw, (2, 3, 1, 0))          # (3, 3, Cin, Cout)
    layers.append(("C", dict(
        w_hwio=w_hwio,
        bias=jnp.zeros((cout,), jnp.float32),             # Conv2d bias = 0
        gamma=jnp.ones((cout,), jnp.float32),             # BN weight = 1
        beta=jnp.zeros((cout,), jnp.float32),             # BN bias = 0
        mean=jnp.zeros((cout,), jnp.float32),             # running_mean = 0
        var=jnp.ones((cout,), jnp.float32))))             # running_var = 1
    cin = cout
  return layers


# ----------------------------------------------------------------------------
# Forward passes
# ----------------------------------------------------------------------------
def vgg_forward_pallas(x_nchw, fwd, out_hw, out_c):
  N, C, H, W = x_nchw.shape
  # One-time layout glue: NCHW -> (N, H*W, C) with the TRUE channel count (no
  # 128-lane host pad); everything else happens inside the single fused kernel.
  x = jnp.transpose(x_nchw, (0, 2, 3, 1)).astype(jnp.float32).reshape(N, H * W, C)
  y = fwd(x)                                              # (N, Hf*Wf, PAD_C)
  Hf, Wf = out_hw
  y = y[:, :, :out_c].reshape(N, Hf, Wf, out_c)
  return jnp.transpose(y, (0, 3, 1, 2))                   # back to NCHW


def vgg_forward_reference(x_nchw, layers):
  y = jnp.transpose(x_nchw, (0, 2, 3, 1)).astype(jnp.float32)
  for kind, p in layers:
    if kind == "M":
      y = lax.reduce_window(y, -jnp.inf, lax.max,
                            (1, 2, 2, 1), (1, 2, 2, 1), "VALID")
    else:
      y = lax.conv_general_dilated(
          y, p["w_hwio"], window_strides=(1, 1), padding="SAME",
          dimension_numbers=("NHWC", "HWIO", "NHWC"))
      s = p["gamma"] / jnp.sqrt(p["var"] + BN_EPS)
      y = (y + p["bias"]) * s + (p["beta"] - p["mean"] * s)
      y = jnp.maximum(y, 0.0)
  return jnp.transpose(y, (0, 3, 1, 2))


# ----------------------------------------------------------------------------
if __name__ == "__main__":
  key = jax.random.PRNGKey(0)
  key, xk = jax.random.split(key)
  layers = init_params(key)

  N, H0, W0 = 2, 16, 16
  x = jax.random.normal(xk, (N, IN_CHANNELS, H0, W0), jnp.float32)

  fwd, out_hw, out_c = build_fused_vgg(layers, H0, W0)

  out = jax.block_until_ready(vgg_forward_pallas(x, fwd, out_hw, out_c))
  ref = jax.block_until_ready(vgg_forward_reference(x, layers))

  assert out.shape == ref.shape, (out.shape, ref.shape)
  max_err = float(jnp.max(jnp.abs(out - ref)))
  # Kernel uses bf16 MXU operands (f32 accumulation) vs. an f32 XLA reference;
  # through 4 conv layers the expected worst-case deviation is a few 1e-2.
  assert jnp.allclose(out, ref, rtol=5e-2, atol=5e-2), max_err
  print("KERNEL_OK")
</pallas_src>

<mosaic_0001>
module attributes {stable_mosaic.version = 11 : i64} {
  func.func @kernel(%arg0: i32, %arg1: memref<1x256x3xf32, #tpu.memory_space<vmem>>, %arg2: memref<9x128x128xbf16, #tpu.memory_space<vmem>>, %arg3: memref<1x128xf32, #tpu.memory_space<vmem>>, %arg4: memref<64x256xbf16, #tpu.memory_space<vmem>>, %arg5: memref<9x128x128xbf16, #tpu.memory_space<vmem>>, %arg6: memref<1x128xf32, #tpu.memory_space<vmem>>, %arg7: memref<16x64xbf16, #tpu.memory_space<vmem>>, %arg8: memref<9x128x128xbf16, #tpu.memory_space<vmem>>, %arg9: memref<1x128xf32, #tpu.memory_space<vmem>>, %arg10: memref<9x128x128xbf16, #tpu.memory_space<vmem>>, %arg11: memref<1x128xf32, #tpu.memory_space<vmem>>, %arg12: memref<4x16xbf16, #tpu.memory_space<vmem>>, %arg13: memref<1x4x128xf32, #tpu.memory_space<vmem>>, %arg14: memref<304x128xf32, #tpu.memory_space<vmem>>, %arg15: memref<96x128xf32, #tpu.memory_space<vmem>>, %arg16: memref<32x128xf32, #tpu.memory_space<vmem>>) attributes {dimension_semantics = [#tpu.dimension_semantics<parallel>], iteration_bounds = array<i64: 2>, scalar_prefetch = 0 : i64, scratch_operands = 3 : i64, tpu.core_type = #tpu.core_type<tc>, window_params = [{transform_indices = @transform_0, window_bounds = array<i64: 1, 256, 3>}, {pipeline_mode = #tpu.pipeline_mode<synchronous>, transform_indices = @transform_1, window_bounds = array<i64: 9, 128, 128>}, {pipeline_mode = #tpu.pipeline_mode<synchronous>, transform_indices = @transform_2, window_bounds = array<i64: 1, 128>}, {pipeline_mode = #tpu.pipeline_mode<synchronous>, transform_indices = @transform_3, window_bounds = array<i64: 64, 256>}, {pipeline_mode = #tpu.pipeline_mode<synchronous>, transform_indices = @transform_4, window_bounds = array<i64: 9, 128, 128>}, {pipeline_mode = #tpu.pipeline_mode<synchronous>, transform_indices = @transform_5, window_bounds = array<i64: 1, 128>}, {pipeline_mode = #tpu.pipeline_mode<synchronous>, transform_indices = @transform_6, window_bounds = array<i64: 16, 64>}, {pipeline_mode = #tpu.pipeline_mode<synchronous>, transform_indices = @transform_7, window_bounds = array<i64: 9, 128, 128>}, {pipeline_mode = #tpu.pipeline_mode<synchronous>, transform_indices = @transform_8, window_bounds = array<i64: 1, 128>}, {pipeline_mode = #tpu.pipeline_mode<synchronous>, transform_indices = @transform_9, window_bounds = array<i64: 9, 128, 128>}, {pipeline_mode = #tpu.pipeline_mode<synchronous>, transform_indices = @transform_10, window_bounds = array<i64: 1, 128>}, {pipeline_mode = #tpu.pipeline_mode<synchronous>, transform_indices = @transform_11, window_bounds = array<i64: 4, 16>}, {transform_indices = @transform_12, window_bounds = array<i64: 1, 4, 128>}]} {
    %c0 = arith.constant 0 : index
    %c0_0 = arith.constant 0 : index
    %c0_1 = arith.constant 0 : index
    %0 = vector.load %arg1[%c0, %c0_0, %c0_1] : memref<1x256x3xf32, #tpu.memory_space<vmem>>, vector<1x256x3xf32>
    %1 = vector.shape_cast %0 : vector<1x256x3xf32> to vector<256x3xf32>
    %cst = arith.constant 0.000000e+00 : f32
    %2 = vector.broadcast %cst : f32 to vector<24x128xf32>
    %c0_2 = arith.constant 0 : index
    %c0_3 = arith.constant 0 : index
    %3 = vector.load %arg14[%c0_2, %c0_3] : memref<304x128xf32, #tpu.memory_space<vmem>>, vector<24x128xf32>
    tpu.vector_store %arg14[%c0_2, %c0_3], %2 {strides = array<i32>} : memref<304x128xf32, #tpu.memory_space<vmem>>, vector<24x128xf32>,
    %cst_4 = arith.constant 0.000000e+00 : f32
    %4 = vector.broadcast %cst_4 : f32 to vector<24x128xf32>
    %c280 = arith.constant 280 : index
    %c0_5 = arith.constant 0 : index
    %5 = vector.load %arg14[%c280, %c0_5] : memref<304x128xf32, #tpu.memory_space<vmem>>, vector<24x128xf32>
    tpu.vector_store %arg14[%c280, %c0_5], %4 {strides = array<i32>} : memref<304x128xf32, #tpu.memory_space<vmem>>, vector<24x128xf32>,
    %cst_6 = arith.constant 0.000000e+00 : f32
    %6 = vector.broadcast %cst_6 : f32 to vector<256x128xf32>
    %c24 = arith.constant 24 : index
    %c0_7 = arith.constant 0 : index
    %7 = vector.load %arg14[%c24, %c0_7] : memref<304x128xf32, #tpu.memory_space<vmem>>, vector<256x128xf32>
    tpu.vector_store %arg14[%c24, %c0_7], %6 {strides = array<i32>} : memref<304x128xf32, #tpu.memory_space<vmem>>, vector<256x128xf32>,
    %c24_8 = arith.constant 24 : index
    %c0_9 = arith.constant 0 : index
    %8 = vector.load %arg14[%c24_8, %c0_9] : memref<304x128xf32, #tpu.memory_space<vmem>>, vector<256x3xf32>
    tpu.vector_store %arg14[%c24_8, %c0_9], %1 {strides = array<i32>} : memref<304x128xf32, #tpu.memory_space<vmem>>, vector<256x3xf32>,
    %9 = tpu.iota {dimensions = array<i32: 0>} : vector<256x128xi32>
    %c15_i32 = arith.constant 15 : i32
    %10 = vector.broadcast %c15_i32 : i32 to vector<256x128xi32>
    %11 = arith.andi %9, %10 : vector<256x128xi32>
    %c1_i32 = arith.constant 1 : i32
    %12 = vector.broadcast %c1_i32 : i32 to vector<256x128xi32>
    %13 = arith.cmpi sge, %11, %12 : vector<256x128xi32>
    %c14_i32 = arith.constant 14 : i32
    %14 = vector.broadcast %c14_i32 : i32 to vector<256x128xi32>
    %15 = arith.cmpi sle, %11, %14 : vector<256x128xi32>
    %cst_10 = arith.constant 0.000000e+00 : f32
    %16 = vector.broadcast %cst_10 : f32 to vector<256x128xf32>
    %c7 = arith.constant 7 : index
    %c0_11 = arith.constant 0 : index
    %17 = vector.load %arg14[%c7, %c0_11] : memref<304x128xf32, #tpu.memory_space<vmem>>, vector<256x128xf32>
    %cst_12 = arith.constant 0.000000e+00 : f32
    %18 = vector.broadcast %cst_12 : f32 to vector<256x128xf32>
    %19 = arith.select %13, %17, %18 : vector<256x128xi1>, vector<256x128xf32>
    %20 = arith.truncf %19 : vector<256x128xf32> to vector<256x128xbf16>
    %c0_13 = arith.constant 0 : index
    %c0_14 = arith.constant 0 : index
    %c0_15 = arith.constant 0 : index
    %21 = vector.load %arg2[%c0_13, %c0_14, %c0_15] : memref<9x128x128xbf16, #tpu.memory_space<vmem>>, vector<1x128x128xbf16>
    %22 = vector.shape_cast %21 : vector<1x128x128xbf16> to vector<128x128xbf16>
    %cst_16 = arith.constant dense<0.000000e+00> : vector<256x128xf32>
    %23 = tpu.matmul %20, %22, %cst_16 {dimension_numbers = #tpu.dot_dimension_numbers<[1], [0], [0], [1], [0, 0, 1, 1], [], []>} : vector<256x128xbf16>, vector<128x128xbf16>, vector<256x128xf32> -> vector<256x128xf32>
    %24 = arith.addf %16, %23 : vector<256x128xf32>
    %c8 = arith.constant 8 : index
    %c0_17 = arith.constant 0 : index
    %25 = vector.load %arg14[%c8, %c0_17] : memref<304x128xf32, #tpu.memory_space<vmem>>, vector<256x128xf32>
    %26 = arith.truncf %25 : vector<256x128xf32> to vector<256x128xbf16>
    %c1 = arith.constant 1 : index
    %c0_18 = arith.constant 0 : index
    %c0_19 = arith.constant 0 : index
    %27 = vector.load %arg2[%c1, %c0_18, %c0_19] : memref<9x128x128xbf16, #tpu.memory_space<vmem>>, vector<1x128x128xbf16>
    %28 = vector.shape_cast %27 : vector<1x128x128xbf16> to vector<128x128xbf16>
    %cst_20 = arith.constant dense<0.000000e+00> : vector<256x128xf32>
    %29 = tpu.matmul %26, %28, %cst_20 {dimension_numbers = #tpu.dot_dimension_numbers<[1], [0], [0], [1], [0, 0, 1, 1], [], []>} : vector<256x128xbf16>, vector<128x128xbf16>, vector<256x128xf32> -> vector<256x128xf32>
    %30 = arith.addf %24, %29 : vector<256x128xf32>
    %c9 = arith.constant 9 : index
    %c0_21 = arith.constant 0 : index
    %31 = vector.load %arg14[%c9, %c0_21] : memref<304x128xf32, #tpu.memory_space<vmem>>, vector<256x128xf32>
    %cst_22 = arith.constant 0.000000e+00 : f32
    %32 = vector.broadcast %cst_22 : f32 to vector<256x128xf32>
    %33 = arith.select %15, %31, %32 : vector<256x128xi1>, vector<256x128xf32>
    %34 = arith.truncf %33 : vector<256x128xf32> to vector<256x128xbf16>
    %c2 = arith.constant 2 : index
    %c0_23 = arith.constant 0 : index
    %c0_24 = arith.constant 0 : index
    %35 = vector.load %arg2[%c2, %c0_23, %c0_24] : memref<9x128x128xbf16, #tpu.memory_space<vmem>>, vector<1x128x128xbf16>
    %36 = vector.shape_cast %35 : vector<1x128x128xbf16> to vector<128x128xbf16>
    %cst_25 = arith.constant dense<0.000000e+00> : vector<256x128xf32>
    %37 = tpu.matmul %34, %36, %cst_25 {dimension_numbers = #tpu.dot_dimension_numbers<[1], [0], [0], [1], [0, 0, 1, 1], [], []>} : vector<256x128xbf16>, vector<128x128xbf16>, vector<256x128xf32> -> vector<256x128xf32>
    %38 = arith.addf %30, %37 : vector<256x128xf32>
    %c23 = arith.constant 23 : index
    %c0_26 = arith.constant 0 : index
    %39 = vector.load %arg14[%c23, %c0_26] : memref<304x128xf32, #tpu.memory_space<vmem>>, vector<256x128xf32>
    %cst_27 = arith.constant 0.000000e+00 : f32
    %40 = vector.broadcast %cst_27 : f32 to vector<256x128xf32>
    %41 = arith.select %13, %39, %40 : vector<256x128xi1>, vector<256x128xf32>
    %42 = arith.truncf %41 : vector<256x128xf32> to vector<256x128xbf16>
    %c3 = arith.constant 3 : index
    %c0_28 = arith.constant 0 : index
    %c0_29 = arith.constant 0 : index
    %43 = vector.load %arg2[%c3, %c0_28, %c0_29] : memref<9x128x128xbf16, #tpu.memory_space<vmem>>, vector<1x128x128xbf16>
    %44 = vector.shape_cast %43 : vector<1x128x128xbf16> to vector<128x128xbf16>
    %cst_30 = arith.constant dense<0.000000e+00> : vector<256x128xf32>
    %45 = tpu.matmul %42, %44, %cst_30 {dimension_numbers = #tpu.dot_dimension_numbers<[1], [0], [0], [1], [0, 0, 1, 1], [], []>} : vector<256x128xbf16>, vector<128x128xbf16>, vector<256x128xf32> -> vector<256x128xf32>
    %46 = arith.addf %38, %45 : vector<256x128xf32>
    %c24_31 = arith.constant 24 : index
    %c0_32 = arith.constant 0 : index
    %47 = vector.load %arg14[%c24_31, %c0_32] : memref<304x128xf32, #tpu.memory_space<vmem>>, vector<256x128xf32>
    %48 = arith.truncf %47 : vector<256x128xf32> to vector<256x128xbf16>
    %c4 = arith.constant 4 : index
    %c0_33 = arith.constant 0 : index
    %c0_34 = arith.constant 0 : index
    %49 = vector.load %arg2[%c4, %c0_33, %c0_34] : memref<9x128x128xbf16, #tpu.memory_space<vmem>>, vector<1x128x128xbf16>
    %50 = vector.shape_cast %49 : vector<1x128x128xbf16> to vector<128x128xbf16>
    %cst_35 = arith.constant dense<0.000000e+00> : vector<256x128xf32>
    %51 = tpu.matmul %48, %50, %cst_35 {dimension_numbers = #tpu.dot_dimension_numbers<[1], [0], [0], [1], [0, 0, 1, 1], [], []>} : vector<256x128xbf16>, vector<128x128xbf16>, vector<256x128xf32> -> vector<256x128xf32>
    %52 = arith.addf %46, %51 : vector<256x128xf32>
    %c25 = arith.constant 25 : index
    %c0_36 = arith.constant 0 : index
    %53 = vector.load %arg14[%c25, %c0_36] : memref<304x128xf32, #tpu.memory_space<vmem>>, vector<256x128xf32>
    %cst_37 = arith.constant 0.000000e+00 : f32
    %54 = vector.broadcast %cst_37 : f32 to vector<256x128xf32>
    %55 = arith.select %15, %53, %54 : vector<256x128xi1>, vector<256x128xf32>
    %56 = arith.truncf %55 : vector<256x128xf32> to vector<256x128xbf16>
    %c5 = arith.constant 5 : index
    %c0_38 = arith.constant 0 : index
    %c0_39 = arith.constant 0 : index
    %57 = vector.load %arg2[%c5, %c0_38, %c0_39] : memref<9x128x128xbf16, #tpu.memory_space<vmem>>, vector<1x128x128xbf16>
    %58 = vector.shape_cast %57 : vector<1x128x128xbf16> to vector<128x128xbf16>
    %cst_40 = arith.constant dense<0.000000e+00> : vector<256x128xf32>
    %59 = tpu.matmul %56, %58, %cst_40 {dimension_numbers = #tpu.dot_dimension_numbers<[1], [0], [0], [1], [0, 0, 1, 1], [], []>} : vector<256x128xbf16>, vector<128x128xbf16>, vector<256x128xf32> -> vector<256x128xf32>
    %60 = arith.addf %52, %59 : vector<256x128xf32>
    %c39 = arith.constant 39 : index
    %c0_41 = arith.constant 0 : index
    %61 = vector.load %arg14[%c39, %c0_41] : memref<304x128xf32, #tpu.memory_space<vmem>>, vector<256x128xf32>
    %cst_42 = arith.constant 0.000000e+00 : f32
    %62 = vector.broadcast %cst_42 : f32 to vector<256x128xf32>
    %63 = arith.select %13, %61, %62 : vector<256x128xi1>, vector<256x128xf32>
    %64 = arith.truncf %63 : vector<256x128xf32> to vector<256x128xbf16>
    %c6 = arith.constant 6 : index
    %c0_43 = arith.constant 0 : index
    %c0_44 = arith.constant 0 : index
    %65 = vector.load %arg2[%c6, %c0_43, %c0_44] : memref<9x128x128xbf16, #tpu.memory_space<vmem>>, vector<1x128x128xbf16>
    %66 = vector.shape_cast %65 : vector<1x128x128xbf16> to vector<128x128xbf16>
    %cst_45 = arith.constant dense<0.000000e+00> : vector<256x128xf32>
    %67 = tpu.matmul %64, %66, %cst_45 {dimension_numbers = #tpu.dot_dimension_numbers<[1], [0], [0], [1], [0, 0, 1, 1], [], []>} : vector<256x128xbf16>, vector<128x128xbf16>, vector<256x128xf32> -> vector<256x128xf32>
    %68 = arith.addf %60, %67 : vector<256x128xf32>
    %c40 = arith.constant 40 : index
    %c0_46 = arith.constant 0 : index
    %69 = vector.load %arg14[%c40, %c0_46] : memref<304x128xf32, #tpu.memory_space<vmem>>, vector<256x128xf32>
    %70 = arith.truncf %69 : vector<256x128xf32> to vector<256x128xbf16>
    %c7_47 = arith.constant 7 : index
    %c0_48 = arith.constant 0 : index
    %c0_49 = arith.constant 0 : index
    %71 = vector.load %arg2[%c7_47, %c0_48, %c0_49] : memref<9x128x128xbf16, #tpu.memory_space<vmem>>, vector<1x128x128xbf16>
    %72 = vector.shape_cast %71 : vector<1x128x128xbf16> to vector<128x128xbf16>
    %cst_50 = arith.constant dense<0.000000e+00> : vector<256x128xf32>
    %73 = tpu.matmul %70, %72, %cst_50 {dimension_numbers = #tpu.dot_dimension_numbers<[1], [0], [0], [1], [0, 0, 1, 1], [], []>} : vector<256x128xbf16>, vector<128x128xbf16>, vector<256x128xf32> -> vector<256x128xf32>
    %74 = arith.addf %68, %73 : vector<256x128xf32>
    %c41 = arith.constant 41 : index
    %c0_51 = arith.constant 0 : index
    %75 = vector.load %arg14[%c41, %c0_51] : memref<304x128xf32, #tpu.memory_space<vmem>>, vector<256x128xf32>
    %cst_52 = arith.constant 0.000000e+00 : f32
    %76 = vector.broadcast %cst_52 : f32 to vector<256x128xf32>
    %77 = arith.select %15, %75, %76 : vector<256x128xi1>, vector<256x128xf32>
    %78 = arith.truncf %77 : vector<256x128xf32> to vector<256x128xbf16>
    %c8_53 = arith.constant 8 : index
    %c0_54 = arith.constant 0 : index
    %c0_55 = arith.constant 0 : index
    %79 = vector.load %arg2[%c8_53, %c0_54, %c0_55] : memref<9x128x128xbf16, #tpu.memory_space<vmem>>, vector<1x128x128xbf16>
    %80 = vector.shape_cast %79 : vector<1x128x128xbf16> to vector<128x128xbf16>
    %cst_56 = arith.constant dense<0.000000e+00> : vector<256x128xf32>
    %81 = tpu.matmul %78, %80, %cst_56 {dimension_numbers = #tpu.dot_dimension_numbers<[1], [0], [0], [1], [0, 0, 1, 1], [], []>} : vector<256x128xbf16>, vector<128x128xbf16>, vector<256x128xf32> -> vector<256x128xf32>
    %82 = arith.addf %74, %81 : vector<256x128xf32>
    %c0_57 = arith.constant 0 : index
    %c0_58 = arith.constant 0 : index
    %83 = vector.load %arg3[%c0_57, %c0_58] : memref<1x128xf32, #tpu.memory_space<vmem>>, vector<1x128xf32>
    %84 = vector.broadcast %83 : vector<1x128xf32> to vector<256x128xf32>
    %85 = arith.addf %82, %84 : vector<256x128xf32>
    %cst_59 = arith.constant 0.000000e+00 : f32
    %86 = vector.broadcast %cst_59 : f32 to vector<256x128xf32>
    %87 = arith.maximumf %85, %86 : vector<256x128xf32>
    %c24_60 = arith.constant 24 : index
    %c0_61 = arith.constant 0 : index
    %88 = vector.load %arg14[%c24_60, %c0_61] : memref<304x128xf32, #tpu.memory_space<vmem>>, vector<256x128xf32>
    tpu.vector_store %arg14[%c24_60, %c0_61], %87 {strides = array<i32>} : memref<304x128xf32, #tpu.memory_space<vmem>>, vector<256x128xf32>,
    %c25_62 = arith.constant 25 : index
    %c0_63 = arith.constant 0 : index
    %89 = vector.load %arg14[%c25_62, %c0_63] : memref<304x128xf32, #tpu.memory_space<vmem>>, vector<256x128xf32>
    %90 = arith.maximumf %87, %89 : vector<256x128xf32>
    %c40_64 = arith.constant 40 : index
    %c0_65 = arith.constant 0 : index
    %91 = vector.load %arg14[%c40_64, %c0_65] : memref<304x128xf32, #tpu.memory_space<vmem>>, vector<256x128xf32>
    %c41_66 = arith.constant 41 : index
    %c0_67 = arith.constant 0 : index
    %92 = vector.load %arg14[%c41_66, %c0_67] : memref<304x128xf32, #tpu.memory_space<vmem>>, vector<256x128xf32>
    %93 = arith.maximumf %91, %92 : vector<256x128xf32>
    %94 = arith.maximumf %90, %93 : vector<256x128xf32>
    %c0_68 = arith.constant 0 : index
    %c0_69 = arith.constant 0 : index
    %95 = vector.load %arg4[%c0_68, %c0_69] : memref<64x256xbf16, #tpu.memory_space<vmem>>, vector<64x256xbf16>
    %96 = arith.truncf %94 : vector<256x128xf32> to vector<256x128xbf16>
    %cst_70 = arith.constant dense<0.000000e+00> : vector<64x128xf32>
    %97 = tpu.matmul %95, %96, %cst_70 {dimension_numbers = #tpu.dot_dimension_numbers<[1], [0], [0], [1], [0, 0, 1, 1], [], []>} : vector<64x256xbf16>, vector<256x128xbf16>, vector<64x128xf32> -> vector<64x128xf32>
    %cst_71 = arith.constant 0.000000e+00 : f32
    %98 = vector.broadcast %cst_71 : f32 to vector<16x128xf32>
    %c0_72 = arith.constant 0 : index
    %c0_73 = arith.constant 0 : index
    %99 = vector.load %arg15[%c0_72, %c0_73] : memref<96x128xf32, #tpu.memory_space<vmem>>, vector<16x128xf32>
    tpu.vector_store %arg15[%c0_72, %c0_73], %98 {strides = array<i32>} : memref<96x128xf32, #tpu.memory_space<vmem>>, vector<16x128xf32>,
    %cst_74 = arith.constant 0.000000e+00 : f32
    %100 = vector.broadcast %cst_74 : f32 to vector<16x128xf32>
    %c80 = arith.constant 80 : index
    %c0_75 = arith.constant 0 : index
    %101 = vector.load %arg15[%c80, %c0_75] : memref<96x128xf32, #tpu.memory_space<vmem>>, vector<16x128xf32>
    tpu.vector_store %arg15[%c80, %c0_75], %100 {strides = array<i32>} : memref<96x128xf32, #tpu.memory_space<vmem>>, vector<16x128xf32>,
    %c16 = arith.constant 16 : index
    %c0_76 = arith.constant 0 : index
    %102 = vector.load %arg15[%c16, %c0_76] : memref<96x128xf32, #tpu.memory_space<vmem>>, vector<64x128xf32>
    tpu.vector_store %arg15[%c16, %c0_76], %97 {strides = array<i32>} : memref<96x128xf32, #tpu.memory_space<vmem>>, vector<64x128xf32>,
    %103 = tpu.iota {dimensions = array<i32: 0>} : vector<64x128xi32>
    %c7_i32 = arith.constant 7 : i32
    %104 = vector.broadcast %c7_i32 : i32 to vector<64x128xi32>
    %105 = arith.andi %103, %104 : vector<64x128xi32>
    %c1_i32_77 = arith.constant 1 : i32
    %106 = vector.broadcast %c1_i32_77 : i32 to vector<64x128xi32>
    %107 = arith.cmpi sge, %105, %106 : vector<64x128xi32>
    %c6_i32 = arith.constant 6 : i32
    %108 = vector.broadcast %c6_i32 : i32 to vector<64x128xi32>
    %109 = arith.cmpi sle, %105, %108 : vector<64x128xi32>
    %cst_78 = arith.constant 0.000000e+00 : f32
    %110 = vector.broadcast %cst_78 : f32 to vector<64x128xf32>
    %c7_79 = arith.constant 7 : index
    %c0_80 = arith.constant 0 : index
    %111 = vector.load %arg15[%c7_79, %c0_80] : memref<96x128xf32, #tpu.memory_space<vmem>>, vector<64x128xf32>
    %cst_81 = arith.constant 0.000000e+00 : f32
    %112 = vector.broadcast %cst_81 : f32 to vector<64x128xf32>
    %113 = arith.select %107, %111, %112 : vector<64x128xi1>, vector<64x128xf32>
    %114 = arith.truncf %113 : vector<64x128xf32> to vector<64x128xbf16>
    %c0_82 = arith.constant 0 : index
    %c0_83 = arith.constant 0 : index
    %c0_84 = arith.constant 0 : index
    %115 = vector.load %arg5[%c0_82, %c0_83, %c0_84] : memref<9x128x128xbf16, #tpu.memory_space<vmem>>, vector<1x128x128xbf16>
    %116 = vector.shape_cast %115 : vector<1x128x128xbf16> to vector<128x128xbf16>
    %cst_85 = arith.constant dense<0.000000e+00> : vector<64x128xf32>
    %117 = tpu.matmul %114, %116, %cst_85 {dimension_numbers = #tpu.dot_dimension_numbers<[1], [0], [0], [1], [0, 0, 1, 1], [], []>} : vector<64x128xbf16>, vector<128x128xbf16>, vector<64x128xf32> -> vector<64x128xf32>
    %118 = arith.addf %110, %117 : vector<64x128xf32>
    %c8_86 = arith.constant 8 : index
    %c0_87 = arith.constant 0 : index
    %119 = vector.load %arg15[%c8_86, %c0_87] : memref<96x128xf32, #tpu.memory_space<vmem>>, vector<64x128xf32>
    %120 = arith.truncf %119 : vector<64x128xf32> to vector<64x128xbf16>
    %c1_88 = arith.constant 1 : index
    %c0_89 = arith.constant 0 : index
    %c0_90 = arith.constant 0 : index
    %121 = vector.load %arg5[%c1_88, %c0_89, %c0_90] : memref<9x128x128xbf16, #tpu.memory_space<vmem>>, vector<1x128x128xbf16>
    %122 = vector.shape_cast %121 : vector<1x128x128xbf16> to vector<128x128xbf16>
    %cst_91 = arith.constant dense<0.000000e+00> : vector<64x128xf32>
    %123 = tpu.matmul %120, %122, %cst_91 {dimension_numbers = #tpu.dot_dimension_numbers<[1], [0], [0], [1], [0, 0, 1, 1], [], []>} : vector<64x128xbf16>, vector<128x128xbf16>, vector<64x128xf32> -> vector<64x128xf32>
    %124 = arith.addf %118, %123 : vector<64x128xf32>
    %c9_92 = arith.constant 9 : index
    %c0_93 = arith.constant 0 : index
    %125 = vector.load %arg15[%c9_92, %c0_93] : memref<96x128xf32, #tpu.memory_space<vmem>>, vector<64x128xf32>
    %cst_94 = arith.constant 0.000000e+00 : f32
    %126 = vector.broadcast %cst_94 : f32 to vector<64x128xf32>
    %127 = arith.select %109, %125, %126 : vector<64x128xi1>, vector<64x128xf32>
    %128 = arith.truncf %127 : vector<64x128xf32> to vector<64x128xbf16>
    %c2_95 = arith.constant 2 : index
    %c0_96 = arith.constant 0 : index
    %c0_97 = arith.constant 0 : index
    %129 = vector.load %arg5[%c2_95, %c0_96, %c0_97] : memref<9x128x128xbf16, #tpu.memory_space<vmem>>, vector<1x128x128xbf16>
    %130 = vector.shape_cast %129 : vector<1x128x128xbf16> to vector<128x128xbf16>
    %cst_98 = arith.constant dense<0.000000e+00> : vector<64x128xf32>
    %131 = tpu.matmul %128, %130, %cst_98 {dimension_numbers = #tpu.dot_dimension_numbers<[1], [0], [0], [1], [0, 0, 1, 1], [], []>} : vector<64x128xbf16>, vector<128x128xbf16>, vector<64x128xf32> -> vector<64x128xf32>
    %132 = arith.addf %124, %131 : vector<64x128xf32>
    %c15 = arith.constant 15 : index
    %c0_99 = arith.constant 0 : index
    %133 = vector.load %arg15[%c15, %c0_99] : memref<96x128xf32, #tpu.memory_space<vmem>>, vector<64x128xf32>
    %cst_100 = arith.constant 0.000000e+00 : f32
    %134 = vector.broadcast %cst_100 : f32 to vector<64x128xf32>
    %135 = arith.select %107, %133, %134 : vector<64x128xi1>, vector<64x128xf32>
    %136 = arith.truncf %135 : vector<64x128xf32> to vector<64x128xbf16>
    %c3_101 = arith.constant 3 : index
    %c0_102 = arith.constant 0 : index
    %c0_103 = arith.constant 0 : index
    %137 = vector.load %arg5[%c3_101, %c0_102, %c0_103] : memref<9x128x128xbf16, #tpu.memory_space<vmem>>, vector<1x128x128xbf16>
    %138 = vector.shape_cast %137 : vector<1x128x128xbf16> to vector<128x128xbf16>
    %cst_104 = arith.constant dense<0.000000e+00> : vector<64x128xf32>
    %139 = tpu.matmul %136, %138, %cst_104 {dimension_numbers = #tpu.dot_dimension_numbers<[1], [0], [0], [1], [0, 0, 1, 1], [], []>} : vector<64x128xbf16>, vector<128x128xbf16>, vector<64x128xf32> -> vector<64x128xf32>
    %140 = arith.addf %132, %139 : vector<64x128xf32>
    %c16_105 = arith.constant 16 : index
    %c0_106 = arith.constant 0 : index
    %141 = vector.load %arg15[%c16_105, %c0_106] : memref<96x128xf32, #tpu.memory_space<vmem>>, vector<64x128xf32>
    %142 = arith.truncf %141 : vector<64x128xf32> to vector<64x128xbf16>
    %c4_107 = arith.constant 4 : index
    %c0_108 = arith.constant 0 : index
    %c0_109 = arith.constant 0 : index
    %143 = vector.load %arg5[%c4_107, %c0_108, %c0_109] : memref<9x128x128xbf16, #tpu.memory_space<vmem>>, vector<1x128x128xbf16>
    %144 = vector.shape_cast %143 : vector<1x128x128xbf16> to vector<128x128xbf16>
    %cst_110 = arith.constant dense<0.000000e+00> : vector<64x128xf32>
    %145 = tpu.matmul %142, %144, %cst_110 {dimension_numbers = #tpu.dot_dimension_numbers<[1], [0], [0], [1], [0, 0, 1, 1], [], []>} : vector<64x128xbf16>, vector<128x128xbf16>, vector<64x128xf32> -> vector<64x128xf32>
    %146 = arith.addf %140, %145 : vector<64x128xf32>
    %c17 = arith.constant 17 : index
    %c0_111 = arith.constant 0 : index
    %147 = vector.load %arg15[%c17, %c0_111] : memref<96x128xf32, #tpu.memory_space<vmem>>, vector<64x128xf32>
    %cst_112 = arith.constant 0.000000e+00 : f32
    %148 = vector.broadcast %cst_112 : f32 to vector<64x128xf32>
    %149 = arith.select %109, %147, %148 : vector<64x128xi1>, vector<64x128xf32>
    %150 = arith.truncf %149 : vector<64x128xf32> to vector<64x128xbf16>
    %c5_113 = arith.constant 5 : index
    %c0_114 = arith.constant 0 : index
    %c0_115 = arith.constant 0 : index
    %151 = vector.load %arg5[%c5_113, %c0_114, %c0_115] : memref<9x128x128xbf16, #tpu.memory_space<vmem>>, vector<1x128x128xbf16>
    %152 = vector.shape_cast %151 : vector<1x128x128xbf16> to vector<128x128xbf16>
    %cst_116 = arith.constant dense<0.000000e+00> : vector<64x128xf32>
    %153 = tpu.matmul %150, %152, %cst_116 {dimension_numbers = #tpu.dot_dimension_numbers<[1], [0], [0], [1], [0, 0, 1, 1], [], []>} : vector<64x128xbf16>, vector<128x128xbf16>, vector<64x128xf32> -> vector<64x128xf32>
    %154 = arith.addf %146, %153 : vector<64x128xf32>
    %c23_117 = arith.constant 23 : index
    %c0_118 = arith.constant 0 : index
    %155 = vector.load %arg15[%c23_117, %c0_118] : memref<96x128xf32, #tpu.memory_space<vmem>>, vector<64x128xf32>
    %cst_119 = arith.constant 0.000000e+00 : f32
    %156 = vector.broadcast %cst_119 : f32 to vector<64x128xf32>
    %157 = arith.select %107, %155, %156 : vector<64x128xi1>, vector<64x128xf32>
    %158 = arith.truncf %157 : vector<64x128xf32> to vector<64x128xbf16>
    %c6_120 = arith.constant 6 : index
    %c0_121 = arith.constant 0 : index
    %c0_122 = arith.constant 0 : index
    %159 = vector.load %arg5[%c6_120, %c0_121, %c0_122] : memref<9x128x128xbf16, #tpu.memory_space<vmem>>, vector<1x128x128xbf16>
    %160 = vector.shape_cast %159 : vector<1x128x128xbf16> to vector<128x128xbf16>
    %cst_123 = arith.constant dense<0.000000e+00> : vector<64x128xf32>
    %161 = tpu.matmul %158, %160, %cst_123 {dimension_numbers = #tpu.dot_dimension_numbers<[1], [0], [0], [1], [0, 0, 1, 1], [], []>} : vector<64x128xbf16>, vector<128x128xbf16>, vector<64x128xf32> -> vector<64x128xf32>
    %162 = arith.addf %154, %161 : vector<64x128xf32>
    %c24_124 = arith.constant 24 : index
    %c0_125 = arith.constant 0 : index
    %163 = vector.load %arg15[%c24_124, %c0_125] : memref<96x128xf32, #tpu.memory_space<vmem>>, vector<64x128xf32>
    %164 = arith.truncf %163 : vector<64x128xf32> to vector<64x128xbf16>
    %c7_126 = arith.constant 7 : index
    %c0_127 = arith.constant 0 : index
    %c0_128 = arith.constant 0 : index
    %165 = vector.load %arg5[%c7_126, %c0_127, %c0_128] : memref<9x128x128xbf16, #tpu.memory_space<vmem>>, vector<1x128x128xbf16>
    %166 = vector.shape_cast %165 : vector<1x128x128xbf16> to vector<128x128xbf16>
    %cst_129 = arith.constant dense<0.000000e+00> : vector<64x128xf32>
    %167 = tpu.matmul %164, %166, %cst_129 {dimension_numbers = #tpu.dot_dimension_numbers<[1], [0], [0], [1], [0, 0, 1, 1], [], []>} : vector<64x128xbf16>, vector<128x128xbf16>, vector<64x128xf32> -> vector<64x128xf32>
    %168 = arith.addf %162, %167 : vector<64x128xf32>
    %c25_130 = arith.constant 25 : index
    %c0_131 = arith.constant 0 : index
    %169 = vector.load %arg15[%c25_130, %c0_131] : memref<96x128xf32, #tpu.memory_space<vmem>>, vector<64x128xf32>
    %cst_132 = arith.constant 0.000000e+00 : f32
    %170 = vector.broadcast %cst_132 : f32 to vector<64x128xf32>
    %171 = arith.select %109, %169, %170 : vector<64x128xi1>, vector<64x128xf32>
    %172 = arith.truncf %171 : vector<64x128xf32> to vector<64x128xbf16>
    %c8_133 = arith.constant 8 : index
    %c0_134 = arith.constant 0 : index
    %c0_135 = arith.constant 0 : index
    %173 = vector.load %arg5[%c8_133, %c0_134, %c0_135] : memref<9x128x128xbf16, #tpu.memory_space<vmem>>, vector<1x128x128xbf16>
    %174 = vector.shape_cast %173 : vector<1x128x128xbf16> to vector<128x128xbf16>
    %cst_136 = arith.constant dense<0.000000e+00> : vector<64x128xf32>
    %175 = tpu.matmul %172, %174, %cst_136 {dimension_numbers = #tpu.dot_dimension_numbers<[1], [0], [0], [1], [0, 0, 1, 1], [], []>} : vector<64x128xbf16>, vector<128x128xbf16>, vector<64x128xf32> -> vector<64x128xf32>
    %176 = arith.addf %168, %175 : vector<64x128xf32>
    %c0_137 = arith.constant 0 : index
    %c0_138 = arith.constant 0 : index
    %177 = vector.load %arg6[%c0_137, %c0_138] : memref<1x128xf32, #tpu.memory_space<vmem>>, vector<1x128xf32>
    %178 = vector.broadcast %177 : vector<1x128xf32> to vector<64x128xf32>
    %179 = arith.addf %176, %178 : vector<64x128xf32>
    %cst_139 = arith.constant 0.000000e+00 : f32
    %180 = vector.broadcast %cst_139 : f32 to vector<64x128xf32>
    %181 = arith.maximumf %179, %180 : vector<64x128xf32>
    %c16_140 = arith.constant 16 : index
    %c0_141 = arith.constant 0 : index
    %182 = vector.load %arg15[%c16_140, %c0_141] : memref<96x128xf32, #tpu.memory_space<vmem>>, vector<64x128xf32>
    tpu.vector_store %arg15[%c16_140, %c0_141], %181 {strides = array<i32>} : memref<96x128xf32, #tpu.memory_space<vmem>>, vector<64x128xf32>,
    %c17_142 = arith.constant 17 : index
    %c0_143 = arith.constant 0 : index
    %183 = vector.load %arg15[%c17_142, %c0_143] : memref<96x128xf32, #tpu.memory_space<vmem>>, vector<64x128xf32>
    %184 = arith.maximumf %181, %183 : vector<64x128xf32>
    %c24_144 = arith.constant 24 : index
    %c0_145 = arith.constant 0 : index
    %185 = vector.load %arg15[%c24_144, %c0_145] : memref<96x128xf32, #tpu.memory_space<vmem>>, vector<64x128xf32>
    %c25_146 = arith.constant 25 : index
    %c0_147 = arith.constant 0 : index
    %186 = vector.load %arg15[%c25_146, %c0_147] : memref<96x128xf32, #tpu.memory_space<vmem>>, vector<64x128xf32>
    %187 = arith.maximumf %185, %186 : vector<64x128xf32>
    %188 = arith.maximumf %184, %187 : vector<64x128xf32>
    %c0_148 = arith.constant 0 : index
    %c0_149 = arith.constant 0 : index
    %189 = vector.load %arg7[%c0_148, %c0_149] : memref<16x64xbf16, #tpu.memory_space<vmem>>, vector<16x64xbf16>
    %190 = arith.truncf %188 : vector<64x128xf32> to vector<64x128xbf16>
    %cst_150 = arith.constant dense<0.000000e+00> : vector<16x128xf32>
    %191 = tpu.matmul %189, %190, %cst_150 {dimension_numbers = #tpu.dot_dimension_numbers<[1], [0], [0], [1], [0, 0, 1, 1], [], []>} : vector<16x64xbf16>, vector<64x128xbf16>, vector<16x128xf32> -> vector<16x128xf32>
    %cst_151 = arith.constant 0.000000e+00 : f32
    %192 = vector.broadcast %cst_151 : f32 to vector<8x128xf32>
    %c0_152 = arith.constant 0 : index
    %c0_153 = arith.constant 0 : index
    %193 = vector.load %arg16[%c0_152, %c0_153] : memref<32x128xf32, #tpu.memory_space<vmem>>, vector<8x128xf32>
    tpu.vector_store %arg16[%c0_152, %c0_153], %192 {strides = array<i32>} : memref<32x128xf32, #tpu.memory_space<vmem>>, vector<8x128xf32>,
    %cst_154 = arith.constant 0.000000e+00 : f32
    %194 = vector.broadcast %cst_154 : f32 to vector<8x128xf32>
    %c24_155 = arith.constant 24 : index
    %c0_156 = arith.constant 0 : index
    %195 = vector.load %arg16[%c24_155, %c0_156] : memref<32x128xf32, #tpu.memory_space<vmem>>, vector<8x128xf32>
    tpu.vector_store %arg16[%c24_155, %c0_156], %194 {strides = array<i32>} : memref<32x128xf32, #tpu.memory_space<vmem>>, vector<8x128xf32>,
    %c8_157 = arith.constant 8 : index
    %c0_158 = arith.constant 0 : index
    %196 = vector.load %arg16[%c8_157, %c0_158] : memref<32x128xf32, #tpu.memory_space<vmem>>, vector<16x128xf32>
    tpu.vector_store %arg16[%c8_157, %c0_158], %191 {strides = array<i32>} : memref<32x128xf32, #tpu.memory_space<vmem>>, vector<16x128xf32>,
    %197 = tpu.iota {dimensions = array<i32: 0>} : vector<16x128xi32>
    %c3_i32 = arith.constant 3 : i32
    %198 = vector.broadcast %c3_i32 : i32 to vector<16x128xi32>
    %199 = arith.andi %197, %198 : vector<16x128xi32>
    %c1_i32_159 = arith.constant 1 : i32
    %200 = vector.broadcast %c1_i32_159 : i32 to vector<16x128xi32>
    %201 = arith.cmpi sge, %199, %200 : vector<16x128xi32>
    %c2_i32 = arith.constant 2 : i32
    %202 = vector.broadcast %c2_i32 : i32 to vector<16x128xi32>
    %203 = arith.cmpi sle, %199, %202 : vector<16x128xi32>
    %cst_160 = arith.constant 0.000000e+00 : f32
    %204 = vector.broadcast %cst_160 : f32 to vector<16x128xf32>
    %c3_161 = arith.constant 3 : index
    %c0_162 = arith.constant 0 : index
    %205 = vector.load %arg16[%c3_161, %c0_162] : memref<32x128xf32, #tpu.memory_space<vmem>>, vector<16x128xf32>
    %cst_163 = arith.constant 0.000000e+00 : f32
    %206 = vector.broadcast %cst_163 : f32 to vector<16x128xf32>
    %207 = arith.select %201, %205, %206 : vector<16x128xi1>, vector<16x128xf32>
    %208 = arith.truncf %207 : vector<16x128xf32> to vector<16x128xbf16>
    %c0_164 = arith.constant 0 : index
    %c0_165 = arith.constant 0 : index
    %c0_166 = arith.constant 0 : index
    %209 = vector.load %arg8[%c0_164, %c0_165, %c0_166] : memref<9x128x128xbf16, #tpu.memory_space<vmem>>, vector<1x128x128xbf16>
    %210 = vector.shape_cast %209 : vector<1x128x128xbf16> to vector<128x128xbf16>
    %cst_167 = arith.constant dense<0.000000e+00> : vector<16x128xf32>
    %211 = tpu.matmul %208, %210, %cst_167 {dimension_numbers = #tpu.dot_dimension_numbers<[1], [0], [0], [1], [0, 0, 1, 1], [], []>} : vector<16x128xbf16>, vector<128x128xbf16>, vector<16x128xf32> -> vector<16x128xf32>
    %212 = arith.addf %204, %211 : vector<16x128xf32>
    %c4_168 = arith.constant 4 : index
    %c0_169 = arith.constant 0 : index
    %213 = vector.load %arg16[%c4_168, %c0_169] : memref<32x128xf32, #tpu.memory_space<vmem>>, vector<16x128xf32>
    %214 = arith.truncf %213 : vector<16x128xf32> to vector<16x128xbf16>
    %c1_170 = arith.constant 1 : index
    %c0_171 = arith.constant 0 : index
    %c0_172 = arith.constant 0 : index
    %215 = vector.load %arg8[%c1_170, %c0_171, %c0_172] : memref<9x128x128xbf16, #tpu.memory_space<vmem>>, vector<1x128x128xbf16>
    %216 = vector.shape_cast %215 : vector<1x128x128xbf16> to vector<128x128xbf16>
    %cst_173 = arith.constant dense<0.000000e+00> : vector<16x128xf32>
    %217 = tpu.matmul %214, %216, %cst_173 {dimension_numbers = #tpu.dot_dimension_numbers<[1], [0], [0], [1], [0, 0, 1, 1], [], []>} : vector<16x128xbf16>, vector<128x128xbf16>, vector<16x128xf32> -> vector<16x128xf32>
    %218 = arith.addf %212, %217 : vector<16x128xf32>
    %c5_174 = arith.constant 5 : index
    %c0_175 = arith.constant 0 : index
    %219 = vector.load %arg16[%c5_174, %c0_175] : memref<32x128xf32, #tpu.memory_space<vmem>>, vector<16x128xf32>
    %cst_176 = arith.constant 0.000000e+00 : f32
    %220 = vector.broadcast %cst_176 : f32 to vector<16x128xf32>
    %221 = arith.select %203, %219, %220 : vector<16x128xi1>, vector<16x128xf32>
    %222 = arith.truncf %221 : vector<16x128xf32> to vector<16x128xbf16>
    %c2_177 = arith.constant 2 : index
    %c0_178 = arith.constant 0 : index
    %c0_179 = arith.constant 0 : index
    %223 = vector.load %arg8[%c2_177, %c0_178, %c0_179] : memref<9x128x128xbf16, #tpu.memory_space<vmem>>, vector<1x128x128xbf16>
    %224 = vector.shape_cast %223 : vector<1x128x128xbf16> to vector<128x128xbf16>
    %cst_180 = arith.constant dense<0.000000e+00> : vector<16x128xf32>
    %225 = tpu.matmul %222, %224, %cst_180 {dimension_numbers = #tpu.dot_dimension_numbers<[1], [0], [0], [1], [0, 0, 1, 1], [], []>} : vector<16x128xbf16>, vector<128x128xbf16>, vector<16x128xf32> -> vector<16x128xf32>
    %226 = arith.addf %218, %225 : vector<16x128xf32>
    %c7_181 = arith.constant 7 : index
    %c0_182 = arith.constant 0 : index
    %227 = vector.load %arg16[%c7_181, %c0_182] : memref<32x128xf32, #tpu.memory_space<vmem>>, vector<16x128xf32>
    %cst_183 = arith.constant 0.000000e+00 : f32
    %228 = vector.broadcast %cst_183 : f32 to vector<16x128xf32>
    %229 = arith.select %201, %227, %228 : vector<16x128xi1>, vector<16x128xf32>
    %230 = arith.truncf %229 : vector<16x128xf32> to vector<16x128xbf16>
    %c3_184 = arith.constant 3 : index
    %c0_185 = arith.constant 0 : index
    %c0_186 = arith.constant 0 : index
    %231 = vector.load %arg8[%c3_184, %c0_185, %c0_186] : memref<9x128x128xbf16, #tpu.memory_space<vmem>>, vector<1x128x128xbf16>
    %232 = vector.shape_cast %231 : vector<1x128x128xbf16> to vector<128x128xbf16>
    %cst_187 = arith.constant dense<0.000000e+00> : vector<16x128xf32>
    %233 = tpu.matmul %230, %232, %cst_187 {dimension_numbers = #tpu.dot_dimension_numbers<[1], [0], [0], [1], [0, 0, 1, 1], [], []>} : vector<16x128xbf16>, vector<128x128xbf16>, vector<16x128xf32> -> vector<16x128xf32>
    %234 = arith.addf %226, %233 : vector<16x128xf32>
    %c8_188 = arith.constant 8 : index
    %c0_189 = arith.constant 0 : index
    %235 = vector.load %arg16[%c8_188, %c0_189] : memref<32x128xf32, #tpu.memory_space<vmem>>, vector<16x128xf32>
    %236 = arith.truncf %235 : vector<16x128xf32> to vector<16x128xbf16>
    %c4_190 = arith.constant 4 : index
    %c0_191 = arith.constant 0 : index
    %c0_192 = arith.constant 0 : index
    %237 = vector.load %arg8[%c4_190, %c0_191, %c0_192] : memref<9x128x128xbf16, #tpu.memory_space<vmem>>, vector<1x128x128xbf16>
    %238 = vector.shape_cast %237 : vector<1x128x128xbf16> to vector<128x128xbf16>
    %cst_193 = arith.constant dense<0.000000e+00> : vector<16x128xf32>
    %239 = tpu.matmul %236, %238, %cst_193 {dimension_numbers = #tpu.dot_dimension_numbers<[1], [0], [0], [1], [0, 0, 1, 1], [], []>} : vector<16x128xbf16>, vector<128x128xbf16>, vector<16x128xf32> -> vector<16x128xf32>
    %240 = arith.addf %234, %239 : vector<16x128xf32>
    %c9_194 = arith.constant 9 : index
    %c0_195 = arith.constant 0 : index
    %241 = vector.load %arg16[%c9_194, %c0_195] : memref<32x128xf32, #tpu.memory_space<vmem>>, vector<16x128xf32>
    %cst_196 = arith.constant 0.000000e+00 : f32
    %242 = vector.broadcast %cst_196 : f32 to vector<16x128xf32>
    %243 = arith.select %203, %241, %242 : vector<16x128xi1>, vector<16x128xf32>
    %244 = arith.truncf %243 : vector<16x128xf32> to vector<16x128xbf16>
    %c5_197 = arith.constant 5 : index
    %c0_198 = arith.constant 0 : index
    %c0_199 = arith.constant 0 : index
    %245 = vector.load %arg8[%c5_197, %c0_198, %c0_199] : memref<9x128x128xbf16, #tpu.memory_space<vmem>>, vector<1x128x128xbf16>
    %246 = vector.shape_cast %245 : vector<1x128x128xbf16> to vector<128x128xbf16>
    %cst_200 = arith.constant dense<0.000000e+00> : vector<16x128xf32>
    %247 = tpu.matmul %244, %246, %cst_200 {dimension_numbers = #tpu.dot_dimension_numbers<[1], [0], [0], [1], [0, 0, 1, 1], [], []>} : vector<16x128xbf16>, vector<128x128xbf16>, vector<16x128xf32> -> vector<16x128xf32>
    %248 = arith.addf %240, %247 : vector<16x128xf32>
    %c11 = arith.constant 11 : index
    %c0_201 = arith.constant 0 : index
    %249 = vector.load %arg16[%c11, %c0_201] : memref<32x128xf32, #tpu.memory_space<vmem>>, vector<16x128xf32>
    %cst_202 = arith.constant 0.000000e+00 : f32
    %250 = vector.broadcast %cst_202 : f32 to vector<16x128xf32>
    %251 = arith.select %201, %249, %250 : vector<16x128xi1>, vector<16x128xf32>
    %252 = arith.truncf %251 : vector<16x128xf32> to vector<16x128xbf16>
    %c6_203 = arith.constant 6 : index
    %c0_204 = arith.constant 0 : index
    %c0_205 = arith.constant 0 : index
    %253 = vector.load %arg8[%c6_203, %c0_204, %c0_205] : memref<9x128x128xbf16, #tpu.memory_space<vmem>>, vector<1x128x128xbf16>
    %254 = vector.shape_cast %253 : vector<1x128x128xbf16> to vector<128x128xbf16>
    %cst_206 = arith.constant dense<0.000000e+00> : vector<16x128xf32>
    %255 = tpu.matmul %252, %254, %cst_206 {dimension_numbers = #tpu.dot_dimension_numbers<[1], [0], [0], [1], [0, 0, 1, 1], [], []>} : vector<16x128xbf16>, vector<128x128xbf16>, vector<16x128xf32> -> vector<16x128xf32>
    %256 = arith.addf %248, %255 : vector<16x128xf32>
    %c12 = arith.constant 12 : index
    %c0_207 = arith.constant 0 : index
    %257 = vector.load %arg16[%c12, %c0_207] : memref<32x128xf32, #tpu.memory_space<vmem>>, vector<16x128xf32>
    %258 = arith.truncf %257 : vector<16x128xf32> to vector<16x128xbf16>
    %c7_208 = arith.constant 7 : index
    %c0_209 = arith.constant 0 : index
    %c0_210 = arith.constant 0 : index
    %259 = vector.load %arg8[%c7_208, %c0_209, %c0_210] : memref<9x128x128xbf16, #tpu.memory_space<vmem>>, vector<1x128x128xbf16>
    %260 = vector.shape_cast %259 : vector<1x128x128xbf16> to vector<128x128xbf16>
    %cst_211 = arith.constant dense<0.000000e+00> : vector<16x128xf32>
    %261 = tpu.matmul %258, %260, %cst_211 {dimension_numbers = #tpu.dot_dimension_numbers<[1], [0], [0], [1], [0, 0, 1, 1], [], []>} : vector<16x128xbf16>, vector<128x128xbf16>, vector<16x128xf32> -> vector<16x128xf32>
    %262 = arith.addf %256, %261 : vector<16x128xf32>
    %c13 = arith.constant 13 : index
    %c0_212 = arith.constant 0 : index
    %263 = vector.load %arg16[%c13, %c0_212] : memref<32x128xf32, #tpu.memory_space<vmem>>, vector<16x128xf32>
    %cst_213 = arith.constant 0.000000e+00 : f32
    %264 = vector.broadcast %cst_213 : f32 to vector<16x128xf32>
    %265 = arith.select %203, %263, %264 : vector<16x128xi1>, vector<16x128xf32>
    %266 = arith.truncf %265 : vector<16x128xf32> to vector<16x128xbf16>
    %c8_214 = arith.constant 8 : index
    %c0_215 = arith.constant 0 : index
    %c0_216 = arith.constant 0 : index
    %267 = vector.load %arg8[%c8_214, %c0_215, %c0_216] : memref<9x128x128xbf16, #tpu.memory_space<vmem>>, vector<1x128x128xbf16>
    %268 = vector.shape_cast %267 : vector<1x128x128xbf16> to vector<128x128xbf16>
    %cst_217 = arith.constant dense<0.000000e+00> : vector<16x128xf32>
    %269 = tpu.matmul %266, %268, %cst_217 {dimension_numbers = #tpu.dot_dimension_numbers<[1], [0], [0], [1], [0, 0, 1, 1], [], []>} : vector<16x128xbf16>, vector<128x128xbf16>, vector<16x128xf32> -> vector<16x128xf32>
    %270 = arith.addf %262, %269 : vector<16x128xf32>
    %c0_218 = arith.constant 0 : index
    %c0_219 = arith.constant 0 : index
    %271 = vector.load %arg9[%c0_218, %c0_219] : memref<1x128xf32, #tpu.memory_space<vmem>>, vector<1x128xf32>
    %272 = vector.broadcast %271 : vector<1x128xf32> to vector<16x128xf32>
    %273 = arith.addf %270, %272 : vector<16x128xf32>
    %cst_220 = arith.constant 0.000000e+00 : f32
    %274 = vector.broadcast %cst_220 : f32 to vector<16x128xf32>
    %275 = arith.maximumf %273, %274 : vector<16x128xf32>
    %cst_221 = arith.constant 0.000000e+00 : f32
    %276 = vector.broadcast %cst_221 : f32 to vector<8x128xf32>
    %c0_222 = arith.constant 0 : index
    %c0_223 = arith.constant 0 : index
    %277 = vector.load %arg16[%c0_222, %c0_223] : memref<32x128xf32, #tpu.memory_space<vmem>>, vector<8x128xf32>
    tpu.vector_store %arg16[%c0_222, %c0_223], %276 {strides = array<i32>} : memref<32x128xf32, #tpu.memory_space<vmem>>, vector<8x128xf32>,
    %cst_224 = arith.constant 0.000000e+00 : f32
    %278 = vector.broadcast %cst_224 : f32 to vector<8x128xf32>
    %c24_225 = arith.constant 24 : index
    %c0_226 = arith.constant 0 : index
    %279 = vector.load %arg16[%c24_225, %c0_226] : memref<32x128xf32, #tpu.memory_space<vmem>>, vector<8x128xf32>
    tpu.vector_store %arg16[%c24_225, %c0_226], %278 {strides = array<i32>} : memref<32x128xf32, #tpu.memory_space<vmem>>, vector<8x128xf32>,
    %c8_227 = arith.constant 8 : index
    %c0_228 = arith.constant 0 : index
    %280 = vector.load %arg16[%c8_227, %c0_228] : memref<32x128xf32, #tpu.memory_space<vmem>>, vector<16x128xf32>
    tpu.vector_store %arg16[%c8_227, %c0_228], %275 {strides = array<i32>} : memref<32x128xf32, #tpu.memory_space<vmem>>, vector<16x128xf32>,
    %281 = tpu.iota {dimensions = array<i32: 0>} : vector<16x128xi32>
    %c3_i32_229 = arith.constant 3 : i32
    %282 = vector.broadcast %c3_i32_229 : i32 to vector<16x128xi32>
    %283 = arith.andi %281, %282 : vector<16x128xi32>
    %c1_i32_230 = arith.constant 1 : i32
    %284 = vector.broadcast %c1_i32_230 : i32 to vector<16x128xi32>
    %285 = arith.cmpi sge, %283, %284 : vector<16x128xi32>
    %c2_i32_231 = arith.constant 2 : i32
    %286 = vector.broadcast %c2_i32_231 : i32 to vector<16x128xi32>
    %287 = arith.cmpi sle, %283, %286 : vector<16x128xi32>
    %cst_232 = arith.constant 0.000000e+00 : f32
    %288 = vector.broadcast %cst_232 : f32 to vector<16x128xf32>
    %c3_233 = arith.constant 3 : index
    %c0_234 = arith.constant 0 : index
    %289 = vector.load %arg16[%c3_233, %c0_234] : memref<32x128xf32, #tpu.memory_space<vmem>>, vector<16x128xf32>
    %cst_235 = arith.constant 0.000000e+00 : f32
    %290 = vector.broadcast %cst_235 : f32 to vector<16x128xf32>
    %291 = arith.select %285, %289, %290 : vector<16x128xi1>, vector<16x128xf32>
    %292 = arith.truncf %291 : vector<16x128xf32> to vector<16x128xbf16>
    %c0_236 = arith.constant 0 : index
    %c0_237 = arith.constant 0 : index
    %c0_238 = arith.constant 0 : index
    %293 = vector.load %arg10[%c0_236, %c0_237, %c0_238] : memref<9x128x128xbf16, #tpu.memory_space<vmem>>, vector<1x128x128xbf16>
    %294 = vector.shape_cast %293 : vector<1x128x128xbf16> to vector<128x128xbf16>
    %cst_239 = arith.constant dense<0.000000e+00> : vector<16x128xf32>
    %295 = tpu.matmul %292, %294, %cst_239 {dimension_numbers = #tpu.dot_dimension_numbers<[1], [0], [0], [1], [0, 0, 1, 1], [], []>} : vector<16x128xbf16>, vector<128x128xbf16>, vector<16x128xf32> -> vector<16x128xf32>
    %296 = arith.addf %288, %295 : vector<16x128xf32>
    %c4_240 = arith.constant 4 : index
    %c0_241 = arith.constant 0 : index
    %297 = vector.load %arg16[%c4_240, %c0_241] : memref<32x128xf32, #tpu.memory_space<vmem>>, vector<16x128xf32>
    %298 = arith.truncf %297 : vector<16x128xf32> to vector<16x128xbf16>
    %c1_242 = arith.constant 1 : index
    %c0_243 = arith.constant 0 : index
    %c0_244 = arith.constant 0 : index
    %299 = vector.load %arg10[%c1_242, %c0_243, %c0_244] : memref<9x128x128xbf16, #tpu.memory_space<vmem>>, vector<1x128x128xbf16>
    %300 = vector.shape_cast %299 : vector<1x128x128xbf16> to vector<128x128xbf16>
    %cst_245 = arith.constant dense<0.000000e+00> : vector<16x128xf32>
    %301 = tpu.matmul %298, %300, %cst_245 {dimension_numbers = #tpu.dot_dimension_numbers<[1], [0], [0], [1], [0, 0, 1, 1], [], []>} : vector<16x128xbf16>, vector<128x128xbf16>, vector<16x128xf32> -> vector<16x128xf32>
    %302 = arith.addf %296, %301 : vector<16x128xf32>
    %c5_246 = arith.constant 5 : index
    %c0_247 = arith.constant 0 : index
    %303 = vector.load %arg16[%c5_246, %c0_247] : memref<32x128xf32, #tpu.memory_space<vmem>>, vector<16x128xf32>
    %cst_248 = arith.constant 0.000000e+00 : f32
    %304 = vector.broadcast %cst_248 : f32 to vector<16x128xf32>
    %305 = arith.select %287, %303, %304 : vector<16x128xi1>, vector<16x128xf32>
    %306 = arith.truncf %305 : vector<16x128xf32> to vector<16x128xbf16>
    %c2_249 = arith.constant 2 : index
    %c0_250 = arith.constant 0 : index
    %c0_251 = arith.constant 0 : index
    %307 = vector.load %arg10[%c2_249, %c0_250, %c0_251] : memref<9x128x128xbf16, #tpu.memory_space<vmem>>, vector<1x128x128xbf16>
    %308 = vector.shape_cast %307 : vector<1x128x128xbf16> to vector<128x128xbf16>
    %cst_252 = arith.constant dense<0.000000e+00> : vector<16x128xf32>
    %309 = tpu.matmul %306, %308, %cst_252 {dimension_numbers = #tpu.dot_dimension_numbers<[1], [0], [0], [1], [0, 0, 1, 1], [], []>} : vector<16x128xbf16>, vector<128x128xbf16>, vector<16x128xf32> -> vector<16x128xf32>
    %310 = arith.addf %302, %309 : vector<16x128xf32>
    %c7_253 = arith.constant 7 : index
    %c0_254 = arith.constant 0 : index
    %311 = vector.load %arg16[%c7_253, %c0_254] : memref<32x128xf32, #tpu.memory_space<vmem>>, vector<16x128xf32>
    %cst_255 = arith.constant 0.000000e+00 : f32
    %312 = vector.broadcast %cst_255 : f32 to vector<16x128xf32>
    %313 = arith.select %285, %311, %312 : vector<16x128xi1>, vector<16x128xf32>
    %314 = arith.truncf %313 : vector<16x128xf32> to vector<16x128xbf16>
    %c3_256 = arith.constant 3 : index
    %c0_257 = arith.constant 0 : index
    %c0_258 = arith.constant 0 : index
    %315 = vector.load %arg10[%c3_256, %c0_257, %c0_258] : memref<9x128x128xbf16, #tpu.memory_space<vmem>>, vector<1x128x128xbf16>
    %316 = vector.shape_cast %315 : vector<1x128x128xbf16> to vector<128x128xbf16>
    %cst_259 = arith.constant dense<0.000000e+00> : vector<16x128xf32>
    %317 = tpu.matmul %314, %316, %cst_259 {dimension_numbers = #tpu.dot_dimension_numbers<[1], [0], [0], [1], [0, 0, 1, 1], [], []>} : vector<16x128xbf16>, vector<128x128xbf16>, vector<16x128xf32> -> vector<16x128xf32>
    %318 = arith.addf %310, %317 : vector<16x128xf32>
    %c8_260 = arith.constant 8 : index
    %c0_261 = arith.constant 0 : index
    %319 = vector.load %arg16[%c8_260, %c0_261] : memref<32x128xf32, #tpu.memory_space<vmem>>, vector<16x128xf32>
    %320 = arith.truncf %319 : vector<16x128xf32> to vector<16x128xbf16>
    %c4_262 = arith.constant 4 : index
    %c0_263 = arith.constant 0 : index
    %c0_264 = arith.constant 0 : index
    %321 = vector.load %arg10[%c4_262, %c0_263, %c0_264] : memref<9x128x128xbf16, #tpu.memory_space<vmem>>, vector<1x128x128xbf16>
    %322 = vector.shape_cast %321 : vector<1x128x128xbf16> to vector<128x128xbf16>
    %cst_265 = arith.constant dense<0.000000e+00> : vector<16x128xf32>
    %323 = tpu.matmul %320, %322, %cst_265 {dimension_numbers = #tpu.dot_dimension_numbers<[1], [0], [0], [1], [0, 0, 1, 1], [], []>} : vector<16x128xbf16>, vector<128x128xbf16>, vector<16x128xf32> -> vector<16x128xf32>
    %324 = arith.addf %318, %323 : vector<16x128xf32>
    %c9_266 = arith.constant 9 : index
    %c0_267 = arith.constant 0 : index
    %325 = vector.load %arg16[%c9_266, %c0_267] : memref<32x128xf32, #tpu.memory_space<vmem>>, vector<16x128xf32>
    %cst_268 = arith.constant 0.000000e+00 : f32
    %326 = vector.broadcast %cst_268 : f32 to vector<16x128xf32>
    %327 = arith.select %287, %325, %326 : vector<16x128xi1>, vector<16x128xf32>
    %328 = arith.truncf %327 : vector<16x128xf32> to vector<16x128xbf16>
    %c5_269 = arith.constant 5 : index
    %c0_270 = arith.constant 0 : index
    %c0_271 = arith.constant 0 : index
    %329 = vector.load %arg10[%c5_269, %c0_270, %c0_271] : memref<9x128x128xbf16, #tpu.memory_space<vmem>>, vector<1x128x128xbf16>
    %330 = vector.shape_cast %329 : vector<1x128x128xbf16> to vector<128x128xbf16>
    %cst_272 = arith.constant dense<0.000000e+00> : vector<16x128xf32>
    %331 = tpu.matmul %328, %330, %cst_272 {dimension_numbers = #tpu.dot_dimension_numbers<[1], [0], [0], [1], [0, 0, 1, 1], [], []>} : vector<16x128xbf16>, vector<128x128xbf16>, vector<16x128xf32> -> vector<16x128xf32>
    %332 = arith.addf %324, %331 : vector<16x128xf32>
    %c11_273 = arith.constant 11 : index
    %c0_274 = arith.constant 0 : index
    %333 = vector.load %arg16[%c11_273, %c0_274] : memref<32x128xf32, #tpu.memory_space<vmem>>, vector<16x128xf32>
    %cst_275 = arith.constant 0.000000e+00 : f32
    %334 = vector.broadcast %cst_275 : f32 to vector<16x128xf32>
    %335 = arith.select %285, %333, %334 : vector<16x128xi1>, vector<16x128xf32>
    %336 = arith.truncf %335 : vector<16x128xf32> to vector<16x128xbf16>
    %c6_276 = arith.constant 6 : index
    %c0_277 = arith.constant 0 : index
    %c0_278 = arith.constant 0 : index
    %337 = vector.load %arg10[%c6_276, %c0_277, %c0_278] : memref<9x128x128xbf16, #tpu.memory_space<vmem>>, vector<1x128x128xbf16>
    %338 = vector.shape_cast %337 : vector<1x128x128xbf16> to vector<128x128xbf16>
    %cst_279 = arith.constant dense<0.000000e+00> : vector<16x128xf32>
    %339 = tpu.matmul %336, %338, %cst_279 {dimension_numbers = #tpu.dot_dimension_numbers<[1], [0], [0], [1], [0, 0, 1, 1], [], []>} : vector<16x128xbf16>, vector<128x128xbf16>, vector<16x128xf32> -> vector<16x128xf32>
    %340 = arith.addf %332, %339 : vector<16x128xf32>
    %c12_280 = arith.constant 12 : index
    %c0_281 = arith.constant 0 : index
    %341 = vector.load %arg16[%c12_280, %c0_281] : memref<32x128xf32, #tpu.memory_space<vmem>>, vector<16x128xf32>
    %342 = arith.truncf %341 : vector<16x128xf32> to vector<16x128xbf16>
    %c7_282 = arith.constant 7 : index
    %c0_283 = arith.constant 0 : index
    %c0_284 = arith.constant 0 : index
    %343 = vector.load %arg10[%c7_282, %c0_283, %c0_284] : memref<9x128x128xbf16, #tpu.memory_space<vmem>>, vector<1x128x128xbf16>
    %344 = vector.shape_cast %343 : vector<1x128x128xbf16> to vector<128x128xbf16>
    %cst_285 = arith.constant dense<0.000000e+00> : vector<16x128xf32>
    %345 = tpu.matmul %342, %344, %cst_285 {dimension_numbers = #tpu.dot_dimension_numbers<[1], [0], [0], [1], [0, 0, 1, 1], [], []>} : vector<16x128xbf16>, vector<128x128xbf16>, vector<16x128xf32> -> vector<16x128xf32>
    %346 = arith.addf %340, %345 : vector<16x128xf32>
    %c13_286 = arith.constant 13 : index
    %c0_287 = arith.constant 0 : index
    %347 = vector.load %arg16[%c13_286, %c0_287] : memref<32x128xf32, #tpu.memory_space<vmem>>, vector<16x128xf32>
    %cst_288 = arith.constant 0.000000e+00 : f32
    %348 = vector.broadcast %cst_288 : f32 to vector<16x128xf32>
    %349 = arith.select %287, %347, %348 : vector<16x128xi1>, vector<16x128xf32>
    %350 = arith.truncf %349 : vector<16x128xf32> to vector<16x128xbf16>
    %c8_289 = arith.constant 8 : index
    %c0_290 = arith.constant 0 : index
    %c0_291 = arith.constant 0 : index
    %351 = vector.load %arg10[%c8_289, %c0_290, %c0_291] : memref<9x128x128xbf16, #tpu.memory_space<vmem>>, vector<1x128x128xbf16>
    %352 = vector.shape_cast %351 : vector<1x128x128xbf16> to vector<128x128xbf16>
    %cst_292 = arith.constant dense<0.000000e+00> : vector<16x128xf32>
    %353 = tpu.matmul %350, %352, %cst_292 {dimension_numbers = #tpu.dot_dimension_numbers<[1], [0], [0], [1], [0, 0, 1, 1], [], []>} : vector<16x128xbf16>, vector<128x128xbf16>, vector<16x128xf32> -> vector<16x128xf32>
    %354 = arith.addf %346, %353 : vector<16x128xf32>
    %c0_293 = arith.constant 0 : index
    %c0_294 = arith.constant 0 : index
    %355 = vector.load %arg11[%c0_293, %c0_294] : memref<1x128xf32, #tpu.memory_space<vmem>>, vector<1x128xf32>
    %356 = vector.broadcast %355 : vector<1x128xf32> to vector<16x128xf32>
    %357 = arith.addf %354, %356 : vector<16x128xf32>
    %cst_295 = arith.constant 0.000000e+00 : f32
    %358 = vector.broadcast %cst_295 : f32 to vector<16x128xf32>
    %359 = arith.maximumf %357, %358 : vector<16x128xf32>
    %c8_296 = arith.constant 8 : index
    %c0_297 = arith.constant 0 : index
    %360 = vector.load %arg16[%c8_296, %c0_297] : memref<32x128xf32, #tpu.memory_space<vmem>>, vector<16x128xf32>
    tpu.vector_store %arg16[%c8_296, %c0_297], %359 {strides = array<i32>} : memref<32x128xf32, #tpu.memory_space<vmem>>, vector<16x128xf32>,
    %c9_298 = arith.constant 9 : index
    %c0_299 = arith.constant 0 : index
    %361 = vector.load %arg16[%c9_298, %c0_299] : memref<32x128xf32, #tpu.memory_space<vmem>>, vector<16x128xf32>
    %362 = arith.maximumf %359, %361 : vector<16x128xf32>
    %c12_300 = arith.constant 12 : index
    %c0_301 = arith.constant 0 : index
    %363 = vector.load %arg16[%c12_300, %c0_301] : memref<32x128xf32, #tpu.memory_space<vmem>>, vector<16x128xf32>
    %c13_302 = arith.constant 13 : index
    %c0_303 = arith.constant 0 : index
    %364 = vector.load %arg16[%c13_302, %c0_303] : memref<32x128xf32, #tpu.memory_space<vmem>>, vector<16x128xf32>
    %365 = arith.maximumf %363, %364 : vector<16x128xf32>
    %366 = arith.maximumf %362, %365 : vector<16x128xf32>
    %c0_304 = arith.constant 0 : index
    %c0_305 = arith.constant 0 : index
    %367 = vector.load %arg12[%c0_304, %c0_305] : memref<4x16xbf16, #tpu.memory_space<vmem>>, vector<4x16xbf16>
    %368 = arith.truncf %366 : vector<16x128xf32> to vector<16x128xbf16>
    %cst_306 = arith.constant dense<0.000000e+00> : vector<4x128xf32>
    %369 = tpu.matmul %367, %368, %cst_306 {dimension_numbers = #tpu.dot_dimension_numbers<[1], [0], [0], [1], [0, 0, 1, 1], [], []>} : vector<4x16xbf16>, vector<16x128xbf16>, vector<4x128xf32> -> vector<4x128xf32>
    %c0_307 = arith.constant 0 : index
    %c0_308 = arith.constant 0 : index
    %c0_309 = arith.constant 0 : index
    %370 = vector.load %arg13[%c0_307, %c0_308, %c0_309] : memref<1x4x128xf32, #tpu.memory_space<vmem>>, vector<1x4x128xf32>
    %371 = vector.shape_cast %370 : vector<1x4x128xf32> to vector<4x128xf32>
    %372 = vector.shape_cast %369 : vector<4x128xf32> to vector<1x4x128xf32>
    tpu.vector_store %arg13[%c0_307, %c0_308, %c0_309], %372 {strides = array<i32>} : memref<1x4x128xf32, #tpu.memory_space<vmem>>, vector<1x4x128xf32>,
    return
  }
  func.func @transform_0(%arg0: i32) -> (i32, i32, i32) {
    %c0_i32 = arith.constant 0 : i32
    %c0_i32_0 = arith.constant 0 : i32
    %c0_i32_1 = arith.constant 0 : i32
    return %arg0, %c0_i32, %c0_i32_0 : i32, i32, i32
  }
  func.func @transform_1(%arg0: i32) -> (i32, i32, i32) {
    %c0_i32 = arith.constant 0 : i32
    %c0_i32_0 = arith.constant 0 : i32
    %c0_i32_1 = arith.constant 0 : i32
    %c0_i32_2 = arith.constant 0 : i32
    return %c0_i32, %c0_i32_0, %c0_i32_1 : i32, i32, i32
  }
  func.func @transform_2(%arg0: i32) -> (i32, i32) {
    %c0_i32 = arith.constant 0 : i32
    %c0_i32_0 = arith.constant 0 : i32
    %c0_i32_1 = arith.constant 0 : i32
    return %c0_i32, %c0_i32_0 : i32, i32
  }
  func.func @transform_3(%arg0: i32) -> (i32, i32) {
    %c0_i32 = arith.constant 0 : i32
    %c0_i32_0 = arith.constant 0 : i32
    %c0_i32_1 = arith.constant 0 : i32
    return %c0_i32, %c0_i32_0 : i32, i32
  }
  func.func @transform_4(%arg0: i32) -> (i32, i32, i32) {
    %c0_i32 = arith.constant 0 : i32
    %c0_i32_0 = arith.constant 0 : i32
    %c0_i32_1 = arith.constant 0 : i32
    %c0_i32_2 = arith.constant 0 : i32
    return %c0_i32, %c0_i32_0, %c0_i32_1 : i32, i32, i32
  }
  func.func @transform_5(%arg0: i32) -> (i32, i32) {
    %c0_i32 = arith.constant 0 : i32
    %c0_i32_0 = arith.constant 0 : i32
    %c0_i32_1 = arith.constant 0 : i32
    return %c0_i32, %c0_i32_0 : i32, i32
  }
  func.func @transform_6(%arg0: i32) -> (i32, i32) {
    %c0_i32 = arith.constant 0 : i32
    %c0_i32_0 = arith.constant 0 : i32
    %c0_i32_1 = arith.constant 0 : i32
    return %c0_i32, %c0_i32_0 : i32, i32
  }
  func.func @transform_7(%arg0: i32) -> (i32, i32, i32) {
    %c0_i32 = arith.constant 0 : i32
    %c0_i32_0 = arith.constant 0 : i32
    %c0_i32_1 = arith.constant 0 : i32
    %c0_i32_2 = arith.constant 0 : i32
    return %c0_i32, %c0_i32_0, %c0_i32_1 : i32, i32, i32
  }
  func.func @transform_8(%arg0: i32) -> (i32, i32) {
    %c0_i32 = arith.constant 0 : i32
    %c0_i32_0 = arith.constant 0 : i32
    %c0_i32_1 = arith.constant 0 : i32
    return %c0_i32, %c0_i32_0 : i32, i32
  }
  func.func @transform_9(%arg0: i32) -> (i32, i32, i32) {
    %c0_i32 = arith.constant 0 : i32
    %c0_i32_0 = arith.constant 0 : i32
    %c0_i32_1 = arith.constant 0 : i32
    %c0_i32_2 = arith.constant 0 : i32
    return %c0_i32, %c0_i32_0, %c0_i32_1 : i32, i32, i32
  }
  func.func @transform_10(%arg0: i32) -> (i32, i32) {
    %c0_i32 = arith.constant 0 : i32
    %c0_i32_0 = arith.constant 0 : i32
    %c0_i32_1 = arith.constant 0 : i32
    return %c0_i32, %c0_i32_0 : i32, i32
  }
  func.func @transform_11(%arg0: i32) -> (i32, i32) {
    %c0_i32 = arith.constant 0 : i32
    %c0_i32_0 = arith.constant 0 : i32
    %c0_i32_1 = arith.constant 0 : i32
    return %c0_i32, %c0_i32_0 : i32, i32
  }
  func.func @transform_12(%arg0: i32) -> (i32, i32, i32) {
    %c0_i32 = arith.constant 0 : i32
    %c0_i32_0 = arith.constant 0 : i32
    %c0_i32_1 = arith.constant 0 : i32
    return %arg0, %c0_i32, %c0_i32_0 : i32, i32, i32
  }
}

</mosaic_0001>

<bundles_post_ra>
// kernel: tpu_custom_call.1
= control target key start
LH: loop header
LB: loop body
LE: loop exit
PB: predicated region body
PF: predicated region fallthrough
CT: control target
= control target key end

     0   :  { %s12783_s0 = inlined_call_operand.vmem [shape: f32[2,256,3], index: 0, kind: input, shape index: {}]   ;;  %s12784_s1 = inlined_call_operand.hbm [shape: bf16[9,128,128], index: 1, kind: input, shape index: {}]   ;;  %s12785_s2 = inlined_call_operand.vmem [shape: f32[1,128], index: 2, kind: input, shape index: {}]   ;;  %s12786_s3 = inlined_call_operand.vmem [shape: bf16[64,256], index: 3, kind: input, shape index: {}]   ;;  %s12787_s4 = inlined_call_operand.hbm [shape: bf16[9,128,128], index: 4, kind: input, shape index: {}]   ;;  %s12788_s5 = inlined_call_operand.vmem [shape: f32[1,128], index: 5, kind: input, shape index: {}]   ;;  %s12789_s6 = inlined_call_operand.vmem [shape: bf16[16,64], index: 6, kind: input, shape index: {}]   ;;  %s12790_s7 = inlined_call_operand.hbm [shape: bf16[9,128,128], index: 7, kind: input, shape index: {}]   ;;  %s12791_s8 = inlined_call_operand.vmem [shape: f32[1,128], index: 8, kind: input, shape index: {}]   ;;  %s12792_s9 = inlined_call_operand.hbm [shape: bf16[9,128,128], index: 9, kind: input, shape index: {}]   ;;  %s12793_s10 = inlined_call_operand.vmem [shape: f32[1,128], index: 10, kind: input, shape index: {}]   ;;  %s12794_s11 = inlined_call_operand.vmem [shape: bf16[4,16], index: 11, kind: input, shape index: {}]   ;;  %s12795_s12 = inlined_call_operand.hbm [shape: f32[2,4,128], index: 12, kind: output, shape index: {}]  }
   0x1   :  { %12871 = sst [smem:[#allocation40_spill]] %s12795_s12 }
   0x2   :  { %17 = vsyncpa [#allocation6], 0 }
   0x3   :  { %18 = vsyncpa [#allocation9], 0 }
   0x4   :  { %19 = vsyncpa [#allocation12], 0 }
   0x5   :  { %20 = vsyncpa [#allocation7], 0 }
   0x6   :  { %22 = vsyncpa [#allocation7 + $0x1], 0  ;;  %s10998_s21 = smov 0   ;;  %s11000_s22 = smov 0  }
   0x7   :  { %s11002_s23 = smov 0   ;;  %s11004_s24 = smov 0  }
   0x8 LB: > { %12872 = sst [smem:[#allocation18_spill]] %s10908_s21  ;;  %s11019_s25 = sadd.s32 4294967295, %s10920_s24   ;;  %s10920_s24 = sphi %s11004_s24, %s13104_s24   ;;  %s10916_s23 = sphi %s11002_s23, %s13106_s23   ;;  %s10912_s22 = sphi %s11000_s22, %s13108_s22   ;;  %s10908_s21 = sphi %s10998_s21, %s13107_s21  }
   0x9   : > { %12873 = sst [smem:[#allocation19_spill]] %s10916_s23  ;;  %s7747_s26 = sadd.s32 4294967294, %s10920_s24  }
   0xa   : > { %12874 = sst [smem:[#allocation20_spill]] %s10920_s24  ;;  %s11023_s27 = sadd.s32 1, %s10920_s24  }
   0xb   : > { %12875 = sst [smem:[#allocation21_spill]] %s11023_s27  ;;  %s292_s28 = sadd.s32 1, %s10916_s23 }
   0xc   : > { %s289_s29 = ssub.s32 %s10920_s24, %s11023_s27  ;;  %p302_p0 = scmp.ne.s32.totalorder %s10916_s23, %s10912_s22 }
   0xd   : > { %p290_p1 = scmp.eq.s32.totalorder %s289_s29, 0  ;;  %p303_p2 = scmp.eq.s32.totalorder %s11019_s25, 1 }
   0xe   : > { %p308_p3 = scmp.ne.s32.totalorder %s10912_s22, %s10908_s21  ;;  %p309_p4 = scmp.eq.s32.totalorder %s7747_s26, 1 }
   0xf   : > { %s11034_s30 = scalar_select %p290_p1, %s10916_s23, %s292_s28  }
  0x10   : > { %p11036_p5 = por %p303_p2, %p302_p0  ;;  %p11040_p6 = por %p309_p4, %p308_p3 }
  0x11   : > { %12876 = sst [smem:[#allocation22_spill]] %s11034_s30  ;;  %p7748_p7 = scmp.ge.s32.totalorder %s10920_s24, 1 }
  0x12   : > { %s12877_s13 = scalar_select %p11036_p5, 1, 0 }
  0x13   : > { %s12879_s14 = scalar_select %p11040_p6, 1, 0 }
  0x14   : > { %12878 = sst [smem:[#allocation23_spill]] %s12877_s13  ;;  %p316_p8 = scmp.lt.s32.totalorder %s10920_s24, 3 }
  0x15   : > { %12880 = sst [smem:[#allocation24_spill]] %s12879_s14  ;;  %p12800_p9 = scmp.eq.s32.totalorder %s11019_s25, 0 }
  0x16   : > { %p11047_p10 = pnand %p7748_p7, %p316_p8  ;;  %s10922_s16 = smov [#allocation8]  }
  0x17   : > { %s347_s17 = sshll.u32 %s10922_s16, 4  ;;  %s10923_s19 = smov [#allocation5]   ;;  %s11053_s17 = int_to_ptr.vmem [resolvable:$true] %s347_s17 }
  0x18   : > { %s12881_s15 = scalar_select %p11047_p10, 1, 0 }
  0x19   : > { %p10363_p11 = pneg %p11047_p10  ;;  %s328_s20 = sshll.u32 %s10923_s19, 4  ;;  %s11061_s20 = int_to_ptr.vmem [resolvable:$true] %s328_s20 }
  0x1a   : > { %s10924_s26 = smov [#allocation10]   ;;  %s10734_s23 = scalar_lea.hbm %s12787_s4, 9216 }
  0x1b   : > { %p11057_p12 = pnand %p12800_p9, %p10363_p11  ;;  %s11063_s28 = sshll.u32 %s10924_s26, 4  ;;  %s367_s28 = int_to_ptr.vmem [resolvable:$true] %s11063_s28 }
  0x1c   : > { %p10735_p13 = scmp.ne.s32.totalorder %s12787_s4, %s10734_s23  ;;  %p10741_p3 = scmp.lt.u32.totalorder %s10734_s23, %s12787_s4 }
  0x1d   : > { %p11073_p0 = pneg %p11057_p12 }
  0x1f   : > { %p10737_p1 = pnand %p11073_p0, %p10735_p13 }
  0x21   : > { %p10738_p2 = pneg %p10737_p1 }
  0x23   : > { %p10743_p4 = pnand %p10741_p3, %p10738_p2 }
  0x25   : > { %10746 = shalt.err (!%p10743_p4)
}
  0x26   : > { %s10747_s27 = scalar_lea.vmem %s11053_s17, 9216  ;;  %p10755_p9 = scmp.lt.s32.totalorder %s11053_s17, %s11053_s17 }
  0x27   : > { %p10748_p7 = scmp.ne.s32.totalorder %s11053_s17, %s10747_s27  ;;  %p10756_p6 = scmp.lt.s32.totalorder %s10747_s27, %s10747_s27 }
  0x29   : > { %p10750_p8 = pnand %p10748_p7, %p11073_p0  ;;  %p10757_p13 = por %p10756_p6, %p10755_p9 }
  0x2b   : > { %p10751_p11 = pneg %p10750_p8 }
  0x2d   : > { %p10758_p1 = pnand %p10757_p13, %p10751_p11 }
  0x2f   : > { %10761 = shalt.err (!%p10758_p1)
}
  0x30   : > { %s10925_s30 = smov 64   ;;  %s10926_s23 = smov 4  }
  0x31   : > { %10369 = dma.hbm_to_vmem [thread:$0]  (!%p11057_p12), %s12787_s4, 9216, %s11053_s17, [#allocation9], %s10925_s30, %s10925_s30, %s10926_s23  }
  0x32   : > { %s10762_s27 = scalar_lea.hbm %s12784_s1, 9216 }
  0x33   : > { %p10763_p6 = scmp.ne.s32.totalorder %s12784_s1, %s10762_s27  ;;  %p10769_p3 = scmp.lt.u32.totalorder %s10762_s27, %s12784_s1 }
  0x35   : > { %p10765_p9 = pnand %p10763_p6, %p11073_p0 }
  0x37   : > { %p10766_p2 = pneg %p10765_p9 }
  0x39   : > { %p10771_p4 = pnand %p10769_p3, %p10766_p2 }
  0x3b   : > { %10774 = shalt.err (!%p10771_p4)
}
  0x3c   : > { %s10775_s17 = scalar_lea.vmem %s11061_s20, 9216  ;;  %p10783_p13 = scmp.lt.s32.totalorder %s11061_s20, %s11061_s20 }
  0x3d   : > { %p10776_p7 = scmp.ne.s32.totalorder %s11061_s20, %s10775_s17  ;;  %p10784_p1 = scmp.lt.s32.totalorder %s10775_s17, %s10775_s17 }
  0x3f   : > { %p10778_p8 = pnand %p10776_p7, %p11073_p0  ;;  %p10785_p6 = por %p10784_p1, %p10783_p13 }
  0x41   : > { %p10779_p11 = pneg %p10778_p8 }
  0x43   : > { %p10786_p9 = pnand %p10785_p6, %p10779_p11 }
  0x45   : > { %10789 = shalt.err (!%p10786_p9)
}
  0x46   : > { %10366 = dma.hbm_to_vmem [thread:$0]  (!%p11057_p12), %s12784_s1, 9216, %s11061_s20, [#allocation6], %s10925_s30, %s10925_s30, %s10926_s23  }
  0x47   : > { %s10790_s29 = scalar_lea.hbm %s12790_s7, 9216 }
  0x48   : > { %p10791_p2 = scmp.ne.s32.totalorder %s12790_s7, %s10790_s29  ;;  %p10797_p7 = scmp.lt.u32.totalorder %s10790_s29, %s12790_s7 }
  0x4a   : > { %p10793_p3 = pnand %p10791_p2, %p11073_p0 }
  0x4c   : > { %p10794_p4 = pneg %p10793_p3 }
  0x4e   : > { %p10799_p8 = pnand %p10797_p7, %p10794_p4 }
  0x50   : > { %10802 = shalt.err (!%p10799_p8)
}
  0x51   : > { %s10803_s17 = scalar_lea.vmem %s367_s28, 9216  ;;  %p10811_p6 = scmp.lt.s32.totalorder %s367_s28, %s367_s28 }
  0x52   : > { %p10804_p11 = scmp.ne.s32.totalorder %s367_s28, %s10803_s17  ;;  %p10812_p9 = scmp.lt.s32.totalorder %s10803_s17, %s10803_s17 }
  0x54   : > { %p10806_p13 = pnand %p10804_p11, %p11073_p0  ;;  %p10813_p5 = por %p10812_p9, %p10811_p6 }
  0x56   : > { %p10807_p1 = pneg %p10806_p13 }
  0x58   : > { %p10814_p10 = pnand %p10813_p5, %p10807_p1 }
  0x5a   : > { %10817 = shalt.err (!%p10814_p10)
}
  0x5b   : > { %10372 = dma.hbm_to_vmem [thread:$0]  (!%p11057_p12), %s12790_s7, 9216, %s367_s28, [#allocation9], %s10925_s30, %s10925_s30, %s10926_s23  }
  0x5c   : > { %s10927_s21 = smov [#allocation11]   ;;  %s10818_s16 = scalar_lea.hbm %s12792_s9, 9216 }
  0x5d   : > { %s382_s24 = sshll.u32 %s10927_s21, 4  ;;  %p10819_p5 = scmp.ne.s32.totalorder %s12792_s9, %s10818_s16  ;;  %s383_s24 = int_to_ptr.vmem [resolvable:$true] %s382_s24 }
  0x5e   : > { %p10825_p3 = scmp.lt.u32.totalorder %s10818_s16, %s12792_s9 }
  0x5f   : > { %p10821_p10 = pnand %p10819_p5, %p11073_p0 }
  0x61   : > { %p10822_p2 = pneg %p10821_p10 }
  0x63   : > { %p10827_p4 = pnand %p10825_p3, %p10822_p2 }
  0x65   : > { %10830 = shalt.err (!%p10827_p4)
}
  0x66   : > { %s10831_s28 = scalar_lea.vmem %s383_s24, 9216  ;;  %p10839_p13 = scmp.lt.s32.totalorder %s383_s24, %s383_s24 }
  0x67   : > { %p10832_p7 = scmp.ne.s32.totalorder %s383_s24, %s10831_s28  ;;  %p10840_p1 = scmp.lt.s32.totalorder %s10831_s28, %s10831_s28 }
  0x69   : > { %p10834_p8 = pnand %p10832_p7, %p11073_p0  ;;  %p10841_p6 = por %p10840_p1, %p10839_p13 }
  0x6b   : > { %p10835_p11 = pneg %p10834_p8 }
  0x6d   : > { %p10842_p9 = pnand %p10841_p6, %p10835_p11 }
  0x6f   : > { %10845 = shalt.err (!%p10842_p9)
}
  0x70   : > { %10375 = dma.hbm_to_vmem [thread:$0]  (!%p11057_p12), %s12792_s9, 9216, %s383_s24, [#allocation12], %s10925_s30, %s10925_s30, %s10926_s23  }
  0x71   : > { %p12884_p5 = scmp.ne.s32.totalorder %s12881_s15, 0 }
  0x73   : > { %412 = sbr.rel (%p12884_p5) target bundleno = 2989 (0xbad), region = 68 }
  0x7a   : > { %p12885_p0 = scmp.eq.s32.totalorder %s11019_s25, 0 }
  0x7c   : > { %10891 = dma.done.wait (%p12885_p0), [#allocation6], 9216   ;;  %p12886_p10 = pmov %p12885_p0 }
  0x7d   : > { %p12887_p2 = pmov %p12885_p0 }
  0x7e   : > { %10893 = vsyncadd (%p12886_p10), [#allocation6], 4294958080 }
  0x7f   : > { %10895 = dma.done.wait (%p12887_p2), [#allocation9], 18432   ;;  %p12888_p3 = pmov %p12885_p0 }
  0x80   : > { %p12889_p4 = pmov %p12885_p0 }
  0x81   : > { %10897 = vsyncadd (%p12888_p3), [#allocation9], 4294948864 }
  0x82   : > { %10899 = dma.done.wait (%p12889_p4), [#allocation12], 9216   ;;  %p12890_p12 = pmov %p12885_p0 }
  0x83   : > { %v10928_v0 = vmov 0.0   ;;  %p466_p7 = scmp.lt.s32.totalorder %s11019_s25, 1  ;;  %v10929_v1 = vmov 0.0|0.0   ;;  %v10430_v2 = vld [vmem:[#allocation5 + $0x40] sm:$0xff]   ;;  %v10431_v3 = vld [vmem:[#allocation5 + $0x48] sm:$0xff]   ;;  %v10432_v4 = vld [vmem:[#allocation5 + $0x50] sm:$0xff]  }
  0x84   : > { %10901 = vsyncadd (%p12890_p12), [#allocation12], 4294958080  ;;  %505 = vst [vmem:[#allocation2 + $0x8] sm:$0xff] %v10928_v0  ;;  %9015 = vmatprep.mubr.bf16.mxu0 %v10929_v1  ;;  %8999 = vmatprep.subr.bf16.mxu0 %v10430_v2  ;;  %vm12808_vm0 = vcmask 23552   ;;  %v10433_v5 = vld [vmem:[#allocation5 + $0x58] sm:$0xff]   ;;  %v10434_v12 = vld [vmem:[#allocation5 + $0x60] sm:$0xff]  }
  0x85   : > { %506 = vst [vmem:[#allocation2 + $0x10] sm:$0xff] %v10928_v0  ;;  %504 = vst [vmem:[#allocation2] sm:$0xff] %v10928_v0  ;;  %s467_s14 = scalar_select %p466_p7, %s11019_s25, 1  ;;  %9000 = vmatpush3.bf16.msra.mxu0 %v10430_v2  ;;  %v10435_v21 = vld [vmem:[#allocation5 + $0x68] sm:$0xff]   ;;  %v10436_v26 = vld [vmem:[#allocation5 + $0x70] sm:$0xff]   ;;  %vm10930_vm6 = vmmov 1  }
  0x86   : > { %507 = vst [vmem:[#allocation2 + $0x118] sm:$0xff] %v10928_v0  ;;  %508 = vst [vmem:[#allocation2 + $0x120] sm:$0xff] %v10928_v0  ;;  %9001 = vmatprep.subr.bf16.mxu0 %v10431_v3  ;;  %v10437_v27 = vld [vmem:[#allocation5 + $0x78] sm:$0xff]   ;;  %v10438_v33 = vld [vmem:[#allocation5] sm:$0xff]   ;;  %s13097_s12 = sld [smem:[#allocation23_spill]]  ;;  %s13098_s13 = sld [smem:[#allocation40_spill]] }
  0x87   : > { %509 = vst [vmem:[#allocation2 + $0x128] sm:$0xff] %v10928_v0  ;;  %510 = vst [vmem:[#allocation2 + $0x18] sm:$0xff] %v10928_v0  ;;  %s8465_s15 = sshll.u32 %s467_s14, 8  ;;  %v10439_v47 = vld [vmem:[#allocation5 + $0x8] sm:$0xff]   ;;  %v10440_v50 = vld [vmem:[#allocation5 + $0x10] sm:$0xff]   ;;  %s463_s14 = sand.u32 1, %s10912_s22  }
  0x88   : > { %511 = vst [vmem:[#allocation2 + $0x20] sm:$0xff] %v10928_v0  ;;  %512 = vst [vmem:[#allocation2 + $0x28] sm:$0xff] %v10928_v0  ;;  %s11185_s23 = scalar_lea.vmem %s12783_s0, %s8465_s15  ;;  %v10441_v55 = vld [vmem:[#allocation5 + $0x18] sm:$0xff]   ;;  %v10442_v60 = vld [vmem:[#allocation5 + $0x20] sm:$0xff]   ;;  %s7759_s15 = sshll.u32 %s463_s14, 2 }
  0x89   : > { %513 = vst [vmem:[#allocation2 + $0x30] sm:$0xff] %v10928_v0  ;;  %514 = vst [vmem:[#allocation2 + $0x38] sm:$0xff] %v10928_v0  ;;  %9002 = vmatpush3.bf16.msra.mxu0 %v10431_v3  ;;  %v472_v6 = vld [vmem:[%s11185_s23] sm:$0xff]  ;;  %v473_v7 = vld [vmem:[%s11185_s23 + $0x8] sm:$0xff]  ;;  %s465_s18 = scalar_lea.vmem [#allocation13], %s7759_s15  ;;  %s7634_s16 = scalar_lea.sflag [#allocation7], %s463_s14 }
  0x8a   : > { %515 = vst [vmem:[#allocation2 + $0x40] sm:$0xff] %v10928_v0  ;;  %516 = vst [vmem:[#allocation2 + $0x48] sm:$0xff] %v10928_v0  ;;  %9003 = vmatprep.subr.bf16.mxu0 %v10432_v4  ;;  %v474_v8 = vld [vmem:[%s11185_s23 + $0x10] sm:$0xff]  ;;  %v475_v9 = vld [vmem:[%s11185_s23 + $0x18] sm:$0xff]  ;;  %s7647_s30 = sshll.u32 %s465_s18, 4  ;;  %s12738_s30 = int_to_ptr.vmem [resolvable:$true] %s7647_s30 }
  0x8b   : > { %517 = vst [vmem:[#allocation2 + $0x50] sm:$0xff] %v10928_v0  ;;  %518 = vst [vmem:[#allocation2 + $0x58] sm:$0xff] %v10928_v0  ;;  %v476_v10 = vld [vmem:[%s11185_s23 + $0x20] sm:$0xff]  ;;  %v477_v11 = vld [vmem:[%s11185_s23 + $0x28] sm:$0xff]  ;;  %s10846_s19 = scalar_lea.vmem %s12738_s30, 64 }
  0x8c   : > { %519 = vst [vmem:[#allocation2 + $0x60] sm:$0xff] %v10928_v0  ;;  %520 = vst [vmem:[#allocation2 + $0x68] sm:$0xff] %v10928_v0  ;;  %v478_v13 = vld [vmem:[%s11185_s23 + $0x30] sm:$0xff]  ;;  %v479_v14 = vld [vmem:[%s11185_s23 + $0x38] sm:$0xff]  ;;  %p10847_p8 = scmp.ne.s32.totalorder %s12738_s30, %s10846_s19  ;;  %p13099_p11 = scmp.ne.s32.totalorder %s13097_s12, 0 }
  0x8d   : > { %521 = vst [vmem:[#allocation2 + $0x70] sm:$0xff] %v10928_v0  ;;  %522 = vst [vmem:[#allocation2 + $0x78] sm:$0xff] %v10928_v0  ;;  %9004 = vmatpush3.bf16.msra.mxu0 %v10432_v4  ;;  %v480_v15 = vld [vmem:[%s11185_s23 + $0x40] sm:$0xff]  ;;  %v481_v16 = vld [vmem:[%s11185_s23 + $0x48] sm:$0xff] }
  0x8e   : > { %523 = vst [vmem:[#allocation2 + $0x80] sm:$0xff] %v10928_v0  ;;  %524 = vst [vmem:[#allocation2 + $0x88] sm:$0xff] %v10928_v0  ;;  %9005 = vmatprep.subr.bf16.mxu0 %v10433_v5  ;;  %v482_v17 = vld [vmem:[%s11185_s23 + $0x50] sm:$0xff]  ;;  %v483_v18 = vld [vmem:[%s11185_s23 + $0x58] sm:$0xff]  ;;  %p10848_p13 = pnand %p10847_p8, %p13099_p11 }
  0x8f   : > { %525 = vst [vmem:[#allocation2 + $0x90] sm:$0xff] %v10928_v0  ;;  %526 = vst [vmem:[#allocation2 + $0x98] sm:$0xff] %v10928_v0  ;;  %v484_v19 = vld [vmem:[%s11185_s23 + $0x60] sm:$0xff]  ;;  %v485_v20 = vld [vmem:[%s11185_s23 + $0x68] sm:$0xff] }
  0x90   : > { %527 = vst [vmem:[#allocation2 + $0xa0] sm:$0xff] %v10928_v0  ;;  %528 = vst [vmem:[#allocation2 + $0xa8] sm:$0xff] %v10928_v0  ;;  %v486_v22 = vld [vmem:[%s11185_s23 + $0x70] sm:$0xff]  ;;  %v487_v23 = vld [vmem:[%s11185_s23 + $0x78] sm:$0xff]  ;;  %p10849_p1 = pneg %p10848_p13 }
  0x91   : > { %529 = vst [vmem:[#allocation2 + $0xb0] sm:$0xff] %v10928_v0  ;;  %530 = vst [vmem:[#allocation2 + $0xb8] sm:$0xff] %v10928_v0  ;;  %9006 = vmatpush3.bf16.msra.mxu0 %v10433_v5  ;;  %v488_v24 = vld [vmem:[%s11185_s23 + $0x80] sm:$0xff]  ;;  %v489_v25 = vld [vmem:[%s11185_s23 + $0x88] sm:$0xff] }
  0x92   : > { %531 = vst [vmem:[#allocation2 + $0xc0] sm:$0xff] %v10928_v0  ;;  %532 = vst [vmem:[#allocation2 + $0xc8] sm:$0xff] %v10928_v0  ;;  %9007 = vmatprep.subr.bf16.mxu0 %v10434_v12  ;;  %v490_v28 = vld [vmem:[%s11185_s23 + $0x90] sm:$0xff]  ;;  %v491_v29 = vld [vmem:[%s11185_s23 + $0x98] sm:$0xff] }
  0x93   : > { %533 = vst [vmem:[#allocation2 + $0xd0] sm:$0xff] %v10928_v0  ;;  %534 = vst [vmem:[#allocation2 + $0xd8] sm:$0xff] %v10928_v0  ;;  %v492_v30 = vld [vmem:[%s11185_s23 + $0xa0] sm:$0xff]  ;;  %v493_v31 = vld [vmem:[%s11185_s23 + $0xa8] sm:$0xff] }
  0x94   : > { %535 = vst [vmem:[#allocation2 + $0xe0] sm:$0xff] %v10928_v0  ;;  %536 = vst [vmem:[#allocation2 + $0xe8] sm:$0xff] %v10928_v0  ;;  %v494_v34 = vld [vmem:[%s11185_s23 + $0xb0] sm:$0xff]  ;;  %v495_v35 = vld [vmem:[%s11185_s23 + $0xb8] sm:$0xff] }
  0x95   : > { %537 = vst [vmem:[#allocation2 + $0xf0] sm:$0xff] %v10928_v0  ;;  %538 = vst [vmem:[#allocation2 + $0xf8] sm:$0xff] %v10928_v0  ;;  %9008 = vmatpush3.bf16.msra.mxu0 %v10434_v12  ;;  %v496_v39 = vld [vmem:[%s11185_s23 + $0xc0] sm:$0xff]  ;;  %v497_v40 = vld [vmem:[%s11185_s23 + $0xc8] sm:$0xff] }
  0x96   : > { %539 = vst [vmem:[#allocation2 + $0x100] sm:$0xff] %v10928_v0  ;;  %540 = vst [vmem:[#allocation2 + $0x108] sm:$0xff] %v10928_v0  ;;  %9009 = vmatprep.subr.bf16.mxu0 %v10435_v21  ;;  %v498_v41 = vld [vmem:[%s11185_s23 + $0xd0] sm:$0xff]  ;;  %v499_v43 = vld [vmem:[%s11185_s23 + $0xd8] sm:$0xff] }
  0x97   : > { %541 = vst [vmem:[#allocation2 + $0x110] sm:$0xff] %v10928_v0  ;;  %3979 = vst [vmem:[#allocation3] sm:$0xff] %v10928_v0  ;;  %v500_v44 = vld [vmem:[%s11185_s23 + $0xe0] sm:$0xff]  ;;  %v501_v45 = vld [vmem:[%s11185_s23 + $0xe8] sm:$0xff] }
  0x98   : > { %3980 = vst [vmem:[#allocation3 + $0x8] sm:$0xff] %v10928_v0  ;;  %3981 = vst [vmem:[#allocation3 + $0x50] sm:$0xff] %v10928_v0  ;;  %v10443_v63 = vld [vmem:[#allocation5 + $0x28] sm:$0xff]   ;;  %v10444_v4 = vld [vmem:[#allocation5 + $0x30] sm:$0xff]  }
  0x99   : > { %3982 = vst [vmem:[#allocation3 + $0x58] sm:$0xff] %v10928_v0  ;;  %5524 = vst [vmem:[#allocation4] sm:$0xff] %v10928_v0  ;;  %9010 = vmatpush3.bf16.msra.mxu0 %v10435_v21  ;;  %v11247_v12 = vld [vmem:[#allocation5 + $0x80] sm:$0xff]  }
  0x9a   : > { %5525 = vst [vmem:[#allocation4 + $0x18] sm:$0xff] %v10928_v0  ;;  %543 = vst.msk [vmem:[#allocation2 + $0x18] sm:$0xff] %vm12808_vm0, %v472_v6  ;;  %9011 = vmatprep.subr.bf16.mxu0 %v10436_v26 }
  0x9b   : > { %544 = vst.msk [vmem:[#allocation2 + $0x20] sm:$0xff] %vm12808_vm0, %v473_v7  ;;  %545 = vst.msk [vmem:[#allocation2 + $0x28] sm:$0xff] %vm12808_vm0, %v474_v8  ;;  %v10445_v7 = vld [vmem:[#allocation5 + $0x38] sm:$0xff]  }
  0x9c   : > { %546 = vst.msk [vmem:[#allocation2 + $0x30] sm:$0xff] %vm12808_vm0, %v475_v9  ;;  %547 = vst.msk [vmem:[#allocation2 + $0x38] sm:$0xff] %vm12808_vm0, %v476_v10 }
  0x9d   : > { %548 = vst.msk [vmem:[#allocation2 + $0x40] sm:$0xff] %vm12808_vm0, %v477_v11  ;;  %549 = vst.msk [vmem:[#allocation2 + $0x48] sm:$0xff] %vm12808_vm0, %v478_v13  ;;  %9012 = vmatpush3.bf16.msra.mxu0 %v10436_v26 }
  0x9e   : > { %550 = vst.msk [vmem:[#allocation2 + $0x50] sm:$0xff] %vm12808_vm0, %v479_v14  ;;  %551 = vst.msk [vmem:[#allocation2 + $0x58] sm:$0xff] %vm12808_vm0, %v480_v15  ;;  %9013 = vmatprep.subr.bf16.mxu0 %v10437_v27  ;;  %v575_v15 = vlaneseq }
  0x9f   : > { %552 = vst.msk [vmem:[#allocation2 + $0x60] sm:$0xff] %vm12808_vm0, %v481_v16  ;;  %553 = vst.msk [vmem:[#allocation2 + $0x68] sm:$0xff] %vm12808_vm0, %v482_v17 }
  0xa0   : > { %554 = vst.msk [vmem:[#allocation2 + $0x70] sm:$0xff] %vm12808_vm0, %v483_v18  ;;  %555 = vst.msk [vmem:[#allocation2 + $0x78] sm:$0xff] %vm12808_vm0, %v484_v19 }
  0xa1   : > { %556 = vst.msk [vmem:[#allocation2 + $0x80] sm:$0xff] %vm12808_vm0, %v485_v20  ;;  %557 = vst.msk [vmem:[#allocation2 + $0x88] sm:$0xff] %vm12808_vm0, %v486_v22  ;;  %v802_v32 = vld [vmem:[#allocation2 + $0x18] sm:$0xff]  ;;  %9014 = vmatpush3.bf16.msra.mxu0 %v10437_v27  ;;  %v11250_v20 = vshrl.u32 %v575_v15, 7 }
  0xa2   : > { %558 = vst.msk [vmem:[#allocation2 + $0x90] sm:$0xff] %vm12808_vm0, %v487_v23  ;;  %559 = vst.msk [vmem:[#allocation2 + $0x98] sm:$0xff] %vm12808_vm0, %v488_v24  ;;  %v803_v36 = vld [vmem:[#allocation2 + $0x20] sm:$0xff]  ;;  %v804_v37 = vld [vmem:[#allocation2 + $0x28] sm:$0xff]  ;;  %9047 = vmatprep.subr.bf16.mxu0 %v10438_v33 }
  0xa3   : > { %560 = vst.msk [vmem:[#allocation2 + $0xa0] sm:$0xff] %vm12808_vm0, %v489_v25  ;;  %561 = vst.msk [vmem:[#allocation2 + $0xa8] sm:$0xff] %vm12808_vm0, %v490_v28  ;;  %v805_v38 = vld [vmem:[#allocation2 + $0x30] sm:$0xff]  ;;  %v833_v42 = vpack.c.bf16 %v803_v36, %v802_v32  ;;  %v806_v48 = vld [vmem:[#allocation2 + $0x38] sm:$0xff]  ;;  %v11253_v23 = vadd.s32 16, %v11250_v20  ;;  %v11256_v24 = vadd.s32 32, %v11250_v20 }
  0xa4   : > { %562 = vst.msk [vmem:[#allocation2 + $0xb0] sm:$0xff] %vm12808_vm0, %v491_v29  ;;  %563 = vst.msk [vmem:[#allocation2 + $0xb8] sm:$0xff] %vm12808_vm0, %v492_v30  ;;  %v834_v46 = vpack.c.bf16 %v805_v38, %v804_v37  ;;  %v807_v49 = vld [vmem:[#allocation2 + $0x40] sm:$0xff]  ;;  %v808_v51 = vld [vmem:[#allocation2 + $0x48] sm:$0xff]  ;;  %v608_v27 = vand.u32 15, %v11250_v20  ;;  %v584_v32 = vadd.s32 64, %v11250_v20 }
  0xa5   : > { %564 = vst.msk [vmem:[#allocation2 + $0xc0] sm:$0xff] %vm12808_vm0, %v493_v31  ;;  %565 = vst.msk [vmem:[#allocation2 + $0xc8] sm:$0xff] %vm12808_vm0, %v494_v34  ;;  %9016 = vmatmul.mubr.bf16.vlgmr.msra.gmra.mrb[0].mxu0 %v833_v42  ;;  %v809_v52 = vld [vmem:[#allocation2 + $0x50] sm:$0xff]  ;;  %v835_v53 = vpack.c.bf16 %v807_v49, %v806_v48  ;;  %v810_v56 = vld [vmem:[#allocation2 + $0x58] sm:$0xff]  ;;  %v610_v30 = vand.u32 15, %v11253_v23  ;;  %v11261_v31 = vadd.s32 48, %v11250_v20 }
  0xa6   : > { %566 = vst.msk [vmem:[#allocation2 + $0xd0] sm:$0xff] %vm12808_vm0, %v495_v35  ;;  %567 = vst.msk [vmem:[#allocation2 + $0xd8] sm:$0xff] %vm12808_vm0, %v496_v39  ;;  %9048 = vmatpush3.bf16.msra.mxu0 %v10438_v33  ;;  %9019 = vmatprep.mubr.bf16.mxu0 %v834_v46  ;;  %v836_v54 = vpack.c.bf16 %v809_v52, %v808_v51  ;;  %v811_v57 = vld [vmem:[#allocation2 + $0x60] sm:$0xff]  ;;  %v812_v58 = vld [vmem:[#allocation2 + $0x68] sm:$0xff]  ;;  %v612_v34 = vand.u32 15, %v11256_v24  ;;  %v586_v35 = vadd.s32 80, %v11250_v20 }
  0xa7   : > { %568 = vst.msk [vmem:[#allocation2 + $0xe0] sm:$0xff] %vm12808_vm0, %v497_v40  ;;  %569 = vst.msk [vmem:[#allocation2 + $0xe8] sm:$0xff] %vm12808_vm0, %v498_v41  ;;  %9049 = vmatprep.subr.bf16.mxu0 %v10439_v47  ;;  %v813_v59 = vld [vmem:[#allocation2 + $0x70] sm:$0xff]  ;;  %v837_v61 = vpack.c.bf16 %v811_v57, %v810_v56  ;;  %v814_v0 = vld [vmem:[#allocation2 + $0x78] sm:$0xff]  ;;  %vm11266_vm1 = vcmp.ge.s32.totalorder %v608_v27, 1  ;;  %v588_v38 = vadd.s32 96, %v11250_v20 }
  0xa8   : > { %570 = vst.msk [vmem:[#allocation2 + $0xf0] sm:$0xff] %vm12808_vm0, %v499_v43  ;;  %571 = vst.msk [vmem:[#allocation2 + $0xf8] sm:$0xff] %vm12808_vm0, %v500_v44  ;;  %v838_v62 = vpack.c.bf16 %v813_v59, %v812_v58  ;;  %v815_v1 = vld [vmem:[#allocation2 + $0x80] sm:$0xff]  ;;  %v816_v2 = vld [vmem:[#allocation2 + $0x88] sm:$0xff]  ;;  %v590_v39 = vadd.s32 112, %v11250_v20  ;;  %vm11272_vm2 = vcmp.ge.s32.totalorder %v610_v30, 1 }
  0xa9   : > { %572 = vst.msk [vmem:[#allocation2 + $0x100] sm:$0xff] %vm12808_vm0, %v501_v45  ;;  %v817_v3 = vld [vmem:[#allocation2 + $0x90] sm:$0xff]  ;;  %v839_v5 = vpack.c.bf16 %v815_v1, %v814_v0  ;;  %v818_v8 = vld [vmem:[#allocation2 + $0x98] sm:$0xff]  ;;  %12891 = vst [vmem:[#allocation25_spill] sm:$0xff] %v11250_v20  ;;  %v614_v41 = vand.u32 15, %v11261_v31  ;;  %v616_v42 = vand.u32 15, %v584_v32 }
  0xaa   : > { %9050 = vmatpush3.bf16.msra.mxu0 %v10439_v47  ;;  %v840_v6 = vpack.c.bf16 %v817_v3, %v816_v2  ;;  %v819_v9 = vld [vmem:[#allocation2 + $0xa0] sm:$0xff]  ;;  %v820_v10 = vld [vmem:[#allocation2 + $0xa8] sm:$0xff]  ;;  %12892 = vst [vmem:[#allocation26_spill] sm:$0xff] %v11253_v23  ;;  %12893 = vst [vmem:[#allocation27_spill] sm:$0xff] %v11256_v24  ;;  %vm11279_vm3 = vcmp.ge.s32.totalorder %v612_v34, 1  ;;  %v592_v48 = vadd.s32 128, %v11250_v20 }
  0xab   : > { %9051 = vmatprep.subr.bf16.mxu0 %v10440_v50  ;;  %v821_v11 = vld [vmem:[#allocation2 + $0xb0] sm:$0xff]  ;;  %v841_v13 = vpack.c.bf16 %v819_v9, %v818_v8  ;;  %v822_v16 = vld [vmem:[#allocation2 + $0xb8] sm:$0xff]  ;;  %12894 = vst [vmem:[#allocation28_spill] sm:$0xff] %v11261_v31  ;;  %v704_v45 = vld [vmem:[#allocation2 + $0x7] sm:$0xff]  ;;  %v11285_v49 = vadd.s32 144, %v11250_v20  ;;  %v11288_v51 = vadd.s32 160, %v11250_v20 }
  0xac   : > { %v842_v14 = vpack.c.bf16 %v821_v11, %v820_v10  ;;  %v823_v17 = vld [vmem:[#allocation2 + $0xc0] sm:$0xff]  ;;  %v824_v18 = vld [vmem:[#allocation2 + $0xc8] sm:$0xff]  ;;  %v502_v43 = vld [vmem:[%s11185_s23 + $0xf0] sm:$0xff]  ;;  %vm11290_vm4 = vcmp.ge.s32.totalorder %v614_v41, 1  ;;  %vm11297_vm5 = vcmp.ge.s32.totalorder %v616_v42, 1  ;;  %v620_v57 = vand.u32 15, %v588_v38 }
  0xad   : > { %9020 = vmatmul.mubr.bf16.gmra.mrb[4].mxu0 %v835_v53  ;;  %v825_v19 = vld [vmem:[#allocation2 + $0xd0] sm:$0xff]  ;;  %v843_v21 = vpack.c.bf16 %v823_v17, %v822_v16  ;;  %v826_v25 = vld [vmem:[#allocation2 + $0xd8] sm:$0xff]  ;;  %573 = vst.msk [vmem:[#allocation2 + $0x108] sm:$0xff] %vm12808_vm0, %v502_v43  ;;  %v11295_v53 = vadd.s32 176, %v11250_v20  ;;  %vm11304_vm7 = vmpackc.low %vm10930_vm6, %vm11266_vm1  ;;  %v628_v0 = vand.u32 15, %v11288_v51  ;;  %v11319_v2 = vadd.s32 192, %v11250_v20 }
  0xae   : > { %9023 = vmatprep.mubr.bf16.mxu0 %v836_v54  ;;  %9052 = vmatpush3.bf16.msra.mxu0 %v10440_v50  ;;  %v844_v22 = vpack.c.bf16 %v825_v19, %v824_v18  ;;  %v827_v26 = vld [vmem:[#allocation2 + $0xe0] sm:$0xff]  ;;  %v828_v28 = vld [vmem:[#allocation2 + $0xe8] sm:$0xff]  ;;  %vm11311_vm8 = vmpackc.low %vm10930_vm6, %vm11272_vm2  ;;  %v11329_v8 = vadd.s32 208, %v11250_v20  ;;  %v11332_v9 = vadd.s32 224, %v11250_v20  ;;  %vm11340_vm11 = vcmp.ge.s32.totalorder %v620_v57, 1 }
  0xaf   : > { %9053 = vmatprep.subr.bf16.mxu0 %v10441_v55  ;;  %v829_v29 = vld [vmem:[#allocation2 + $0xf0] sm:$0xff]  ;;  %v845_v33 = vpack.c.bf16 %v827_v26, %v826_v25  ;;  %v830_v44 = vld [vmem:[#allocation2 + $0xf8] sm:$0xff]  ;;  %v630_v1 = vand.u32 15, %v11295_v53  ;;  %vm11324_vm9 = vmpackc.low %vm10930_vm6, %vm11279_vm3  ;;  %v11366_v26 = vadd.s32 240, %v11250_v20  ;;  %v632_v47 = vand.u32 15, %v11319_v2 }
  0xb0   : > { %v846_v36 = vpack.c.bf16 %v829_v29, %v828_v28  ;;  %v705_v46 = vld [vmem:[#allocation2 + $0xf] sm:$0xff]  ;;  %v831_v50 = vld [vmem:[#allocation2 + $0x100] sm:$0xff]  ;;  %v706_v3 = vld [vmem:[#allocation2 + $0x17] sm:$0xff]  ;;  %v636_v51 = vand.u32 15, %v11332_v9  ;;  %v12939_v2 = vmov 0  ;;  %v12951_v27 = vmov 0 }
  0xb1   : > { %v847_v56 = vpack.c.bf16 %v831_v50, %v830_v44  ;;  %v7779_v59 = vpack.c.bf16 %v705_v46, %v704_v45  ;;  %vm11351_vm12 = vmpackc.low %vm10930_vm6, %vm11290_vm4  ;;  %v710_v18 = vld [vmem:[#allocation2 + $0x37] sm:$0xff]  ;;  %v711_v19 = vld [vmem:[#allocation2 + $0x3f] sm:$0xff]  ;;  %vm11411_vm4 = vcmp.ge.s32.totalorder %v628_v0, 1  ;;  %v12932_v45 = vmov 0 }
  0xb2   : > { %9054 = vmatpush3.bf16.msra.mxu0 %v10441_v55  ;;  %v618_v55 = vand.u32 15, %v586_v35  ;;  %vm11358_vm13 = vmpackc.low %vm10930_vm6, %vm11297_vm5  ;;  %v10448_v25 = vld [vmem:[#allocation5 + $0x90] sm:$0xff]   ;;  %v11380_v29 = vpack.c.bf16 %v711_v19, %v710_v18  ;;  %v10449_v30 = vld [vmem:[#allocation5 + $0x98] sm:$0xff]   ;;  %v12934_v46 = vmov 0  ;;  %v634_v50 = vand.u32 15, %v11329_v8 }
  0xb3   : > { %9055 = vmatprep.subr.bf16.mxu0 %v10442_v60  ;;  %vm11394_vm2 = vmpackc.low %vm10930_vm6, %vm11340_vm11  ;;  %v714_v34 = vld [vmem:[#allocation2 + $0x57] sm:$0xff]  ;;  %v715_v35 = vld [vmem:[#allocation2 + $0x5f] sm:$0xff]  ;;  %v638_v52 = vand.u32 15, %v11366_v26  ;;  %vm11449_vm11 = vcmp.ge.s32.totalorder %v630_v1, 1  ;;  %v12943_v1 = vmov 0  ;;  %v12947_v18 = vmov 0 }
  0xb4   : > { %vm11336_vm10 = vcmp.ge.s32.totalorder %v618_v55, 1  ;;  %v717_v37 = vld [vmem:[#allocation2 + $0x6f] sm:$0xff]  ;;  %v11415_v42 = vpack.c.bf16 %v715_v35, %v714_v34  ;;  %v10451_v43 = vld [vmem:[#allocation5 + $0xa8] sm:$0xff]   ;;  %v720_v54 = vld [vmem:[#allocation2 + $0x87] sm:$0xff]  ;;  %v11515_v28 = vadd.s32 40, %v11250_v20  ;;  %v589_v19 = vadd.s32 104, %v11250_v20 }
  0xb5   : > { %9024 = vmatmul.mubr.bf16.gmra.mrb[8].mxu0 %v837_v61  ;;  %v624_v61 = vand.u32 15, %v592_v48  ;;  %vm11387_vm1 = vmpackc.low %vm10930_vm6, %vm11336_vm10  ;;  %v10450_v38 = vld [vmem:[#allocation5 + $0xa0] sm:$0xff]   ;;  %v731_v40 = vld [vmem:[#allocation2 + $0xdf] sm:$0xff]  ;;  %v597_v34 = vadd.s32 168, %v11250_v20  ;;  %v601_v31 = vadd.s32 200, %v11250_v20  ;;  %v605_v23 = vadd.s32 232, %v11250_v20 }
  0xb6   : > { %9027 = vmatprep.mubr.bf16.mxu0 %v838_v62  ;;  %9056 = vmatpush3.bf16.msra.mxu0 %v10442_v60  ;;  %v622_v60 = vand.u32 15, %v590_v39  ;;  %v11402_v39 = vadd.s32 8, %v11250_v20  ;;  %v718_v48 = vld [vmem:[#allocation2 + $0x77] sm:$0xff]  ;;  %v721_v55 = vld [vmem:[#allocation2 + $0x8f] sm:$0xff]  ;;  %vm11471_vm0 = vmpackc.low %vm10930_vm6, %vm11411_vm4  ;;  %12953 = vst [vmem:[#allocation31_spill] sm:$0xff] %v11515_v28 }
  0xb7   : > { %9057 = vmatprep.subr.bf16.mxu0 %v10443_v63  ;;  %vm11376_vm15 = vcmp.ge.s32.totalorder %v624_v61, 1  ;;  %v11455_v0 = vpack.c.bf16 %v721_v55, %v720_v54  ;;  %v12944_v1 = vsel %vm11471_vm0, 4294967295, %v12943_v1  ;;  %v11479_v9 = vld [vmem:[#allocation5 + $0xc0] sm:$0xff]   ;;  %vm11495_vm4 = vmpackc.low %vm10930_vm6, %vm11449_vm11  ;;  %v732_v41 = vld [vmem:[#allocation2 + $0xe7] sm:$0xff]  ;;  %v12963_v54 = vmov 0 }
  0xb8   : > { %vm11372_vm14 = vcmp.ge.s32.totalorder %v622_v60, 1  ;;  %12927 = vst [vmem:[#allocation29_spill] sm:$0xff] %v11402_v39  ;;  %vm11429_vm10 = vmpackc.low %vm10930_vm6, %vm11376_vm15  ;;  %v609_v57 = vand.u32 15, %v11402_v39  ;;  %vm11464_vm15 = vcmp.ge.s32.totalorder %v632_v47, 1  ;;  %v12948_v18 = vsel %vm11495_vm4, 4294967295, %v12947_v18  ;;  %v729_v26 = vld [vmem:[#allocation2 + $0xcf] sm:$0xff] }
  0xb9   : > { %vm11422_vm5 = vmpackc.low %vm10930_vm6, %vm11372_vm14  ;;  %v12935_v46 = vsel %vm11429_vm10, 4294967295, %v12934_v46  ;;  %v12959_v47 = vmov 0  ;;  %v734_v60 = vld [vmem:[#allocation2 + $0xf7] sm:$0xff]  ;;  %v1283_v53 = vld [vmem:[#allocation2 + $0x9] sm:$0xff] }
  0xba   : > { %9058 = vmatpush3.bf16.msra.mxu0 %v10443_v63  ;;  %v626_v63 = vand.u32 15, %v11285_v49  ;;  %v12933_v45 = vsel %vm11422_vm5, 4294967295, %v12932_v45  ;;  %v719_v49 = vld [vmem:[#allocation2 + $0x7f] sm:$0xff]  ;;  %vm11510_vm11 = vmpackc.low %vm10930_vm6, %vm11464_vm15  ;;  %v10461_v39 = vld [vmem:[#allocation5 + $0xf8] sm:$0xff]  }
  0xbb   : > { %9059 = vmatprep.subr.bf16.mxu0 %v10444_v4  ;;  %v11453_v61 = vpack.c.bf16 %v719_v49, %v718_v48  ;;  %v12952_v27 = vsel %vm11510_vm11, 4294967295, %v12951_v27  ;;  %v613_v48 = vand.u32 15, %v11515_v28  ;;  %v10459_v28 = vld [vmem:[#allocation5 + $0xe8] sm:$0xff]   ;;  %v2612_v58 = vld [vmem:[#allocation2 + $0x6f] sm:$0xff] }
  0xbc   : > { %vm11407_vm3 = vcmp.ge.s32.totalorder %v626_v63, 1  ;;  %v10453_v63 = vld [vmem:[#allocation5 + $0xb8] sm:$0xff]   ;;  %v2613_v62 = vld [vmem:[#allocation2 + $0x77] sm:$0xff]  ;;  %v2618_v17 = vld [vmem:[#allocation2 + $0x9f] sm:$0xff] }
  0xbd   : > { %9028 = vmatmul.mubr.bf16.gmra.mrb[12].mxu0 %v839_v5  ;;  %v708_v5 = vld [vmem:[#allocation2 + $0x27] sm:$0xff]  ;;  %vm11460_vm14 = vmpackc.low %vm10930_vm6, %vm11407_vm3  ;;  %vm11484_vm3 = vcmp.ge.s32.totalorder %v634_v50, 1  ;;  %v593_v50 = vadd.s32 136, %v11250_v20  ;;  %v2617_v16 = vld [vmem:[#allocation2 + $0x97] sm:$0xff] }
  0xbe   : > { %9031 = vmatprep.mubr.bf16.mxu0 %v840_v6  ;;  %9060 = vmatpush3.bf16.msra.mxu0 %v10444_v4  ;;  %v707_v4 = vld [vmem:[#allocation2 + $0x1f] sm:$0xff]  ;;  %v709_v6 = vld [vmem:[#allocation2 + $0x2f] sm:$0xff]  ;;  %v12940_v2 = vsel %vm11460_vm14, 4294967295, %v12939_v2  ;;  %vm11534_vm15 = vmpackc.low %vm10930_vm6, %vm11484_vm3  ;;  %vm11553_vm3 = vcmp.le.s32.totalorder %v609_v57, 14 }
  0xbf   : > { %9061 = vmatprep.subr.bf16.mxu0 %v10445_v7  ;;  %v11346_v15 = vpack.c.bf16 %v709_v6, %v708_v5  ;;  %v724_v5 = vld [vmem:[#allocation2 + $0xa7] sm:$0xff]  ;;  %v725_v6 = vld [vmem:[#allocation2 + $0xaf] sm:$0xff]  ;;  %v503_v57 = vld [vmem:[%s11185_s23 + $0xf8] sm:$0xff]  ;;  %s8462_s23 = sshll.u32 %s11019_s25, 6  ;;  %s10932_s25 = smov [#allocation13]  }
  0xc0   : > { %s12743_s29 = scalar_lea.hbm %s13098_s13, %s8462_s23  ;;  %s10850_s26 = sshll.u32 %s10932_s25, 4  ;;  %s10851_s26 = int_to_ptr.vmem [resolvable:$false] %s10850_s26 }
  0xc1   : > { %s10852_s27 = scalar_lea.vmem %s10851_s26, 128  ;;  %p10853_p6 = scmp.lt.s32.totalorder %s12738_s30, %s10851_s26 }
  0xc2   : > { %9062 = vmatpush3.bf16.msra.mxu0 %v10445_v7  ;;  %v2614_v7 = vld [vmem:[#allocation2 + $0x7f] sm:$0xff]  ;;  %p10854_p9 = scmp.lt.s32.totalorder %s10852_s27, %s10846_s19 }
  0xc3   : > { %9095 = vmatprep.subr.bf16.mxu0 %v11247_v12 }
  0xc4   : > { %p10855_p5 = por %p10854_p9, %p10853_p6 }
  0xc5   : > { %9032 = vmatmul.mubr.bf16.gmra.mrb[16].mxu0 %v841_v13  ;;  %v11344_v13 = vpack.c.bf16 %v707_v4, %v706_v3  ;;  %v722_v3 = vld [vmem:[#allocation2 + $0x97] sm:$0xff]  ;;  %v723_v4 = vld [vmem:[#allocation2 + $0x9f] sm:$0xff] }
  0xc6   : > { %9035 = vmatprep.mubr.bf16.mxu0 %v842_v14  ;;  %v10447_v14 = vld [vmem:[#allocation5 + $0x88] sm:$0xff]   ;;  %v11488_v11 = vpack.c.bf16 %v723_v4, %v722_v3  ;;  %v587_v3 = vadd.s32 88, %v11250_v20  ;;  %p10856_p0 = pnand %p10855_p5, %p10849_p1 }
  0xc7   : > { %v1284_v4 = vld [vmem:[#allocation2 + $0x11] sm:$0xff] }
  0xc8   : > { %v7835_v10 = vpack.c.bf16 %v1284_v4, %v1283_v53  ;;  %v12978_v53 = vmov 0  ;;  %v1291_v4 = vld [vmem:[#allocation2 + $0x49] sm:$0xff] }
  0xcd   : > { %9036 = vmatmul.mubr.bf16.gmra.mrb[20].mxu0 %v843_v21  ;;  %v712_v21 = vld [vmem:[#allocation2 + $0x47] sm:$0xff] }
  0xce   : > { %9039 = vmatprep.mubr.bf16.mxu0 %v844_v22  ;;  %v713_v22 = vld [vmem:[#allocation2 + $0x4f] sm:$0xff] }
  0xcf   : > { %v11382_v32 = vpack.c.bf16 %v713_v22, %v712_v21  ;;  %v726_v21 = vld [vmem:[#allocation2 + $0xb7] sm:$0xff]  ;;  %v727_v22 = vld [vmem:[#allocation2 + $0xbf] sm:$0xff] }
  0xd0   : > { %v11527_v35 = vpack.c.bf16 %v727_v22, %v726_v21  ;;  %v1285_v21 = vld [vmem:[#allocation2 + $0x19] sm:$0xff]  ;;  %v1286_v22 = vld [vmem:[#allocation2 + $0x21] sm:$0xff] }
  0xd1   : > { %v11619_v55 = vpack.c.bf16 %v1286_v22, %v1285_v21  ;;  %v625_v22 = vand.u32 15, %v593_v50  ;;  %v1295_v50 = vld [vmem:[#allocation2 + $0x69] sm:$0xff] }
  0xd5   : > { %9040 = vmatmul.mubr.bf16.gmra.mrb[24].mxu0 %v845_v33  ;;  %v12925_v33 = vmov 0 }
  0xd6   : > { %9043 = vmatprep.mubr.bf16.mxu0 %v846_v36  ;;  %v12926_v33 = vsel %vm11394_vm2, 4294967295, %v12925_v33  ;;  %v716_v36 = vld [vmem:[#allocation2 + $0x67] sm:$0xff] }
  0xd7   : > { %v11417_v44 = vpack.c.bf16 %v717_v37, %v716_v36  ;;  %v12957_v37 = vmov 0 }
  0xd8   : > { %v12958_v37 = vsel %vm11534_vm15, 4294967295, %v12957_v37 }
  0xdd   : > { %9044 = vmatmul.mubr.bf16.gmra.mrb[28].mxu0 %v847_v56  ;;  %v10452_v56 = vld [vmem:[#allocation5 + $0xb0] sm:$0xff]  }
  0xde   : > { %9063 = vmatprep.mubr.msk.bf16.mxu0 %vm11304_vm7, %v7779_v59  ;;  %v11442_v59 = vadd.s32 24, %v11250_v20 }
  0xe0   : > { %12936 = vst [vmem:[#allocation30_spill] sm:$0xff] %v11442_v59  ;;  %v611_v8 = vand.u32 15, %v11442_v59  ;;  %v603_v59 = vadd.s32 216, %v11250_v20 }
  0xe5   : > { %9064 = vmatmul.mubr.msk.bf16.vlgmr.msra.gmra.mrb[0].mxu0 %vm11311_vm8, %v11344_v13 }
  0xe6   : > { %9096 = vmatpush3.bf16.msra.mxu0 %v11247_v12  ;;  %9067 = vmatprep.mubr.msk.bf16.mxu0 %vm11324_vm9, %v11346_v15  ;;  %v2621_v12 = vld [vmem:[#allocation2 + $0xb7] sm:$0xff] }
  0xe7   : > { %9097 = vmatprep.subr.bf16.mxu0 %v10447_v14 }
  0xea   : > { %9098 = vmatpush3.bf16.msra.mxu0 %v10447_v14  ;;  %v11490_v14 = vpack.c.bf16 %v725_v6, %v724_v5 }
  0xeb   : > { %9099 = vmatprep.subr.bf16.mxu0 %v10448_v25 }
  0xed   : > { %9068 = vmatmul.mubr.msk.bf16.gmra.mrb[4].mxu0 %vm11351_vm12, %v11380_v29 }
  0xee   : > { %9071 = vmatprep.mubr.msk.bf16.mxu0 %vm11358_vm13, %v11382_v32  ;;  %9100 = vmatpush3.bf16.msra.mxu0 %v10448_v25  ;;  %v728_v25 = vld [vmem:[#allocation2 + $0xc7] sm:$0xff] }
  0xef   : > { %9101 = vmatprep.subr.bf16.mxu0 %v10449_v30  ;;  %v11529_v36 = vpack.c.bf16 %v729_v26, %v728_v25  ;;  %v12970_v25 = vmov 0  ;;  %v1287_v26 = vld [vmem:[#allocation2 + $0x29] sm:$0xff] }
  0xf2   : > { %9102 = vmatpush3.bf16.msra.mxu0 %v10449_v30  ;;  %v11518_v30 = vadd.s32 56, %v11250_v20 }
  0xf3   : > { %9103 = vmatprep.subr.bf16.mxu0 %v10450_v38 }
  0xf4   : > { %12954 = vst [vmem:[#allocation32_spill] sm:$0xff] %v11518_v30  ;;  %v615_v49 = vand.u32 15, %v11518_v30  ;;  %v1293_v30 = vld [vmem:[#allocation2 + $0x59] sm:$0xff] }
  0xf5   : > { %9072 = vmatmul.mubr.msk.bf16.gmra.mrb[8].mxu0 %vm11387_vm1, %v11415_v42 }
  0xf6   : > { %9075 = vmatprep.mubr.msk.bf16.mxu0 %vm11394_vm2, %v11417_v44  ;;  %9104 = vmatpush3.bf16.msra.mxu0 %v10450_v38  ;;  %v730_v38 = vld [vmem:[#allocation2 + $0xd7] sm:$0xff] }
  0xf7   : > { %9105 = vmatprep.subr.bf16.mxu0 %v10451_v43 }
  0xfa   : > { %9106 = vmatpush3.bf16.msra.mxu0 %v10451_v43  ;;  %v733_v43 = vld [vmem:[#allocation2 + $0xef] sm:$0xff] }
  0xfb   : > { %9107 = vmatprep.subr.bf16.mxu0 %v10452_v56 }
  0xfd   : > { %9076 = vmatmul.mubr.msk.bf16.gmra.mrb[12].mxu0 %vm11422_vm5, %v11453_v61  ;;  %vm11499_vm5 = vcmp.ge.s32.totalorder %v636_v51, 1  ;;  %v11557_v51 = vpack.c.bf16 %v731_v40, %v730_v38  ;;  %v619_v40 = vand.u32 15, %v587_v3  ;;  %v12993_v3 = vmov 0 }
  0xfe   : > { %9079 = vmatprep.mubr.msk.bf16.mxu0 %vm11429_vm10, %v11455_v0  ;;  %9108 = vmatpush3.bf16.msra.mxu0 %v10452_v56  ;;  %v585_v56 = vadd.s32 72, %v11250_v20 }
  0xff   : > { %9109 = vmatprep.subr.bf16.mxu0 %v10453_v63 }
 0x100   : > { %v617_v5 = vand.u32 15, %v585_v56  ;;  %v10455_v56 = vld [vmem:[#allocation5 + $0xc8] sm:$0xff]  }
 0x102   : > { %9110 = vmatpush3.bf16.msra.mxu0 %v10453_v63  ;;  %v735_v63 = vld [vmem:[#allocation2 + $0xff] sm:$0xff] }
 0x103   : > { %9143 = vmatprep.subr.bf16.mxu0 %v11479_v9  ;;  %v11582_v6 = vpack.c.bf16 %v735_v63, %v734_v60  ;;  %v1289_v60 = vld [vmem:[#allocation2 + $0x39] sm:$0xff]  ;;  %v1290_v63 = vld [vmem:[#allocation2 + $0x41] sm:$0xff] }
 0x105   : > { %9080 = vmatmul.mubr.msk.bf16.gmra.mrb[16].mxu0 %vm11460_vm14, %v11488_v11  ;;  %vm11523_vm14 = vcmp.ge.s32.totalorder %v638_v52, 1  ;;  %v11559_v52 = vpack.c.bf16 %v733_v43, %v732_v41  ;;  %v1288_v41 = vld [vmem:[#allocation2 + $0x31] sm:$0xff]  ;;  %v12976_v43 = vmov 0 }
 0x106   : > { %9083 = vmatprep.mubr.msk.bf16.mxu0 %vm11471_vm0, %v11490_v14  ;;  %vm11544_vm0 = vmpackc.low %vm10930_vm6, %vm11499_vm5 }
 0x107   : > { %v12960_v47 = vsel %vm11544_vm0, 4294967295, %v12959_v47  ;;  %vm11564_vm5 = vmpackc.low %vm10930_vm6, %vm11523_vm14 }
 0x108   : > { %v12964_v54 = vsel %vm11564_vm5, 4294967295, %v12963_v54  ;;  %vm11587_vm14 = vmpackc.low %vm11553_vm3, %vm10930_vm6  ;;  %vm11602_vm3 = vcmp.le.s32.totalorder %v615_v49, 14  ;;  %v591_v49 = vadd.s32 120, %v11250_v20 }
 0x10a   : > { %v623_v21 = vand.u32 15, %v591_v49  ;;  %v12986_v49 = vmov 0 }
 0x10d   : > { %9084 = vmatmul.mubr.msk.bf16.gmra.mrb[20].mxu0 %vm11495_vm4, %v11527_v35  ;;  %vm11568_vm4 = vcmp.le.s32.totalorder %v611_v8, 14  ;;  %v12968_v8 = vmov 0 }
 0x10e   : > { %9087 = vmatprep.mubr.msk.bf16.mxu0 %vm11510_vm11, %v11529_v36  ;;  %vm12967_vm11 = vcmask 23552   ;;  %v12969_v8 = vsel %vm11587_vm14, 4294967295, %v12968_v8 }
 0x10f   : > { %574 = vst.msk [vmem:[#allocation2 + $0x110] sm:$0xff] %vm12967_vm11, %v503_v57  ;;  %vm677_vm11 = vcmp.le.s32.totalorder %v613_v48, 14  ;;  %v621_v48 = vand.u32 15, %v589_v19  ;;  %v11621_v57 = vpack.c.bf16 %v1288_v41, %v1287_v26  ;;  %v10456_v26 = vld [vmem:[#allocation5 + $0xd0] sm:$0xff]   ;;  %v10457_v41 = vld [vmem:[#allocation5 + $0xd8] sm:$0xff]  }
 0x110   : > { %v1298_v19 = vld [vmem:[#allocation2 + $0x81] sm:$0xff] }
 0x115   : > { %9088 = vmatmul.mubr.msk.bf16.gmra.mrb[24].mxu0 %vm11534_vm15, %v11557_v51  ;;  %vm11606_vm15 = vcmp.le.s32.totalorder %v617_v5, 14  ;;  %v1292_v5 = vld [vmem:[#allocation2 + $0x51] sm:$0xff] }
 0x116   : > { %9091 = vmatprep.mubr.msk.bf16.mxu0 %vm11544_vm0, %v11559_v52  ;;  %vm11598_vm0 = vmpackc.low %vm11568_vm4, %vm10930_vm6  ;;  %v11656_v38 = vpack.c.bf16 %v1292_v5, %v1291_v4  ;;  %v10458_v5 = vld [vmem:[#allocation5 + $0xe0] sm:$0xff]  }
 0x117   : > { %v12971_v25 = vsel %vm11598_vm0, 4294967295, %v12970_v25  ;;  %vm11629_vm4 = vmpackc.low %vm11602_vm3, %vm10930_vm6  ;;  %vm11648_vm3 = vcmp.le.s32.totalorder %v621_v48, 14  ;;  %v1294_v48 = vld [vmem:[#allocation2 + $0x61] sm:$0xff] }
 0x118   : > { %v12979_v53 = vsel %vm11629_vm4, 4294967295, %v12978_v53 }
 0x11d   : > { %9092 = vmatmul.mubr.msk.bf16.gmra.mrb[28].mxu0 %vm11564_vm5, %v11582_v6  ;;  %vm11613_vm5 = vmpackc.low %vm677_vm11, %vm10930_vm6  ;;  %vm11633_vm11 = vcmp.le.s32.totalorder %v619_v40, 14  ;;  %v11654_v40 = vpack.c.bf16 %v1290_v63, %v1289_v60  ;;  %v1296_v60 = vld [vmem:[#allocation2 + $0x71] sm:$0xff]  ;;  %v1301_v63 = vld [vmem:[#allocation2 + $0x99] sm:$0xff] }
 0x11e   : > { %9111 = vmatprep.mubr.msk.bf16.mxu0 %vm11587_vm14, %v7835_v10  ;;  %v12977_v43 = vsel %vm11613_vm5, 4294967295, %v12976_v43  ;;  %v12982_v10 = vmov 0  ;;  %vm11672_vm14 = vcmp.le.s32.totalorder %v625_v22, 14  ;;  %v599_v22 = vadd.s32 184, %v11250_v20 }
 0x11f   : > { %v11690_v24 = vpack.c.bf16 %v1296_v60, %v1295_v50  ;;  %v637_v50 = vand.u32 15, %v605_v23 }
 0x120   : > { %v631_v60 = vand.u32 15, %v599_v22 }
 0x125   : > { %9112 = vmatmul.mubr.msk.bf16.vlgmr.msra.gmra.mrb[0].mxu0 %vm11598_vm0, %v11619_v55  ;;  %vm11644_vm0 = vmpackc.low %vm11606_vm15, %vm10930_vm6 }
 0x126   : > { %9144 = vmatpush3.bf16.msra.mxu0 %v11479_v9  ;;  %9115 = vmatprep.mubr.msk.bf16.mxu0 %vm11613_vm5, %v11621_v57  ;;  %v12983_v10 = vsel %vm11644_vm0, 4294967295, %v12982_v10  ;;  %v595_v9 = vadd.s32 152, %v11250_v20  ;;  %vm11664_vm15 = vmpackc.low %vm11633_vm11, %vm10930_vm6  ;;  %vm11668_vm5 = vcmp.le.s32.totalorder %v623_v21, 14  ;;  %v629_v21 = vand.u32 15, %v597_v34 }
 0x127   : > { %9145 = vmatprep.subr.bf16.mxu0 %v10455_v56  ;;  %v12987_v49 = vsel %vm11664_vm15, 4294967295, %v12986_v49  ;;  %vm11682_vm11 = vmpackc.low %vm11648_vm3, %vm10930_vm6  ;;  %v12996_v34 = vmov 0 }
 0x128   : > { %12988 = vst [vmem:[#allocation33_spill] sm:$0xff] %v12987_v49  ;;  %v627_v4 = vand.u32 15, %v595_v9  ;;  %v12994_v3 = vsel %vm11682_vm11, 4294967295, %v12993_v3  ;;  %v11688_v9 = vpack.c.bf16 %v1294_v48, %v1293_v30  ;;  %vm11698_vm3 = vmpackc.low %vm11668_vm5, %vm10930_vm6  ;;  %v1299_v30 = vld [vmem:[#allocation2 + $0x89] sm:$0xff]  ;;  %v1300_v48 = vld [vmem:[#allocation2 + $0x91] sm:$0xff] }
 0x129   : > { %12995 = vst [vmem:[#allocation34_spill] sm:$0xff] %v12994_v3  ;;  %v12997_v34 = vsel %vm11698_vm3, 4294967295, %v12996_v34  ;;  %vm11716_vm5 = vmpackc.low %vm11672_vm14, %vm10930_vm6  ;;  %v11724_v3 = vpack.c.bf16 %v1300_v48, %v1299_v30  ;;  %v1302_v49 = vld [vmem:[#allocation2 + $0xa1] sm:$0xff]  ;;  %v13010_v30 = vmov 0  ;;  %v12062_v48 = vld [vmem:[%s12785_s2] ss:$0 sm:$0xff] }
 0x12a   : > { %9146 = vmatpush3.bf16.msra.mxu0 %v10455_v56  ;;  %12998 = vst [vmem:[#allocation35_spill] sm:$0xff] %v12997_v34  ;;  %v13003_v56 = vmov 0  ;;  %v11755_v34 = vpack.c.bf16 %v1302_v49, %v1301_v63  ;;  %v10504_v49 = vld [vmem:[%s12786_s3 + $0x4] ss:$8 sps:$4 sm:$0xff]  }
 0x12b   : > { %9147 = vmatprep.subr.bf16.mxu0 %v10456_v26  ;;  %v13004_v56 = vsel %vm11716_vm5, 4294967295, %v13003_v56  ;;  %3946 = vmatprep.mubr.bf16.mxu1 %v10504_v49 }
 0x12c   : > { %13005 = vst [vmem:[#allocation36_spill] sm:$0xff] %v13004_v56 }
 0x12d   : > { %9116 = vmatmul.mubr.msk.bf16.gmra.mrb[4].mxu0 %vm11629_vm4, %v11654_v40  ;;  %vm11706_vm4 = vcmp.le.s32.totalorder %v629_v21, 14  ;;  %v10460_v21 = vld [vmem:[#allocation5 + $0xf0] sm:$0xff]  }
 0x12e   : > { %9119 = vmatprep.mubr.msk.bf16.mxu0 %vm11644_vm0, %v11656_v38  ;;  %9148 = vmatpush3.bf16.msra.mxu0 %v10456_v26  ;;  %v1297_v26 = vld [vmem:[#allocation2 + $0x79] sm:$0xff]  ;;  %vm11702_vm0 = vcmp.le.s32.totalorder %v627_v4, 14  ;;  %v633_v4 = vand.u32 15, %v601_v31  ;;  %v13006_v31 = vmov 0 }
 0x12f   : > { %9149 = vmatprep.subr.bf16.mxu0 %v10457_v41  ;;  %v11722_v22 = vpack.c.bf16 %v1298_v19, %v1297_v26  ;;  %vm11732_vm14 = vmpackc.low %vm11702_vm0, %vm10930_vm6  ;;  %v1304_v26 = vld [vmem:[#allocation2 + $0xb1] sm:$0xff]  ;;  %v1309_v19 = vld [vmem:[#allocation2 + $0xd9] sm:$0xff] }
 0x130   : > { %v13007_v31 = vsel %vm11732_vm14, 4294967295, %v13006_v31  ;;  %vm11750_vm0 = vcmp.le.s32.totalorder %v633_v4, 14  ;;  %v1306_v4 = vld [vmem:[#allocation2 + $0xc1] sm:$0xff] }
 0x132   : > { %9150 = vmatpush3.bf16.msra.mxu0 %v10457_v41  ;;  %v1305_v41 = vld [vmem:[#allocation2 + $0xb9] sm:$0xff] }
 0x133   : > { %9151 = vmatprep.subr.bf16.mxu0 %v10458_v5 }
 0x135   : > { %9120 = vmatmul.mubr.msk.bf16.gmra.mrb[8].mxu0 %vm11664_vm15, %v11688_v9  ;;  %vm701_vm15 = vcmp.le.s32.totalorder %v637_v50, 14 }
 0x136   : > { %9123 = vmatprep.mubr.msk.bf16.mxu0 %vm11682_vm11, %v11690_v24  ;;  %9152 = vmatpush3.bf16.msra.mxu0 %v10458_v5  ;;  %v1303_v5 = vld [vmem:[#allocation2 + $0xa9] sm:$0xff]  ;;  %vm11736_vm11 = vcmp.le.s32.totalorder %v631_v60, 14  ;;  %v607_v60 = vadd.s32 248, %v11250_v20  ;;  %v1310_v20 = vld [vmem:[#allocation2 + $0xe1] sm:$0xff] }
 0x137   : > { %9153 = vmatprep.subr.bf16.mxu0 %v10459_v28  ;;  %v11757_v56 = vpack.c.bf16 %v1304_v26, %v1303_v5  ;;  %v11779_v5 = vpack.c.bf16 %v1306_v4, %v1305_v41  ;;  %v1313_v4 = vld [vmem:[#allocation2 + $0xf9] sm:$0xff] }
 0x138   : > { %v639_v63 = vand.u32 15, %v607_v60  ;;  %v11799_v60 = vpack.c.bf16 %v1310_v20, %v1309_v19  ;;  %v10463_v20 = vld [vmem:[#allocation5 + $0x108] sm:$0xff]   ;;  %v10465_v19 = vld [vmem:[#allocation5 + $0x118] sm:$0xff]  }
 0x13a   : > { %9154 = vmatpush3.bf16.msra.mxu0 %v10459_v28  ;;  %v635_v28 = vand.u32 15, %v603_v59  ;;  %v10462_v59 = vld [vmem:[#allocation5 + $0x100] sm:$0xff]  }
 0x13b   : > { %9155 = vmatprep.subr.bf16.mxu0 %v10460_v21 }
 0x13d   : > { %9124 = vmatmul.mubr.msk.bf16.gmra.mrb[12].mxu0 %vm11698_vm3, %v11722_v22  ;;  %vm11746_vm3 = vmpackc.low %vm11706_vm4, %vm10930_vm6 }
 0x13e   : > { %9127 = vmatprep.mubr.msk.bf16.mxu0 %vm11716_vm5, %v11724_v3  ;;  %v13011_v30 = vsel %vm11746_vm3, 4294967295, %v13010_v30  ;;  %9156 = vmatpush3.bf16.msra.mxu0 %v10460_v21  ;;  %vm11765_vm4 = vmpackc.low %vm11736_vm11, %vm10930_vm6  ;;  %v1307_v21 = vld [vmem:[#allocation2 + $0xc9] sm:$0xff] }
 0x13f   : > { %13012 = vst [vmem:[#allocation37_spill] sm:$0xff] %v13011_v30  ;;  %9157 = vmatprep.subr.bf16.mxu0 %v10461_v39  ;;  %vm11775_vm5 = vmpackc.low %vm11750_vm0, %vm10930_vm6  ;;  %v1311_v30 = vld [vmem:[#allocation2 + $0xe9] sm:$0xff] }
 0x140   : > { %vm11795_vm0 = vmpackc.low %vm701_vm15, %vm10930_vm6 }
 0x142   : > { %9158 = vmatpush3.bf16.msra.mxu0 %v10461_v39  ;;  %v1308_v39 = vld [vmem:[#allocation2 + $0xd1] sm:$0xff] }
 0x143   : > { %9191 = vmatprep.subr.bf16.mxu0 %v10462_v59  ;;  %v11781_v26 = vpack.c.bf16 %v1308_v39, %v1307_v21  ;;  %v1314_v21 = vld [vmem:[#allocation2 + $0x101] sm:$0xff] }
 0x145   : > { %9128 = vmatmul.mubr.msk.bf16.gmra.mrb[16].mxu0 %vm11732_vm14, %v11755_v34  ;;  %vm699_vm14 = vcmp.le.s32.totalorder %v635_v28, 14  ;;  %v1312_v28 = vld [vmem:[#allocation2 + $0xf1] sm:$0xff] }
 0x146   : > { %9131 = vmatprep.mubr.msk.bf16.mxu0 %vm11746_vm3, %v11757_v56  ;;  %vm11787_vm11 = vmpackc.low %vm699_vm14, %vm10930_vm6  ;;  %vm703_vm3 = vcmp.le.s32.totalorder %v639_v63, 14  ;;  %v11801_v41 = vpack.c.bf16 %v1312_v28, %v1311_v30  ;;  %v11814_v63 = vpack.c.bf16 %v1314_v21, %v1313_v4  ;;  %v10464_v30 = vld [vmem:[#allocation5 + $0x110] sm:$0xff]   ;;  %vm13027_vm14 = vnez %v12944_v1  ;;  %v10471_v21 = vld [vmem:[#allocation5 + $0x148] sm:$0xff]  }
 0x147   : > { %vm11810_vm15 = vmpackc.low %vm703_vm3, %vm10930_vm6  ;;  %vm13025_vm6 = vnez %v12933_v45  ;;  %vm13026_vm3 = vnez %v12940_v2  ;;  %v1964_v28 = vld [vmem:[#allocation2 + $0x40] sm:$0xff] }
 0x148   : > { %v2634_v1 = vld [vmem:[#allocation2 + $0x11f] sm:$0xff] }
 0x14d   : > { %9132 = vmatmul.mubr.msk.bf16.gmra.mrb[20].mxu0 %vm11765_vm4, %v11779_v5 }
 0x14e   : > { %9135 = vmatprep.mubr.msk.bf16.mxu0 %vm11775_vm5, %v11781_v26 }
 0x155   : > { %9136 = vmatmul.mubr.msk.bf16.gmra.mrb[24].mxu0 %vm11787_vm11, %v11799_v60 }
 0x156   : > { %9139 = vmatprep.mubr.msk.bf16.mxu0 %vm11795_vm0, %v11801_v41 }
 0x15d   : > { %9140 = vmatmul.mubr.msk.bf16.gmra.mrb[28].mxu0 %vm11810_vm15, %v11814_v63 }
 0x15e   : > { %9159 = vmatprep.mubr.msk.bf16.mxu0 %vm11304_vm7, %v11344_v13  ;;  %v10466_v13 = vld [vmem:[#allocation5 + $0x120] sm:$0xff]  }
 0x165   : > { %9160 = vmatmul.mubr.msk.bf16.vlgmr.msra.gmra.mrb[0].mxu0 %vm11311_vm8, %v11346_v15  ;;  %v10467_v15 = vld [vmem:[#allocation5 + $0x128] sm:$0xff]  }
 0x166   : > { %9192 = vmatpush3.bf16.msra.mxu0 %v10462_v59  ;;  %9163 = vmatprep.mubr.msk.bf16.mxu0 %vm11324_vm9, %v11380_v29  ;;  %v10468_v29 = vld [vmem:[#allocation5 + $0x130] sm:$0xff]   ;;  %v1963_v59 = vld [vmem:[#allocation2 + $0x38] sm:$0xff] }
 0x167   : > { %9193 = vmatprep.subr.bf16.mxu0 %v10463_v20  ;;  %v11871_v4 = vpack.c.bf16 %v1964_v28, %v1963_v59  ;;  %v1973_v59 = vld [vmem:[#allocation2 + $0x88] sm:$0xff]  ;;  %v1974_v28 = vld [vmem:[#allocation2 + $0x90] sm:$0xff] }
 0x16a   : > { %9194 = vmatpush3.bf16.msra.mxu0 %v10463_v20  ;;  %v1966_v20 = vld [vmem:[#allocation2 + $0x50] sm:$0xff] }
 0x16b   : > { %9195 = vmatprep.subr.bf16.mxu0 %v10464_v30 }
 0x16d   : > { %9164 = vmatmul.mubr.msk.bf16.gmra.mrb[4].mxu0 %vm11351_vm12, %v11382_v32  ;;  %v10469_v32 = vld [vmem:[#allocation5 + $0x138] sm:$0xff]  }
 0x16e   : > { %9167 = vmatprep.mubr.msk.bf16.mxu0 %vm11358_vm13, %v11415_v42  ;;  %9196 = vmatpush3.bf16.msra.mxu0 %v10464_v30  ;;  %v10470_v42 = vld [vmem:[#allocation5 + $0x140] sm:$0xff]   ;;  %v1967_v30 = vld [vmem:[#allocation2 + $0x58] sm:$0xff] }
 0x16f   : > { %9197 = vmatprep.subr.bf16.mxu0 %v10465_v19 }
 0x172   : > { %9198 = vmatpush3.bf16.msra.mxu0 %v10465_v19  ;;  %v1968_v19 = vld [vmem:[#allocation2 + $0x60] sm:$0xff] }
 0x173   : > { %9199 = vmatprep.subr.bf16.mxu0 %v10466_v13 }
 0x175   : > { %9168 = vmatmul.mubr.msk.bf16.gmra.mrb[8].mxu0 %vm11387_vm1, %v11417_v44  ;;  %v1651_v44 = vld [vmem:[#allocation2 + $0x107] sm:$0xff] }
 0x176   : > { %9171 = vmatprep.mubr.msk.bf16.mxu0 %vm11394_vm2, %v11453_v61  ;;  %9200 = vmatpush3.bf16.msra.mxu0 %v10466_v13  ;;  %vm13029_vm2 = vnez %v12952_v27  ;;  %v1652_v61 = vld [vmem:[#allocation2 + $0x10f] sm:$0xff]  ;;  %v10472_v13 = vld [vmem:[#allocation5 + $0x150] sm:$0xff]  }
 0x177   : > { %9201 = vmatprep.subr.bf16.mxu0 %v10467_v15 }
 0x17a   : > { %9202 = vmatpush3.bf16.msra.mxu0 %v10467_v15 }
 0x17b   : > { %9203 = vmatprep.subr.bf16.mxu0 %v10468_v29 }
 0x17d   : > { %9172 = vmatmul.mubr.msk.bf16.gmra.mrb[12].mxu0 %vm13025_vm6, %v11455_v0  ;;  %vm13028_vm6 = vnez %v12948_v18  ;;  %v1959_v0 = vld [vmem:[#allocation2 + $0x18] sm:$0xff] }
 0x17e   : > { %9175 = vmatprep.mubr.msk.bf16.mxu0 %vm11429_vm10, %v11488_v11  ;;  %9204 = vmatpush3.bf16.msra.mxu0 %v10468_v29  ;;  %vm13030_vm10 = vnez %v12958_v37  ;;  %v1960_v11 = vld [vmem:[#allocation2 + $0x20] sm:$0xff]  ;;  %v11877_v29 = vpack.c.bf16 %v1968_v19, %v1967_v30  ;;  %v11887_v30 = vpack.c.bf16 %v1974_v28, %v1973_v59  ;;  %v1982_v28 = vld [vmem:[#allocation2 + $0xd0] sm:$0xff] }
 0x17f   : > { %9205 = vmatprep.subr.bf16.mxu0 %v10469_v32 }
 0x182   : > { %9206 = vmatpush3.bf16.msra.mxu0 %v10469_v32  ;;  %v10473_v32 = vld [vmem:[#allocation5 + $0x158] sm:$0xff]  }
 0x183   : > { %9239 = vmatprep.subr.bf16.mxu0 %v10470_v42 }
 0x185   : > { %9176 = vmatmul.mubr.msk.bf16.gmra.mrb[16].mxu0 %vm13026_vm3, %v11490_v14  ;;  %vm13031_vm3 = vnez %v12960_v47  ;;  %v11864_v14 = vpack.c.bf16 %v1652_v61, %v1651_v44  ;;  %v1970_v44 = vld [vmem:[#allocation2 + $0x70] sm:$0xff]  ;;  %v1971_v61 = vld [vmem:[#allocation2 + $0x78] sm:$0xff] }
 0x186   : > { %9179 = vmatprep.mubr.msk.bf16.mxu0 %vm13027_vm14, %v11527_v35  ;;  %v1991_v35 = vpack.c.bf16 %v1960_v11, %v1959_v0  ;;  %v1972_v0 = vld [vmem:[#allocation2 + $0x80] sm:$0xff]  ;;  %v10474_v11 = vld [vmem:[#allocation5 + $0x160] sm:$0xff]  }
 0x18d   : > { %9180 = vmatmul.mubr.msk.bf16.gmra.mrb[20].mxu0 %vm13028_vm6, %v11529_v36  ;;  %vm13032_vm6 = vnez %v12964_v54  ;;  %v1961_v36 = vld [vmem:[#allocation2 + $0x28] sm:$0xff] }
 0x18e   : > { %9183 = vmatprep.mubr.msk.bf16.mxu0 %vm13029_vm2, %v11557_v51  ;;  %v1962_v51 = vld [vmem:[#allocation2 + $0x30] sm:$0xff]  ;;  %vm13038_vm2 = vnez %v12979_v53 }
 0x195   : > { %9184 = vmatmul.mubr.msk.bf16.gmra.mrb[24].mxu0 %vm13030_vm10, %v11559_v52  ;;  %v11869_v52 = vpack.c.bf16 %v1962_v51, %v1961_v36  ;;  %v11883_v36 = vpack.c.bf16 %v1972_v0, %v1971_v61  ;;  %v10475_v51 = vld [vmem:[#allocation5 + $0x168] sm:$0xff]   ;;  %v1980_v61 = vld [vmem:[#allocation2 + $0xc0] sm:$0xff]  ;;  %v10478_v0 = vld [vmem:[#allocation5 + $0x180] sm:$0xff]   ;;  %vm13037_vm10 = vnez %v12977_v43 }
 0x196   : > { %9187 = vmatprep.mubr.msk.bf16.mxu0 %vm13031_vm3, %v11582_v6  ;;  %v1965_v6 = vld [vmem:[#allocation2 + $0x48] sm:$0xff]  ;;  %vm13036_vm3 = vnez %v12971_v25 }
 0x197   : > { %v11875_v15 = vpack.c.bf16 %v1966_v20, %v1965_v6  ;;  %v1976_v6 = vld [vmem:[#allocation2 + $0xa0] sm:$0xff] }
 0x198   : > { %v10476_v20 = vld [vmem:[#allocation5 + $0x170] sm:$0xff]  }
 0x19d   : > { %9188 = vmatmul.mubr.msk.bf16.gmra.mrb[28].mxu0 %vm13032_vm6, %v11864_v14  ;;  %vm13035_vm6 = vnez %v12969_v8 }
 0x19e   : > { %9207 = vmatprep.mubr.bf16.mxu0 %v1991_v35 }
 0x1a5   : > { %9208 = vmatmul.mubr.bf16.vlgmr.msra.gmra.mrb[0].mxu0 %v11869_v52 }
 0x1a6   : > { %9240 = vmatpush3.bf16.msra.mxu0 %v10470_v42  ;;  %9211 = vmatprep.mubr.bf16.mxu0 %v11871_v4  ;;  %v1969_v42 = vld [vmem:[#allocation2 + $0x68] sm:$0xff] }
 0x1a7   : > { %9241 = vmatprep.subr.bf16.mxu0 %v10471_v21  ;;  %v11881_v35 = vpack.c.bf16 %v1970_v44, %v1969_v42  ;;  %v1978_v42 = vld [vmem:[#allocation2 + $0xb0] sm:$0xff]  ;;  %v1979_v44 = vld [vmem:[#allocation2 + $0xb8] sm:$0xff] }
 0x1a8   : > { %v11895_v59 = vpack.c.bf16 %v1980_v61, %v1979_v44  ;;  %v1988_v44 = vld [vmem:[#allocation2 + $0x100] sm:$0xff] }
 0x1aa   : > { %9242 = vmatpush3.bf16.msra.mxu0 %v10471_v21  ;;  %v1975_v21 = vld [vmem:[#allocation2 + $0x98] sm:$0xff] }
 0x1ab   : > { %9243 = vmatprep.subr.bf16.mxu0 %v10472_v13  ;;  %v11889_v19 = vpack.c.bf16 %v1976_v6, %v1975_v21  ;;  %v1983_v21 = vld [vmem:[#allocation2 + $0xd8] sm:$0xff]  ;;  %v1984_v6 = vld [vmem:[#allocation2 + $0xe0] sm:$0xff] }
 0x1ad   : > { %9212 = vmatmul.mubr.bf16.gmra.mrb[4].mxu0 %v11875_v15  ;;  %13033 = vst [vmem:[#allocation38_spill] sm:$0xff] %v11889_v19 }
 0x1ae   : > { %9215 = vmatprep.mubr.bf16.mxu0 %v11877_v29  ;;  %9244 = vmatpush3.bf16.msra.mxu0 %v10472_v13  ;;  %v10477_v13 = vld [vmem:[#allocation5 + $0x178] sm:$0xff]  }
 0x1af   : > { %9245 = vmatprep.subr.bf16.mxu0 %v10473_v32 }
 0x1b2   : > { %9246 = vmatpush3.bf16.msra.mxu0 %v10473_v32  ;;  %v1977_v32 = vld [vmem:[#allocation2 + $0xa8] sm:$0xff] }
 0x1b3   : > { %9247 = vmatprep.subr.bf16.mxu0 %v10474_v11 }
 0x1b5   : > { %9216 = vmatmul.mubr.bf16.gmra.mrb[8].mxu0 %v11881_v35 }
 0x1b6   : > { %9219 = vmatprep.mubr.bf16.mxu0 %v11883_v36  ;;  %9248 = vmatpush3.bf16.msra.mxu0 %v10474_v11  ;;  %v11893_v11 = vpack.c.bf16 %v1978_v42, %v1977_v32  ;;  %v1985_v32 = vld [vmem:[#allocation2 + $0xe8] sm:$0xff]  ;;  %v1986_v42 = vld [vmem:[#allocation2 + $0xf0] sm:$0xff] }
 0x1b7   : > { %9249 = vmatprep.subr.bf16.mxu0 %v10475_v51  ;;  %v11905_v61 = vpack.c.bf16 %v1986_v42, %v1985_v32  ;;  %v10480_v32 = vld [vmem:[#allocation5 + $0x190] sm:$0xff]   ;;  %v10481_v42 = vld [vmem:[#allocation5 + $0x198] sm:$0xff]  }
 0x1b8   : > { %13034 = vst [vmem:[#allocation39_spill] sm:$0xff] %v11893_v11 }
 0x1ba   : > { %9250 = vmatpush3.bf16.msra.mxu0 %v10475_v51  ;;  %v1981_v51 = vld [vmem:[#allocation2 + $0xc8] sm:$0xff] }
 0x1bb   : > { %9251 = vmatprep.subr.bf16.mxu0 %v10476_v20 }
 0x1bd   : > { %9220 = vmatmul.mubr.bf16.gmra.mrb[12].mxu0 %v11887_v30 }
 0x1be   : > { %9223 = vmatprep.mubr.bf16.mxu0 %v11889_v19  ;;  %9252 = vmatpush3.bf16.msra.mxu0 %v10476_v20  ;;  %v11899_v19 = vpack.c.bf16 %v1982_v28, %v1981_v51  ;;  %v11901_v20 = vpack.c.bf16 %v1984_v6, %v1983_v21  ;;  %v1989_v51 = vld [vmem:[#allocation2 + $0x108] sm:$0xff]  ;;  %v1990_v28 = vld [vmem:[#allocation2 + $0x110] sm:$0xff]  ;;  %v10479_v6 = vld [vmem:[#allocation5 + $0x188] sm:$0xff]  }
 0x1bf   : > { %9253 = vmatprep.subr.bf16.mxu0 %v10477_v13  ;;  %v11911_v21 = vpack.c.bf16 %v1990_v28, %v1989_v51 }
 0x1c2   : > { %9254 = vmatpush3.bf16.msra.mxu0 %v10477_v13  ;;  %v1987_v13 = vld [vmem:[#allocation2 + $0xf8] sm:$0xff] }
 0x1c3   : > { %9287 = vmatprep.subr.bf16.mxu0 %v10478_v0 }
 0x1c5   : > { %9224 = vmatmul.mubr.bf16.gmra.mrb[16].mxu0 %v11893_v11  ;;  %v11907_v11 = vpack.c.bf16 %v1988_v44, %v1987_v13  ;;  %v13044_v13 = vld [vmem:[#allocation35_spill] sm:$0xff]  ;;  %v13046_v44 = vld [vmem:[#allocation36_spill] sm:$0xff] }
 0x1c6   : > { %9227 = vmatprep.mubr.bf16.mxu0 %v11895_v59 }
 0x1cd   : > { %9228 = vmatmul.mubr.bf16.gmra.mrb[20].mxu0 %v11899_v19 }
 0x1ce   : > { %9231 = vmatprep.mubr.bf16.mxu0 %v11901_v20 }
 0x1d5   : > { %9232 = vmatmul.mubr.bf16.gmra.mrb[24].mxu0 %v11905_v61 }
 0x1d6   : > { %9235 = vmatprep.mubr.bf16.mxu0 %v11907_v11 }
 0x1dd   : > { %9236 = vmatmul.mubr.bf16.gmra.mrb[28].mxu0 %v11911_v21 }
 0x1de   : > { %9255 = vmatprep.mubr.msk.bf16.mxu0 %vm13035_vm6, %v11619_v55  ;;  %vm13039_vm6 = vnez %v12983_v10  ;;  %v10482_v55 = vld [vmem:[#allocation5 + $0x1a0] sm:$0xff]  }
 0x1e5   : > { %9256 = vmatmul.mubr.msk.bf16.vlgmr.msra.gmra.mrb[0].mxu0 %vm13036_vm3, %v11621_v57  ;;  %v10483_v57 = vld [vmem:[#allocation5 + $0x1a8] sm:$0xff]  }
 0x1e6   : > { %9288 = vmatpush3.bf16.msra.mxu0 %v10478_v0  ;;  %9259 = vmatprep.mubr.msk.bf16.mxu0 %vm13037_vm10, %v11654_v40  ;;  %v13040_v40 = vld [vmem:[#allocation33_spill] sm:$0xff]  ;;  %v13042_v0 = vld [vmem:[#allocation34_spill] sm:$0xff] }
 0x1e7   : > { %9289 = vmatprep.subr.bf16.mxu0 %v10479_v6  ;;  %vm13041_vm10 = vnez %v13040_v40  ;;  %vm13043_vm3 = vnez %v13042_v0 }
 0x1ea   : > { %9290 = vmatpush3.bf16.msra.mxu0 %v10479_v6  ;;  %v2608_v6 = vld [vmem:[#allocation2 + $0x4f] sm:$0xff] }
 0x1eb   : > { %9291 = vmatprep.subr.bf16.mxu0 %v10480_v32 }
 0x1ed   : > { %9260 = vmatmul.mubr.msk.bf16.gmra.mrb[4].mxu0 %vm13038_vm2, %v11656_v38  ;;  %v10484_v38 = vld [vmem:[#allocation5 + $0x1b0] sm:$0xff]   ;;  %vm13047_vm2 = vnez %v13046_v44 }
 0x1ee   : > { %9263 = vmatprep.mubr.msk.bf16.mxu0 %vm13039_vm6, %v11688_v9  ;;  %9292 = vmatpush3.bf16.msra.mxu0 %v10480_v32  ;;  %v10485_v9 = vld [vmem:[#allocation5 + $0x1b8] sm:$0xff]   ;;  %vm13045_vm6 = vnez %v13044_v13  ;;  %v3272_v13 = vld [vmem:[#allocation2 + $0xf1] sm:$0xff]  ;;  %v3273_v44 = vld [vmem:[#allocation2 + $0xf9] sm:$0xff] }
 0x1ef   : > { %9293 = vmatprep.subr.bf16.mxu0 %v10481_v42 }
 0x1f2   : > { %9294 = vmatpush3.bf16.msra.mxu0 %v10481_v42  ;;  %v10487_v42 = vld [vmem:[#allocation5 + $0x1c8] sm:$0xff]  }
 0x1f3   : > { %9295 = vmatprep.subr.bf16.mxu0 %v10482_v55 }
 0x1f5   : > { %9264 = vmatmul.mubr.msk.bf16.gmra.mrb[8].mxu0 %vm13041_vm10, %v11690_v24  ;;  %v10486_v24 = vld [vmem:[#allocation5 + $0x1c0] sm:$0xff]  }
 0x1f6   : > { %9267 = vmatprep.mubr.msk.bf16.mxu0 %vm13043_vm3, %v11722_v22  ;;  %9296 = vmatpush3.bf16.msra.mxu0 %v10482_v55  ;;  %vm13048_vm3 = vnez %v13007_v31  ;;  %v13049_v22 = vld [vmem:[#allocation37_spill] sm:$0xff] }
 0x1f7   : > { %9297 = vmatprep.subr.bf16.mxu0 %v10483_v57  ;;  %vm13050_vm10 = vnez %v13049_v22  ;;  %v2609_v55 = vld [vmem:[#allocation2 + $0x57] sm:$0xff]  ;;  %v12050_v22 = vld [vmem:[#allocation2 + $0x121] sm:$0xff] }
 0x1f8   : > { %v12048_v31 = vld [vmem:[#allocation2 + $0x119] sm:$0xff] }
 0x1f9   : > { %v8120_v23 = vpack.c.bf16 %v12050_v22, %v12048_v31 }
 0x1fa   : > { %9298 = vmatpush3.bf16.msra.mxu0 %v10483_v57  ;;  %v2610_v57 = vld [vmem:[#allocation2 + $0x5f] sm:$0xff] }
 0x1fb   : > { %9299 = vmatprep.subr.bf16.mxu0 %v10484_v38 }
 0x1fd   : > { %9268 = vmatmul.mubr.msk.bf16.gmra.mrb[12].mxu0 %vm13045_vm6, %v11724_v3  ;;  %v2295_v3 = vld [vmem:[#allocation2 + $0x109] sm:$0xff] }
 0x1fe   : > { %9271 = vmatprep.mubr.msk.bf16.mxu0 %vm13047_vm2, %v11755_v34  ;;  %9300 = vmatpush3.bf16.msra.mxu0 %v10484_v38  ;;  %v2296_v34 = vld [vmem:[#allocation2 + $0x111] sm:$0xff]  ;;  %v2611_v38 = vld [vmem:[#allocation2 + $0x67] sm:$0xff] }
 0x1ff   : > { %9301 = vmatprep.subr.bf16.mxu0 %v10485_v9  ;;  %v11959_v51 = vpack.c.bf16 %v2296_v34, %v2295_v3  ;;  %v8020_v3 = vpack.c.bf16 %v2610_v57, %v2609_v55  ;;  %v8023_v34 = vpack.c.bf16 %v2612_v58, %v2611_v38  ;;  %v10493_v57 = vld [vmem:[#allocation5 + $0x1f8] sm:$0xff]  }
 0x200   : > { %v2623_v38 = vld [vmem:[#allocation2 + $0xc7] sm:$0xff]  ;;  %v2624_v58 = vld [vmem:[#allocation2 + $0xcf] sm:$0xff] }
 0x202   : > { %9302 = vmatpush3.bf16.msra.mxu0 %v10485_v9  ;;  %v10488_v9 = vld [vmem:[#allocation5 + $0x1d0] sm:$0xff]  }
 0x203   : > { %9335 = vmatprep.subr.bf16.mxu0 %v10486_v24 }
 0x205   : > { %9272 = vmatmul.mubr.msk.bf16.gmra.mrb[16].mxu0 %vm13048_vm3, %v11757_v56  ;;  %v2603_v56 = vld [vmem:[#allocation2 + $0x27] sm:$0xff] }
 0x206   : > { %9275 = vmatprep.mubr.msk.bf16.mxu0 %vm13050_vm10, %v11779_v5  ;;  %v2604_v5 = vld [vmem:[#allocation2 + $0x2f] sm:$0xff] }
 0x207   : > { %v8011_v28 = vpack.c.bf16 %v2604_v5, %v2603_v56  ;;  %v10489_v56 = vld [vmem:[#allocation5 + $0x1d8] sm:$0xff]  }
 0x208   : > { %v2616_v5 = vld [vmem:[#allocation2 + $0x8f] sm:$0xff] }
 0x20d   : > { %9276 = vmatmul.mubr.msk.bf16.gmra.mrb[20].mxu0 %vm11765_vm4, %v11781_v26  ;;  %v2605_v26 = vld [vmem:[#allocation2 + $0x37] sm:$0xff] }
 0x20e   : > { %9279 = vmatprep.mubr.msk.bf16.mxu0 %vm11775_vm5, %v11799_v60  ;;  %v2606_v60 = vld [vmem:[#allocation2 + $0x3f] sm:$0xff] }
 0x20f   : > { %v8014_v32 = vpack.c.bf16 %v2606_v60, %v2605_v26  ;;  %v8026_v26 = vpack.c.bf16 %v2614_v7, %v2613_v62  ;;  %v2628_v62 = vld [vmem:[#allocation2 + $0xef] sm:$0xff] }
 0x215   : > { %9280 = vmatmul.mubr.msk.bf16.gmra.mrb[24].mxu0 %vm11787_vm11, %v11801_v41  ;;  %v2607_v41 = vld [vmem:[#allocation2 + $0x47] sm:$0xff] }
 0x216   : > { %9283 = vmatprep.mubr.msk.bf16.mxu0 %vm11795_vm0, %v11814_v63  ;;  %v8017_v63 = vpack.c.bf16 %v2608_v6, %v2607_v41  ;;  %v10491_v41 = vld [vmem:[#allocation5 + $0x1e8] sm:$0xff]   ;;  %v2619_v6 = vld [vmem:[#allocation2 + $0xa7] sm:$0xff] }
 0x21d   : > { %9284 = vmatmul.mubr.msk.bf16.gmra.mrb[28].mxu0 %vm11810_vm15, %v11959_v51 }
 0x21e   : > { %9303 = vmatprep.mubr.msk.bf16.mxu0 %vm11304_vm7, %v8011_v28  ;;  %v10490_v28 = vld [vmem:[#allocation5 + $0x1e0] sm:$0xff]   ;;  %vm13051_vm7 = vnez %v12926_v33  ;;  %v2622_v33 = vld [vmem:[#allocation2 + $0xbf] sm:$0xff] }
 0x225   : > { %9304 = vmatmul.mubr.msk.bf16.vlgmr.msra.gmra.mrb[0].mxu0 %vm11311_vm8, %v8014_v32  ;;  %v2620_v32 = vld [vmem:[#allocation2 + $0xaf] sm:$0xff]  ;;  %vm13052_vm8 = vnez %v12933_v45  ;;  %v2625_v45 = vld [vmem:[#allocation2 + $0xd7] sm:$0xff] }
 0x226   : > { %9336 = vmatpush3.bf16.msra.mxu0 %v10486_v24  ;;  %9307 = vmatprep.mubr.msk.bf16.mxu0 %vm11324_vm9, %v8017_v63  ;;  %v2615_v24 = vld [vmem:[#allocation2 + $0x87] sm:$0xff]  ;;  %v8035_v55 = vpack.c.bf16 %v2620_v32, %v2619_v6  ;;  %vm13053_vm9 = vnez %v12935_v46  ;;  %v2626_v46 = vld [vmem:[#allocation2 + $0xdf] sm:$0xff]  ;;  %v3256_v32 = vld [vmem:[#allocation2 + $0x71] sm:$0xff] }
 0x227   : > { %9337 = vmatprep.subr.bf16.mxu0 %v10487_v42  ;;  %v8029_v60 = vpack.c.bf16 %v2616_v5, %v2615_v24  ;;  %v10492_v63 = vld [vmem:[#allocation5 + $0x1f0] sm:$0xff]   ;;  %v8044_v7 = vpack.c.bf16 %v2626_v46, %v2625_v45  ;;  %v2629_v5 = vld [vmem:[#allocation2 + $0xf7] sm:$0xff]  ;;  %v3255_v6 = vld [vmem:[#allocation2 + $0x69] sm:$0xff] }
 0x228   : > { %v3267_v45 = vld [vmem:[#allocation2 + $0xc9] sm:$0xff] }
 0x22a   : > { %9338 = vmatpush3.bf16.msra.mxu0 %v10487_v42  ;;  %v8032_v42 = vpack.c.bf16 %v2618_v17, %v2617_v16  ;;  %v3251_v16 = vld [vmem:[#allocation2 + $0x49] sm:$0xff] }
 0x22b   : > { %9339 = vmatprep.subr.bf16.mxu0 %v10488_v9 }
 0x22d   : > { %9308 = vmatmul.mubr.msk.bf16.gmra.mrb[4].mxu0 %vm11351_vm12, %v8020_v3  ;;  %v8038_v3 = vpack.c.bf16 %v2622_v33, %v2621_v12  ;;  %vm13054_vm12 = vnez %v12940_v2  ;;  %v2633_v2 = vld [vmem:[#allocation2 + $0x117] sm:$0xff] }
 0x22e   : > { %9311 = vmatprep.mubr.msk.bf16.mxu0 %vm11358_vm13, %v8023_v34  ;;  %9340 = vmatpush3.bf16.msra.mxu0 %v10488_v9  ;;  %v10494_v9 = vld [vmem:[#allocation5 + $0x200] sm:$0xff]   ;;  %v8041_v34 = vpack.c.bf16 %v2624_v58, %v2623_v38  ;;  %vm13055_vm13 = vnez %v12948_v18  ;;  %v10495_v18 = vld [vmem:[#allocation5 + $0x208] sm:$0xff]   ;;  %v3262_v38 = vld [vmem:[#allocation2 + $0xa1] sm:$0xff] }
 0x22f   : > { %9341 = vmatprep.subr.bf16.mxu0 %v10489_v56  ;;  %v3263_v58 = vld [vmem:[#allocation2 + $0xa9] sm:$0xff] }
 0x232   : > { %9342 = vmatpush3.bf16.msra.mxu0 %v10489_v56  ;;  %v2627_v56 = vld [vmem:[#allocation2 + $0xe7] sm:$0xff] }
 0x233   : > { %9343 = vmatprep.subr.bf16.mxu0 %v10490_v28  ;;  %v8047_v24 = vpack.c.bf16 %v2628_v62, %v2627_v56  ;;  %v3270_v62 = vld [vmem:[#allocation2 + $0xe1] sm:$0xff] }
 0x235   : > { %9312 = vmatmul.mubr.msk.bf16.gmra.mrb[8].mxu0 %vm11387_vm1, %v8026_v26  ;;  %vm13056_vm1 = vnez %v12952_v27  ;;  %v10496_v27 = vld [vmem:[#allocation5 + $0x210] sm:$0xff]  }
 0x236   : > { %9315 = vmatprep.mubr.msk.bf16.mxu0 %vm13051_vm7, %v8029_v60  ;;  %9344 = vmatpush3.bf16.msra.mxu0 %v10490_v28  ;;  %v2630_v28 = vld [vmem:[#allocation2 + $0xff] sm:$0xff]  ;;  %vm13057_vm7 = vnez %v12958_v37  ;;  %v8056_v60 = vpack.c.bf16 %v2634_v1, %v2633_v2  ;;  %v10497_v37 = vld [vmem:[#allocation5 + $0x218] sm:$0xff]  }
 0x237   : > { %9345 = vmatprep.subr.bf16.mxu0 %v10491_v41  ;;  %v8050_v26 = vpack.c.bf16 %v2630_v28, %v2629_v5  ;;  %v3274_v28 = vld [vmem:[#allocation2 + $0x101] sm:$0xff] }
 0x23a   : > { %9346 = vmatpush3.bf16.msra.mxu0 %v10491_v41 }
 0x23b   : > { %9347 = vmatprep.subr.bf16.mxu0 %v10492_v63 }
 0x23d   : > { %9316 = vmatmul.mubr.msk.bf16.gmra.mrb[12].mxu0 %vm13052_vm8, %v8032_v42  ;;  %vm13059_vm8 = vnez %v12964_v54  ;;  %v10499_v54 = vld [vmem:[#allocation5 + $0x228] sm:$0xff]   ;;  %v8087_v42 = vpack.c.bf16 %v3256_v32, %v3255_v6 }
 0x23e   : > { %9319 = vmatprep.mubr.msk.bf16.mxu0 %vm13053_vm9, %v8035_v55  ;;  %9348 = vmatpush3.bf16.msra.mxu0 %v10492_v63  ;;  %vm13062_vm9 = vnez %v12969_v8  ;;  %v3257_v8 = vld [vmem:[#allocation2 + $0x79] sm:$0xff]  ;;  %v3258_v55 = vld [vmem:[#allocation2 + $0x81] sm:$0xff] }
 0x23f   : > { %9349 = vmatprep.subr.bf16.mxu0 %v10493_v57  ;;  %v8090_v12 = vpack.c.bf16 %v3258_v55, %v3257_v8 }
 0x242   : > { %9350 = vmatpush3.bf16.msra.mxu0 %v10493_v57  ;;  %v3259_v57 = vld [vmem:[#allocation2 + $0x89] sm:$0xff] }
 0x243   : > { %9383 = vmatprep.subr.bf16.mxu0 %v10494_v9 }
 0x245   : > { %9320 = vmatmul.mubr.msk.bf16.gmra.mrb[16].mxu0 %vm13054_vm12, %v8038_v3  ;;  %vm13063_vm12 = vnez %v12971_v25  ;;  %v3260_v25 = vld [vmem:[#allocation2 + $0x91] sm:$0xff] }
 0x246   : > { %9323 = vmatprep.mubr.msk.bf16.mxu0 %vm13027_vm14, %v8041_v34  ;;  %vm13058_vm14 = vnez %v12960_v47  ;;  %v10498_v47 = vld [vmem:[#allocation5 + $0x220] sm:$0xff]   ;;  %v8093_v33 = vpack.c.bf16 %v3260_v25, %v3259_v57  ;;  %v3266_v34 = vld [vmem:[#allocation2 + $0xc1] sm:$0xff] }
 0x24d   : > { %9324 = vmatmul.mubr.msk.bf16.gmra.mrb[20].mxu0 %vm13055_vm13, %v8044_v7  ;;  %vm13064_vm13 = vnez %v12977_v43  ;;  %v3261_v43 = vld [vmem:[#allocation2 + $0x99] sm:$0xff]  ;;  %v3271_v7 = vld [vmem:[#allocation2 + $0xe9] sm:$0xff] }
 0x24e   : > { %9327 = vmatprep.mubr.msk.bf16.mxu0 %vm13056_vm1, %v8047_v24  ;;  %vm13065_vm1 = vnez %v12979_v53  ;;  %v3264_v53 = vld [vmem:[#allocation2 + $0xb1] sm:$0xff]  ;;  %v8111_v5 = vpack.c.bf16 %v3272_v13, %v3271_v7 }
 0x24f   : > { %v8099_v3 = vpack.c.bf16 %v3264_v53, %v3263_v58 }
 0x255   : > { %9328 = vmatmul.mubr.msk.bf16.gmra.mrb[24].mxu0 %vm13057_vm7, %v8050_v26  ;;  %vm13066_vm7 = vnez %v12983_v10  ;;  %v3265_v10 = vld [vmem:[#allocation2 + $0xb9] sm:$0xff]  ;;  %v8114_v26 = vpack.c.bf16 %v3274_v28, %v3273_v44 }
 0x256   : > { %9331 = vmatprep.mubr.msk.bf16.mxu0 %vm13058_vm14, %v11864_v14  ;;  %v10500_v14 = vld [vmem:[#allocation5 + $0x230] sm:$0xff]   ;;  %vm13067_vm14 = vnez %v13040_v40  ;;  %v3268_v40 = vld [vmem:[#allocation2 + $0xd1] sm:$0xff]  ;;  %v8102_v46 = vpack.c.bf16 %v3266_v34, %v3265_v10 }
 0x257   : > { %v8105_v56 = vpack.c.bf16 %v3268_v40, %v3267_v45 }
 0x25d   : > { %9332 = vmatmul.mubr.msk.bf16.gmra.mrb[28].mxu0 %vm13059_vm8, %v8056_v60  ;;  %vm13068_vm8 = vnez %v13042_v0  ;;  %v3269_v0 = vld [vmem:[#allocation2 + $0xd9] sm:$0xff] }
 0x25e   : > { %9351 = vmatprep.mubr.bf16.mxu0 %v11869_v52  ;;  %v10501_v52 = vld [vmem:[#allocation5 + $0x238] sm:$0xff]   ;;  %v8108_v24 = vpack.c.bf16 %v3270_v62, %v3269_v0 }
 0x265   : > { %9352 = vmatmul.mubr.bf16.vlgmr.msra.gmra.mrb[0].mxu0 %v11871_v4  ;;  %v13060_v4 = vld [vmem:[#allocation38_spill] sm:$0xff] }
 0x266   : > { %9384 = vmatpush3.bf16.msra.mxu0 %v10494_v9  ;;  %9355 = vmatprep.mubr.bf16.mxu0 %v11875_v15  ;;  %v13061_v15 = vld [vmem:[#allocation39_spill] sm:$0xff]  ;;  %v8096_v9 = vpack.c.bf16 %v3262_v38, %v3261_v43 }
 0x267   : > { %9385 = vmatprep.subr.bf16.mxu0 %v10495_v18 }
 0x26a   : > { %9386 = vmatpush3.bf16.msra.mxu0 %v10495_v18 }
 0x26b   : > { %9387 = vmatprep.subr.bf16.mxu0 %v10496_v27 }
 0x26d   : > { %9356 = vmatmul.mubr.bf16.gmra.mrb[4].mxu0 %v11877_v29  ;;  %v12006_v29 = vld [vmem:[#allocation2 + $0x8] sm:$0xff] }
 0x26e   : > { %9359 = vmatprep.mubr.bf16.mxu0 %v11881_v35  ;;  %9388 = vmatpush3.bf16.msra.mxu0 %v10496_v27  ;;  %v3247_v35 = vld [vmem:[#allocation2 + $0x29] sm:$0xff] }
 0x26f   : > { %9389 = vmatprep.subr.bf16.mxu0 %v10497_v37 }
 0x272   : > { %9390 = vmatpush3.bf16.msra.mxu0 %v10497_v37 }
 0x273   : > { %9391 = vmatprep.subr.bf16.mxu0 %v10498_v47 }
 0x275   : > { %9360 = vmatmul.mubr.bf16.gmra.mrb[8].mxu0 %v11883_v36  ;;  %v3248_v36 = vld [vmem:[#allocation2 + $0x31] sm:$0xff] }
 0x276   : > { %9363 = vmatprep.mubr.bf16.mxu0 %v11887_v30  ;;  %9392 = vmatpush3.bf16.msra.mxu0 %v10498_v47  ;;  %v2988_v30 = vpack.c.bf16 %v12006_v29, %v12006_v29  ;;  %v8075_v41 = vpack.c.bf16 %v3248_v36, %v3247_v35 }
 0x277   : > { %9393 = vmatprep.subr.bf16.mxu0 %v10499_v54 }
 0x27a   : > { %9394 = vmatpush3.bf16.msra.mxu0 %v10499_v54 }
 0x27b   : > { %9395 = vmatprep.subr.bf16.mxu0 %v10500_v14 }
 0x27d   : > { %9364 = vmatmul.mubr.bf16.gmra.mrb[12].mxu0 %v13060_v4 }
 0x27e   : > { %9367 = vmatprep.mubr.bf16.mxu0 %v13061_v15  ;;  %9396 = vmatpush3.bf16.msra.mxu0 %v10500_v14 }
 0x27f   : > { %9397 = vmatprep.subr.bf16.mxu0 %v10501_v52 }
 0x282   : > { %9398 = vmatpush3.bf16.msra.mxu0 %v10501_v52 }
 0x283   : > { %9819 = vmatprep.subr.bf16.mxu0 %v12006_v29 }
 0x285   : > { %9368 = vmatmul.mubr.bf16.gmra.mrb[16].mxu0 %v11895_v59  ;;  %v3249_v59 = vld [vmem:[#allocation2 + $0x39] sm:$0xff] }
 0x286   : > { %9371 = vmatprep.mubr.bf16.mxu0 %v11899_v19  ;;  %v3250_v19 = vld [vmem:[#allocation2 + $0x41] sm:$0xff] }
 0x287   : > { %v8078_v17 = vpack.c.bf16 %v3250_v19, %v3249_v59 }
 0x28d   : > { %9372 = vmatmul.mubr.bf16.gmra.mrb[20].mxu0 %v11901_v20  ;;  %v3252_v20 = vld [vmem:[#allocation2 + $0x51] sm:$0xff] }
 0x28e   : > { %9375 = vmatprep.mubr.bf16.mxu0 %v11905_v61  ;;  %v8081_v61 = vpack.c.bf16 %v3252_v20, %v3251_v16 }
 0x295   : > { %9376 = vmatmul.mubr.bf16.gmra.mrb[24].mxu0 %v11907_v11  ;;  %v3253_v11 = vld [vmem:[#allocation2 + $0x59] sm:$0xff] }
 0x296   : > { %9379 = vmatprep.mubr.bf16.mxu0 %v11911_v21  ;;  %v3254_v21 = vld [vmem:[#allocation2 + $0x61] sm:$0xff] }
 0x297   : > { %v8084_v63 = vpack.c.bf16 %v3254_v21, %v3253_v11 }
 0x29d   : > { %9380 = vmatmul.mubr.bf16.gmra.mrb[28].mxu0 %v2988_v30 }
 0x29e   : > { %9399 = vmatprep.mubr.msk.bf16.mxu0 %vm13062_vm9, %v8075_v41 }
 0x2a5   : > { %9400 = vmatmul.mubr.msk.bf16.vlgmr.msra.gmra.mrb[0].mxu0 %vm13063_vm12, %v8078_v17 }
 0x2a6   : > { %9403 = vmatprep.mubr.msk.bf16.mxu0 %vm13064_vm13, %v8081_v61 }
 0x2ad   : > { %9404 = vmatmul.mubr.msk.bf16.gmra.mrb[4].mxu0 %vm13065_vm1, %v8084_v63 }
 0x2ae   : > { %9407 = vmatprep.mubr.msk.bf16.mxu0 %vm13066_vm7, %v8087_v42 }
 0x2b5   : > { %9408 = vmatmul.mubr.msk.bf16.gmra.mrb[8].mxu0 %vm13067_vm14, %v8090_v12 }
 0x2b6   : > { %9411 = vmatprep.mubr.msk.bf16.mxu0 %vm13068_vm8, %v8093_v33 }
 0x2bd   : > { %9412 = vmatmul.mubr.msk.bf16.gmra.mrb[12].mxu0 %vm13045_vm6, %v8096_v9 }
 0x2be   : > { %9415 = vmatprep.mubr.msk.bf16.mxu0 %vm13047_vm2, %v8099_v3 }
 0x2c5   : > { %9416 = vmatmul.mubr.msk.bf16.gmra.mrb[16].mxu0 %vm13048_vm3, %v8102_v46 }
 0x2c6   : > { %9419 = vmatprep.mubr.msk.bf16.mxu0 %vm13050_vm10, %v8105_v56 }
 0x2cd   : > { %9420 = vmatmul.mubr.msk.bf16.gmra.mrb[20].mxu0 %vm11765_vm4, %v8108_v24 }
 0x2ce   : > { %9423 = vmatprep.mubr.msk.bf16.mxu0 %vm11775_vm5, %v8111_v5 }
 0x2d5   : > { %9424 = vmatmul.mubr.msk.bf16.gmra.mrb[24].mxu0 %vm11787_vm11, %v8114_v26 }
 0x2d6   : > { %9427 = vmatprep.mubr.msk.bf16.mxu0 %vm11795_vm0, %v11959_v51 }
 0x2dd   : > { %9428 = vmatmul.mubr.msk.bf16.gmra.mrb[28].mxu0 %vm11810_vm15, %v8120_v23 }
 0x378   : > { %v9401_v50 = vpop.f32.mrb[0].mxu0 }
 0x379   : > { %v3594_v51 = vadd.f32 %v9401_v50, %v12062_v48  ;;  %v3426_v2 = vpop.f32.mrb[1].mxu0 }
 0x37a   : > { %v3592_v1 = vadd.f32 %v12062_v48, %v3426_v2  ;;  %v9402_v60 = vpop.f32.mrb[2].mxu0 }
 0x37b   : > { %v3626_v18 = vmax.f32 %v3594_v51, 0.0  ;;  %v3595_v39 = vadd.f32 %v9402_v60, %v12062_v48  ;;  %v3429_v27 = vpop.f32.mrb[3].mxu0 }
 0x37c   : > { %v3624_v37 = vmax.f32 %v3592_v1, 0.0  ;;  %v3593_v47 = vadd.f32 %v12062_v48, %v3429_v27 }
 0x37d   : > { %3658 = vst [vmem:[#allocation2 + $0x28] sm:$0xff] %v3626_v18  ;;  %v3627_v54 = vmax.f32 %v3595_v39, 0.0 }
 0x37e   : > { %3656 = vst [vmem:[#allocation2 + $0x18] sm:$0xff] %v3624_v37  ;;  %v3625_v14 = vmax.f32 %v3593_v47, 0.0 }
 0x37f   : > { %3659 = vst [vmem:[#allocation2 + $0x30] sm:$0xff] %v3627_v54 }
 0x380   : > { %3657 = vst [vmem:[#allocation2 + $0x20] sm:$0xff] %v3625_v14  ;;  %v9405_v52 = vpop.f32.mrb[4].mxu0 }
 0x381   : > { %v3598_v4 = vadd.f32 %v9405_v52, %v12062_v48  ;;  %v3442_v15 = vpop.f32.mrb[5].mxu0 }
 0x382   : > { %v3596_v35 = vadd.f32 %v12062_v48, %v3442_v15  ;;  %v9406_v36 = vpop.f32.mrb[6].mxu0 }
 0x383   : > { %v3630_v30 = vmax.f32 %v3598_v4, 0.0  ;;  %v12071_v41 = vadd.f32 %v9406_v36, %v12062_v48  ;;  %v3445_v59 = vpop.f32.mrb[7].mxu0 }
 0x384   : > { %v3628_v19 = vmax.f32 %v3596_v35, 0.0  ;;  %v3597_v16 = vadd.f32 %v12062_v48, %v3445_v59 }
 0x385   : > { %3662 = vst [vmem:[#allocation2 + $0x48] sm:$0xff] %v3630_v30  ;;  %v3631_v20 = vmax.f32 %v12071_v41, 0.0 }
 0x386   : > { %3660 = vst [vmem:[#allocation2 + $0x38] sm:$0xff] %v3628_v19  ;;  %v3629_v17 = vmax.f32 %v3597_v16, 0.0  ;;  %v3690_v61 = vld [vmem:[#allocation2 + $0x29] sm:$0xff] }
 0x387   : > { %3663 = vst [vmem:[#allocation2 + $0x50] sm:$0xff] %v3631_v20  ;;  %v3688_v11 = vld [vmem:[#allocation2 + $0x19] sm:$0xff]  ;;  %v3722_v21 = vmax.f32 %v3626_v18, %v3690_v61  ;;  %v3689_v25 = vld [vmem:[#allocation2 + $0x21] sm:$0xff] }
 0x388   : > { %3661 = vst [vmem:[#allocation2 + $0x40] sm:$0xff] %v3629_v17  ;;  %v9409_v6 = vpop.f32.mrb[8].mxu0  ;;  %v3720_v32 = vmax.f32 %v3624_v37, %v3688_v11  ;;  %v3721_v3 = vmax.f32 %v3625_v14, %v3689_v25 }
 0x389   : > { %v3602_v63 = vadd.f32 %v9409_v6, %v12062_v48  ;;  %v3458_v42 = vpop.f32.mrb[9].mxu0 }
 0x38a   : > { %v3600_v8 = vadd.f32 %v12062_v48, %v3458_v42  ;;  %v9410_v55 = vpop.f32.mrb[10].mxu0  ;;  %v3818_v57 = vmax.f32 %v3720_v32, %v3722_v21 }
 0x38b   : > { %v3634_v12 = vmax.f32 %v3602_v63, 0.0  ;;  %v12078_v33 = vadd.f32 %v9410_v55, %v12062_v48  ;;  %v3461_v43 = vpop.f32.mrb[11].mxu0 }
 0x38c   : > { %v3632_v38 = vmax.f32 %v3600_v8, 0.0  ;;  %v3601_v58 = vadd.f32 %v12062_v48, %v3461_v43 }
 0x38d   : > { %3666 = vst [vmem:[#allocation2 + $0x68] sm:$0xff] %v3634_v12  ;;  %v3635_v53 = vmax.f32 %v12078_v33, 0.0  ;;  %v3691_v9 = vld [vmem:[#allocation2 + $0x31] sm:$0xff] }
 0x38e   : > { %3664 = vst [vmem:[#allocation2 + $0x58] sm:$0xff] %v3632_v38  ;;  %v3633_v10 = vmax.f32 %v3601_v58, 0.0  ;;  %v3723_v34 = vmax.f32 %v3627_v54, %v3691_v9  ;;  %v3694_v45 = vld [vmem:[#allocation2 + $0x49] sm:$0xff] }
 0x38f   : > { %v3693_v40 = vld [vmem:[#allocation2 + $0x41] sm:$0xff]  ;;  %3667 = vst [vmem:[#allocation2 + $0x70] sm:$0xff] %v3635_v53  ;;  %v3692_v46 = vld [vmem:[#allocation2 + $0x39] sm:$0xff]  ;;  %v3790_v56 = vmax.f32 %v3630_v30, %v3694_v45 }
 0x390   : > { %v3725_v0 = vmax.f32 %v3629_v17, %v3693_v40  ;;  %3665 = vst [vmem:[#allocation2 + $0x60] sm:$0xff] %v3633_v10  ;;  %v9413_v62 = vpop.f32.mrb[12].mxu0  ;;  %v3819_v7 = vmax.f32 %v3721_v3, %v3723_v34  ;;  %v3788_v13 = vmax.f32 %v3628_v19, %v3692_v46 }
 0x391   : > { %v3606_v24 = vadd.f32 %v9413_v62, %v12062_v48  ;;  %v3474_v5 = vpop.f32.mrb[13].mxu0 }
 0x392   : > { %v3604_v44 = vadd.f32 %v12062_v48, %v3474_v5  ;;  %v9414_v28 = vpop.f32.mrb[14].mxu0  ;;  %v12086_v26 = vpack.c.bf16 %v3819_v7, %v3818_v57  ;;  %v3820_v23 = vmax.f32 %v3722_v21, %v3788_v13  ;;  %v3821_v49 = vmax.f32 %v3723_v34, %v3725_v0 }
 0x393   : > { %v3638_v50 = vmax.f32 %v3606_v24, 0.0  ;;  %v12089_v51 = vadd.f32 %v9414_v28, %v12062_v48  ;;  %v3477_v2 = vpop.f32.mrb[15].mxu0  ;;  %v3822_v1 = vmax.f32 %v3788_v13, %v3790_v56 }
 0x394   : > { %v3636_v60 = vmax.f32 %v3604_v44, 0.0  ;;  %v3605_v18 = vadd.f32 %v12062_v48, %v3477_v2  ;;  %v12092_v39 = vpack.c.bf16 %v3821_v49, %v3820_v23 }
 0x395   : > { %3670 = vst [vmem:[#allocation2 + $0x88] sm:$0xff] %v3638_v50  ;;  %v3639_v27 = vmax.f32 %v12089_v51, 0.0  ;;  %v3695_v37 = vld [vmem:[#allocation2 + $0x51] sm:$0xff] }
 0x396   : > { %3668 = vst [vmem:[#allocation2 + $0x78] sm:$0xff] %v3636_v60  ;;  %v3637_v47 = vmax.f32 %v3605_v18, 0.0  ;;  %v3791_v54 = vmax.f32 %v3631_v20, %v3695_v37  ;;  %v3698_v14 = vld [vmem:[#allocation2 + $0x69] sm:$0xff] }
 0x397   : > { %v3697_v52 = vld [vmem:[#allocation2 + $0x61] sm:$0xff]  ;;  %3671 = vst [vmem:[#allocation2 + $0x90] sm:$0xff] %v3639_v27  ;;  %v3696_v4 = vld [vmem:[#allocation2 + $0x59] sm:$0xff]  ;;  %v3794_v15 = vmax.f32 %v3634_v12, %v3698_v14 }
 0x398   : > { %v3729_v35 = vmax.f32 %v3633_v10, %v3697_v52  ;;  %3669 = vst [vmem:[#allocation2 + $0x80] sm:$0xff] %v3637_v47  ;;  %v9417_v36 = vpop.f32.mrb[16].mxu0  ;;  %v3823_v30 = vmax.f32 %v3725_v0, %v3791_v54  ;;  %v3792_v41 = vmax.f32 %v3632_v38, %v3696_v4 }
 0x399   : > { %v3610_v59 = vadd.f32 %v9417_v36, %v12062_v48  ;;  %v3490_v19 = vpop.f32.mrb[17].mxu0 }
 0x39a   : > { %v3608_v16 = vadd.f32 %v12062_v48, %v3490_v19  ;;  %v9418_v17 = vpop.f32.mrb[18].mxu0  ;;  %v12099_v61 = vpack.c.bf16 %v3823_v30, %v3822_v1  ;;  %v3824_v20 = vmax.f32 %v3790_v56, %v3792_v41  ;;  %v3825_v11 = vmax.f32 %v3791_v54, %v3729_v35 }
 0x39b   : > { %v3642_v21 = vmax.f32 %v3610_v59, 0.0  ;;  %v12102_v6 = vadd.f32 %v9418_v17, %v12062_v48  ;;  %v3493_v32 = vpop.f32.mrb[19].mxu0  ;;  %v3826_v63 = vmax.f32 %v3792_v41, %v3794_v15 }
 0x39c   : > { %v3640_v42 = vmax.f32 %v3608_v16, 0.0  ;;  %v3609_v8 = vadd.f32 %v12062_v48, %v3493_v32  ;;  %v12105_v55 = vpack.c.bf16 %v3825_v11, %v3824_v20 }
 0x39d   : > { %3674 = vst [vmem:[#allocation2 + $0xa8] sm:$0xff] %v3642_v21  ;;  %v3643_v57 = vmax.f32 %v12102_v6, 0.0  ;;  %v3699_v25 = vld [vmem:[#allocation2 + $0x71] sm:$0xff] }
 0x39e   : > { %3672 = vst [vmem:[#allocation2 + $0x98] sm:$0xff] %v3640_v42  ;;  %v3641_v12 = vmax.f32 %v3609_v8, 0.0  ;;  %v3795_v43 = vmax.f32 %v3635_v53, %v3699_v25  ;;  %v3702_v38 = vld [vmem:[#allocation2 + $0x89] sm:$0xff] }
 0x39f   : > { %v3701_v58 = vld [vmem:[#allocation2 + $0x81] sm:$0xff]  ;;  %3675 = vst [vmem:[#allocation2 + $0xb0] sm:$0xff] %v3643_v57  ;;  %v3700_v9 = vld [vmem:[#allocation2 + $0x79] sm:$0xff]  ;;  %v3798_v3 = vmax.f32 %v3638_v50, %v3702_v38 }
 0x3a0   : > { %v3733_v10 = vmax.f32 %v3637_v47, %v3701_v58  ;;  %3673 = vst [vmem:[#allocation2 + $0xa0] sm:$0xff] %v3641_v12  ;;  %v9421_v34 = vpop.f32.mrb[20].mxu0  ;;  %v3827_v45 = vmax.f32 %v3729_v35, %v3795_v43  ;;  %v3796_v40 = vmax.f32 %v3636_v60, %v3700_v9 }
 0x3a1   : > { %v3614_v46 = vadd.f32 %v9421_v34, %v12062_v48  ;;  %v3506_v56 = vpop.f32.mrb[21].mxu0 }
 0x3a2   : > { %v3612_v0 = vadd.f32 %v12062_v48, %v3506_v56  ;;  %v9422_v62 = vpop.f32.mrb[22].mxu0  ;;  %v12114_v33 = vpack.c.bf16 %v3827_v45, %v3826_v63  ;;  %v3828_v53 = vmax.f32 %v3794_v15, %v3796_v40  ;;  %v3829_v7 = vmax.f32 %v3795_v43, %v3733_v10 }
 0x3a3   : > { %v3646_v13 = vmax.f32 %v3614_v46, 0.0  ;;  %v12117_v24 = vadd.f32 %v9422_v62, %v12062_v48  ;;  %v3509_v5 = vpop.f32.mrb[23].mxu0  ;;  %v3830_v44 = vmax.f32 %v3796_v40, %v3798_v3 }
 0x3a4   : > { %v3644_v28 = vmax.f32 %v3612_v0, 0.0  ;;  %v3613_v23 = vadd.f32 %v12062_v48, %v3509_v5  ;;  %v12120_v49 = vpack.c.bf16 %v3829_v7, %v3828_v53 }
 0x3a5   : > { %3678 = vst [vmem:[#allocation2 + $0xc8] sm:$0xff] %v3646_v13  ;;  %v3647_v50 = vmax.f32 %v12117_v24, 0.0  ;;  %v3703_v2 = vld [vmem:[#allocation2 + $0x91] sm:$0xff]  ;;  %v3817_v24 = vmax.f32 %v12006_v29, %v12050_v22 }
 0x3a6   : > { %3676 = vst [vmem:[#allocation2 + $0xb8] sm:$0xff] %v3644_v28  ;;  %v3645_v1 = vmax.f32 %v3613_v23, 0.0  ;;  %v3706_v60 = vld [vmem:[#allocation2 + $0xa9] sm:$0xff]  ;;  %v3799_v18 = vmax.f32 %v3639_v27, %v3703_v2 }
 0x3a7   : > { %v3705_v37 = vld [vmem:[#allocation2 + $0xa1] sm:$0xff]  ;;  %3679 = vst [vmem:[#allocation2 + $0xd0] sm:$0xff] %v3647_v50  ;;  %v3704_v47 = vld [vmem:[#allocation2 + $0x99] sm:$0xff]  ;;  %v3738_v54 = vmax.f32 %v3642_v21, %v3706_v60 }
 0x3a8   : > { %v3737_v14 = vmax.f32 %v3641_v12, %v3705_v37  ;;  %3677 = vst [vmem:[#allocation2 + $0xc0] sm:$0xff] %v3645_v1  ;;  %v9425_v52 = vpop.f32.mrb[24].mxu0  ;;  %v3736_v4 = vmax.f32 %v3640_v42, %v3704_v47  ;;  %v3831_v15 = vmax.f32 %v3733_v10, %v3799_v18 }
 0x3a9   : > { %v3618_v35 = vadd.f32 %v9425_v52, %v12062_v48  ;;  %v3522_v36 = vpop.f32.mrb[25].mxu0 }
 0x3aa   : > { %v3616_v30 = vadd.f32 %v12062_v48, %v3522_v36  ;;  %v9426_v41 = vpop.f32.mrb[26].mxu0  ;;  %v3834_v59 = vmax.f32 %v3736_v4, %v3738_v54  ;;  %v12129_v51 = vpack.c.bf16 %v3831_v15, %v3830_v44  ;;  %v3832_v27 = vmax.f32 %v3798_v3, %v3736_v4 }
 0x3ab   : > { %v3650_v19 = vmax.f32 %v3618_v35, 0.0  ;;  %v12132_v16 = vadd.f32 %v9426_v41, %v12062_v48  ;;  %v3525_v17 = vpop.f32.mrb[27].mxu0  ;;  %v3833_v20 = vmax.f32 %v3799_v18, %v3737_v14 }
 0x3ac   : > { %v3648_v11 = vmax.f32 %v3616_v30, 0.0  ;;  %v3617_v21 = vadd.f32 %v12062_v48, %v3525_v17  ;;  %v3816_v30 = vmax.f32 %v12006_v29, %v12048_v31 }
 0x3ad   : > { %3682 = vst [vmem:[#allocation2 + $0xe8] sm:$0xff] %v3650_v19  ;;  %v3651_v32 = vmax.f32 %v12132_v16, 0.0  ;;  %v3707_v63 = vld [vmem:[#allocation2 + $0xb1] sm:$0xff]  ;;  %v12136_v42 = vpack.c.bf16 %v3833_v20, %v3832_v27 }
 0x3ae   : > { %3680 = vst [vmem:[#allocation2 + $0xd8] sm:$0xff] %v3648_v11  ;;  %v3649_v8 = vmax.f32 %v3617_v21, 0.0  ;;  %v3739_v25 = vmax.f32 %v3643_v57, %v3707_v63  ;;  %v3710_v12 = vld [vmem:[#allocation2 + $0xc9] sm:$0xff] }
 0x3af   : > { %v3709_v43 = vld [vmem:[#allocation2 + $0xc1] sm:$0xff]  ;;  %3683 = vst [vmem:[#allocation2 + $0xf0] sm:$0xff] %v3651_v32  ;;  %v3708_v38 = vld [vmem:[#allocation2 + $0xb9] sm:$0xff]  ;;  %v3806_v58 = vmax.f32 %v3646_v13, %v3710_v12 }
 0x3b0   : > { %v3741_v9 = vmax.f32 %v3645_v1, %v3709_v43  ;;  %3681 = vst [vmem:[#allocation2 + $0xe0] sm:$0xff] %v3649_v8  ;;  %v9429_v3 = vpop.f32.mrb[28].mxu0  ;;  %v3835_v10 = vmax.f32 %v3737_v14, %v3739_v25  ;;  %v3804_v34 = vmax.f32 %v3644_v28, %v3708_v38 }
 0x3b1   : > { %v3622_v45 = vadd.f32 %v9429_v3, %v12062_v48  ;;  %v3538_v40 = vpop.f32.mrb[29].mxu0  ;;  %v10508_v3 = vld [vmem:[%s12786_s3 + $0x24] ss:$8 sps:$4 sm:$0xff]  }
 0x3b2   : > { %v3620_v46 = vadd.f32 %v12062_v48, %v3538_v40  ;;  %v9430_v56 = vpop.f32.mrb[30].mxu0  ;;  %v3866_v0 = vpack.c.bf16 %v3835_v10, %v3834_v59  ;;  %v3836_v62 = vmax.f32 %v3738_v54, %v3804_v34  ;;  %v3837_v6 = vmax.f32 %v3739_v25, %v3741_v9  ;;  %v10511_v10 = vld [vmem:[%s12786_s3 + $0x34] ss:$8 sps:$4 sm:$0xff]  }
 0x3b3   : > { %v3654_v57 = vmax.f32 %v3622_v45, 0.0  ;;  %v3623_v53 = vadd.f32 %v9430_v56, %v12062_v48  ;;  %v3541_v7 = vpop.f32.mrb[31].mxu0  ;;  %v3838_v5 = vmax.f32 %v3804_v34, %v3806_v58  ;;  %v10513_v34 = vld [vmem:[%s12786_s3 + $0x30] ss:$8 sps:$4 sm:$0xff]   ;;  %v10517_v45 = vld [vmem:[#allocation8 + $0x58] sm:$0xff]   ;;  %v10520_v56 = vld [vmem:[#allocation8 + $0x70] sm:$0xff]  }
 0x3b4   : > { %v3652_v13 = vmax.f32 %v3620_v46, 0.0  ;;  %v3621_v44 = vadd.f32 %v12062_v48, %v3541_v7  ;;  %8682 = vmatprep.subr.bf16.mxu1 %v3866_v0  ;;  %v3867_v23 = vpack.c.bf16 %v3837_v6, %v3836_v62  ;;  %v10518_v40 = vld [vmem:[#allocation8 + $0x60] sm:$0xff]   ;;  %v10519_v46 = vld [vmem:[#allocation8 + $0x68] sm:$0xff]   ;;  %v10521_v0 = vld [vmem:[#allocation8 + $0x78] sm:$0xff]  }
 0x3b5   : > { %3686 = vst [vmem:[#allocation2 + $0x108] sm:$0xff] %v3654_v57  ;;  %v3655_v28 = vmax.f32 %v3623_v53, 0.0  ;;  %8683 = vmatpush3.bf16.msra.mxu1 %v12086_v26  ;;  %v3711_v2 = vld [vmem:[#allocation2 + $0xd1] sm:$0xff] }
 0x3b6   : > { %3684 = vst [vmem:[#allocation2 + $0xf8] sm:$0xff] %v3652_v13  ;;  %v3653_v1 = vmax.f32 %v3621_v44, 0.0  ;;  %8684 = vmatprep.subr.bf16.mxu1 %v3867_v23  ;;  %v3807_v60 = vmax.f32 %v3647_v50, %v3711_v2  ;;  %v3714_v18 = vld [vmem:[#allocation2 + $0xe9] sm:$0xff] }
 0x3b7   : > { %v3713_v37 = vld [vmem:[#allocation2 + $0xe1] sm:$0xff]  ;;  %3687 = vst [vmem:[#allocation2 + $0x110] sm:$0xff] %v3655_v28  ;;  %v3712_v47 = vld [vmem:[#allocation2 + $0xd9] sm:$0xff]  ;;  %v3810_v54 = vmax.f32 %v3650_v19, %v3714_v18  ;;  %v10522_v62 = vld [vmem:[#allocation8] sm:$0xff]  }
 0x3b8   : > { %v3745_v14 = vmax.f32 %v3649_v8, %v3713_v37  ;;  %3685 = vst [vmem:[#allocation2 + $0x100] sm:$0xff] %v3653_v1  ;;  %v3839_v48 = vmax.f32 %v3741_v9, %v3807_v60  ;;  %v3808_v52 = vmax.f32 %v3648_v11, %v3712_v47  ;;  %v10505_v9 = vld [vmem:[%s12786_s3 + $0x14] ss:$8 sps:$4 sm:$0xff]  }
 0x3b9   : > { %8685 = vmatpush3.bf16.msra.mxu1 %v12092_v39 }
 0x3ba   : > { %v3868_v4 = vpack.c.bf16 %v3839_v48, %v3838_v5  ;;  %v3840_v26 = vmax.f32 %v3806_v58, %v3808_v52  ;;  %v3841_v15 = vmax.f32 %v3807_v60, %v3745_v14  ;;  %v3842_v35 = vmax.f32 %v3808_v52, %v3810_v54  ;;  %v10502_v58 = vld [vmem:[%s12786_s3] ss:$8 sps:$4 sm:$0xff]  }
 0x3bb   : > { %v10524_v48 = vld [vmem:[#allocation8 + $0x10] sm:$0xff]  }
 0x3bc   : > { %8686 = vmatprep.subr.bf16.mxu1 %v3868_v4  ;;  %v3869_v36 = vpack.c.bf16 %v3841_v15, %v3840_v26 }
 0x3bd   : > { %8687 = vmatpush3.bf16.msra.mxu1 %v12099_v61  ;;  %v3715_v50 = vld [vmem:[#allocation2 + $0xf1] sm:$0xff] }
 0x3be   : > { %v3719_v41 = vld [vmem:[#allocation2 + $0x111] sm:$0xff]  ;;  %8688 = vmatprep.subr.bf16.mxu1 %v3869_v36  ;;  %v3811_v59 = vmax.f32 %v3651_v32, %v3715_v50  ;;  %v3718_v27 = vld [vmem:[#allocation2 + $0x109] sm:$0xff] }
 0x3bf   : > { %v3751_v39 = vmax.f32 %v3655_v28, %v3719_v41  ;;  %v3717_v19 = vld [vmem:[#allocation2 + $0x101] sm:$0xff]  ;;  %v3716_v16 = vld [vmem:[#allocation2 + $0xf9] sm:$0xff]  ;;  %v3814_v17 = vmax.f32 %v3654_v57, %v3718_v27 }
 0x3c0   : > { %v3749_v20 = vmax.f32 %v3653_v1, %v3717_v19  ;;  %v3843_v11 = vmax.f32 %v3745_v14, %v3811_v59  ;;  %v3812_v21 = vmax.f32 %v3652_v13, %v3716_v16  ;;  %v13069_v50 = vld [vmem:[#allocation25_spill] sm:$0xff]  ;;  %v10526_v19 = vld [vmem:[#allocation8 + $0x20] sm:$0xff]  }
 0x3c1   : > { %v3849_v63 = vmax.f32 %v3751_v39, %v3817_v24  ;;  %8689 = vmatpush3.bf16.msra.mxu1 %v12105_v55  ;;  %v3848_v22 = vmax.f32 %v3814_v17, %v3816_v30  ;;  %v10514_v55 = vld [vmem:[#allocation8 + $0x40] sm:$0xff]   ;;  %v10525_v24 = vld [vmem:[#allocation8 + $0x18] sm:$0xff]   ;;  %v3991_v30 = vand.u32 7, %v13069_v50  ;;  %v13070_v41 = vld [vmem:[#allocation29_spill] sm:$0xff] }
 0x3c2   : > { %v3847_v61 = vmax.f32 %v3749_v20, %v3751_v39  ;;  %v3870_v8 = vpack.c.bf16 %v3843_v11, %v3842_v35  ;;  %v3844_v25 = vmax.f32 %v3810_v54, %v3812_v21  ;;  %v3845_v12 = vmax.f32 %v3811_v59, %v3749_v20  ;;  %v4015_v11 = vld [vmem:[#allocation3 + $0x7] sm:$0xff] }
 0x3c3   : > { %v3846_v31 = vmax.f32 %v3812_v21, %v3814_v17  ;;  %v3873_v43 = vpack.c.bf16 %v3849_v63, %v3848_v22  ;;  %v3992_v59 = vand.u32 7, %v13070_v41  ;;  %vm3999_vm2 = vcmp.ge.s32.totalorder %v3991_v30, 1 }
 0x3c4   : > { %8690 = vmatprep.subr.bf16.mxu1 %v3870_v8  ;;  %v3871_v32 = vpack.c.bf16 %v3845_v12, %v3844_v25  ;;  %v10527_v25 = vld [vmem:[#allocation8 + $0x28] sm:$0xff]   ;;  %vm4007_vm13 = vcmp.le.s32.totalorder %v3991_v30, 6  ;;  %v10572_v8 = vld [vmem:[#allocation8 + $0x1d0] sm:$0xff]  }
 0x3c5   : > { %8691 = vmatpush3.bf16.msra.mxu1 %v12114_v33  ;;  %v3872_v38 = vpack.c.bf16 %v3847_v61, %v3846_v31  ;;  %v10515_v33 = vld [vmem:[#allocation8 + $0x48] sm:$0xff]   ;;  %vm4000_vm10 = vcmp.ge.s32.totalorder %v3992_v59, 1  ;;  %vm4008_vm1 = vcmp.le.s32.totalorder %v3992_v59, 6  ;;  %v10536_v59 = vld [vmem:[#allocation8 + $0xb0] sm:$0xff]  }
 0x3c6   : > { %8692 = vmatprep.subr.bf16.mxu1 %v3871_v32  ;;  %vm12232_vm5 = vmpackc.low %vm4000_vm10, %vm3999_vm2  ;;  %v10529_v32 = vld [vmem:[#allocation8 + $0x38] sm:$0xff]   ;;  %v10535_v30 = vld [vmem:[#allocation8 + $0xa8] sm:$0xff]  }
 0x3c7   : > { %vm12297_vm14 = vmpackc.low %vm4008_vm1, %vm4007_vm13 }
 0x3c9   : > { %8693 = vmatpush3.bf16.msra.mxu1 %v12120_v49  ;;  %v10516_v49 = vld [vmem:[#allocation8 + $0x50] sm:$0xff]  }
 0x3ca   : > { %8694 = vmatprep.subr.bf16.mxu1 %v3872_v38  ;;  %v13073_v38 = vld [vmem:[#allocation26_spill] sm:$0xff] }
 0x3cd   : > { %8695 = vmatpush3.bf16.msra.mxu1 %v12129_v51  ;;  %v10507_v51 = vld [vmem:[%s12786_s3 + $0x10] ss:$8 sps:$4 sm:$0xff]  }
 0x3ce   : > { %8696 = vmatprep.subr.bf16.mxu1 %v3873_v43  ;;  %v10528_v43 = vld [vmem:[#allocation8 + $0x30] sm:$0xff]  }
 0x3d1   : > { %8697 = vmatpush3.bf16.msra.mxu1 %v12136_v42  ;;  %v10510_v42 = vld [vmem:[%s12786_s3 + $0x20] ss:$8 sps:$4 sm:$0xff]  }
 0x3d2   : > { %9431 = vmatprep.subr.bf16.mxu1 %v10514_v55 }
 0x3d4   : > { %3947 = vmatmul.mubr.bf16.vlgmr.msra.gmra.mrb[0].mxu1 %v10502_v58  ;;  %v13074_v58 = vld [vmem:[#allocation30_spill] sm:$0xff] }
 0x3d5   : > { %3954 = vmatprep.mubr.bf16.mxu1 %v10505_v9  ;;  %9432 = vmatpush3.bf16.msra.mxu1 %v10514_v55  ;;  %v3993_v55 = vand.u32 7, %v13073_v38  ;;  %v3994_v9 = vand.u32 7, %v13074_v58 }
 0x3d6   : > { %9433 = vmatprep.subr.bf16.mxu1 %v10515_v33 }
 0x3d7   : > { %vm4001_vm4 = vcmp.ge.s32.totalorder %v3993_v55, 1  ;;  %vm4002_vm11 = vcmp.ge.s32.totalorder %v3994_v9, 1  ;;  %vm4009_vm8 = vcmp.le.s32.totalorder %v3993_v55, 6  ;;  %vm4010_vm2 = vcmp.le.s32.totalorder %v3994_v9, 6  ;;  %v10540_v55 = vld [vmem:[#allocation8 + $0xd0] sm:$0xff]  }
 0x3d8   : > { %vm12253_vm6 = vmpackc.low %vm4002_vm11, %vm4001_vm4 }
 0x3d9   : > { %9434 = vmatpush3.bf16.msra.mxu1 %v10515_v33  ;;  %v13075_v33 = vld [vmem:[#allocation27_spill] sm:$0xff]  ;;  %vm12313_vm11 = vmpackc.low %vm4010_vm2, %vm4009_vm8  ;;  %vm7588_vm2 = vcmask 130048  }
 0x3da   : > { %9435 = vmatprep.subr.bf16.mxu1 %v10516_v49 }
 0x3dc   : > { %3955 = vmatmul.mubr.bf16.gmra.mrb[4].mxu1 %v10507_v51  ;;  %v13076_v51 = vld [vmem:[#allocation31_spill] sm:$0xff] }
 0x3dd   : > { %3962 = vmatprep.mubr.bf16.mxu1 %v10508_v3  ;;  %9436 = vmatpush3.bf16.msra.mxu1 %v10516_v49  ;;  %v3995_v49 = vand.u32 7, %v13075_v33  ;;  %v3996_v3 = vand.u32 7, %v13076_v51  ;;  %v10541_v51 = vld [vmem:[#allocation8 + $0xd8] sm:$0xff]   ;;  %v10596_v33 = vld [vmem:[#allocation10 + $0x220] sm:$0xff]  }
 0x3de   : > { %9437 = vmatprep.subr.bf16.mxu1 %v10517_v45 }
 0x3df   : > { %vm4003_vm0 = vcmp.ge.s32.totalorder %v3995_v49, 1  ;;  %vm4004_vm15 = vcmp.ge.s32.totalorder %v3996_v3, 1  ;;  %vm4011_vm10 = vcmp.le.s32.totalorder %v3995_v49, 6  ;;  %vm4012_vm4 = vcmp.le.s32.totalorder %v3996_v3, 6 }
 0x3e0   : > { %vm12263_vm3 = vmpackc.low %vm4004_vm15, %vm4003_vm0 }
 0x3e1   : > { %9438 = vmatpush3.bf16.msra.mxu1 %v10517_v45  ;;  %vm12323_vm0 = vmpackc.low %vm4012_vm4, %vm4011_vm10 }
 0x3e2   : > { %9439 = vmatprep.subr.bf16.mxu1 %v10518_v40 }
 0x3e4   : > { %3963 = vmatmul.mubr.bf16.gmra.mrb[8].mxu1 %v10510_v42  ;;  %v10530_v42 = vld [vmem:[#allocation8 + $0x80] sm:$0xff]  }
 0x3e5   : > { %3970 = vmatprep.mubr.bf16.mxu1 %v10511_v10  ;;  %9440 = vmatpush3.bf16.msra.mxu1 %v10518_v40  ;;  %v10574_v40 = vld [vmem:[#allocation8 + $0x1e0] sm:$0xff]  }
 0x3e6   : > { %9441 = vmatprep.subr.bf16.mxu1 %v10519_v46 }
 0x3e9   : > { %9442 = vmatpush3.bf16.msra.mxu1 %v10519_v46 }
 0x3ea   : > { %9443 = vmatprep.subr.bf16.mxu1 %v10520_v56 }
 0x3ec   : > { %3971 = vmatmul.mubr.bf16.gmra.mrb[12].mxu1 %v10513_v34 }
 0x3ed   : > { %9444 = vmatpush3.bf16.msra.mxu1 %v10520_v56 }
 0x3ee   : > { %9445 = vmatprep.subr.bf16.mxu1 %v10521_v0 }
 0x3f1   : > { %9446 = vmatpush3.bf16.msra.mxu1 %v10521_v0  ;;  %v10575_v0 = vld [vmem:[#allocation8 + $0x1e8] sm:$0xff]  }
 0x3f2   : > { %9455 = vmatprep.subr.bf16.mxu1 %v10522_v62 }
 0x4a7   : > { %v8698_v6 = vpop.f32.mrb[0].mxu1 }
 0x4a8   : > { %v8699_v57 = vpop.f32.mrb[1].mxu1 }
 0x4a9   : > { %v12179_v53 = vadd.f32 %v8699_v57, %v8698_v6  ;;  %v8701_v7 = vpop.f32.mrb[2].mxu1  ;;  %v13081_v6 = vld [vmem:[#allocation28_spill] sm:$0xff] }
 0x4aa   : > { %v8702_v5 = vpop.f32.mrb[3].mxu1  ;;  %v3997_v57 = vand.u32 7, %v13081_v6  ;;  %v10544_v6 = vld [vmem:[#allocation8 + $0xf0] sm:$0xff]  }
 0x4ab   : > { %3983 = vst [vmem:[#allocation3 + $0x10] sm:$0xff] %v12179_v53  ;;  %v12182_v13 = vadd.f32 %v8702_v5, %v8701_v7  ;;  %v4059_v44 = vpack.c.bf16 %v12179_v53, %v12006_v29  ;;  %v10523_v29 = vld [vmem:[#allocation8 + $0x8] sm:$0xff]   ;;  %v13082_v7 = vld [vmem:[#allocation32_spill] sm:$0xff] }
 0x4ac   : > { %v3998_v5 = vand.u32 7, %v13082_v7  ;;  %vm4005_vm9 = vcmp.ge.s32.totalorder %v3997_v57, 1  ;;  %vm4013_vm15 = vcmp.le.s32.totalorder %v3997_v57, 6  ;;  %v10545_v57 = vld [vmem:[#allocation8 + $0xf8] sm:$0xff]   ;;  %v10547_v7 = vld [vmem:[#allocation8 + $0x108] sm:$0xff]  }
 0x4ad   : > { %3984 = vst [vmem:[#allocation3 + $0x18] sm:$0xff] %v12182_v13  ;;  %9447 = vmatprep.mubr.bf16.mxu1 %v4059_v44  ;;  %v4630_v23 = vpack.c.bf16 %v12182_v13, %v12179_v53  ;;  %v10556_v53 = vld [vmem:[#allocation8 + $0x150] sm:$0xff]  }
 0x4ae   : > { %vm4006_vm12 = vcmp.ge.s32.totalorder %v3998_v5, 1 }
 0x4af   : > { %v8704_v28 = vpop.f32.mrb[4].mxu1  ;;  %vm12289_vm7 = vmpackc.low %vm4006_vm12, %vm4005_vm9  ;;  %vm4014_vm9 = vcmp.le.s32.totalorder %v3998_v5, 6 }
 0x4b0   : > { %v8705_v2 = vpop.f32.mrb[5].mxu1  ;;  %vm12341_vm12 = vmpackc.low %vm4014_vm9, %vm4013_vm15 }
 0x4b1   : > { %v12189_v1 = vadd.f32 %v8705_v2, %v8704_v28  ;;  %v8707_v60 = vpop.f32.mrb[6].mxu1  ;;  %v10532_v28 = vld [vmem:[#allocation8 + $0x90] sm:$0xff]  }
 0x4b2   : > { %v8708_v18 = vpop.f32.mrb[7].mxu1  ;;  %v12223_v21 = vld [vmem:[#allocation3 + $0xf] sm:$0xff] }
 0x4b3   : > { %3985 = vst [vmem:[#allocation3 + $0x20] sm:$0xff] %v12189_v1  ;;  %v12192_v37 = vadd.f32 %v8708_v18, %v8707_v60  ;;  %v12196_v47 = vpack.c.bf16 %v12189_v1, %v12182_v13  ;;  %v8148_v12 = vpack.c.bf16 %v12223_v21, %v4015_v11  ;;  %v10557_v13 = vld [vmem:[#allocation8 + $0x158] sm:$0xff]  }
 0x4b4   : > { %v12251_v45 = vld [vmem:[#allocation3 + $0x17] sm:$0xff] }
 0x4b5   : > { %3986 = vst [vmem:[#allocation3 + $0x28] sm:$0xff] %v12192_v37  ;;  %9448 = vmatmul.mubr.bf16.vlgmr.msra.gmra.mrb[16].mxu1 %v12196_v47  ;;  %v4631_v54 = vpack.c.bf16 %v12192_v37, %v12189_v1  ;;  %v12285_v60 = vld [vmem:[#allocation3 + $0x11] sm:$0xff]  ;;  %v8188_v3 = vpack.c.bf16 %v12251_v45, %v12223_v21  ;;  %v10546_v21 = vld [vmem:[#allocation8 + $0x100] sm:$0xff]  }
 0x4b6   : > { %9456 = vmatpush3.bf16.msra.mxu1 %v10522_v62  ;;  %v10531_v62 = vld [vmem:[#allocation8 + $0x88] sm:$0xff]   ;;  %v10558_v1 = vld [vmem:[#allocation8 + $0x160] sm:$0xff]  }
 0x4b7   : > { %v8710_v14 = vpop.f32.mrb[8].mxu1  ;;  %9457 = vmatprep.subr.bf16.mxu1 %v10523_v29 }
 0x4b8   : > { %v8711_v52 = vpop.f32.mrb[9].mxu1 }
 0x4b9   : > { %v12202_v4 = vadd.f32 %v8711_v52, %v8710_v14  ;;  %v8713_v26 = vpop.f32.mrb[10].mxu1 }
 0x4ba   : > { %v8714_v15 = vpop.f32.mrb[11].mxu1  ;;  %9458 = vmatpush3.bf16.msra.mxu1 %v10523_v29  ;;  %v12247_v10 = vld [vmem:[#allocation3 + $0x1f] sm:$0xff]  ;;  %v10579_v29 = vld [vmem:[#allocation8 + $0x208] sm:$0xff]  }
 0x4bb   : > { %3987 = vst [vmem:[#allocation3 + $0x30] sm:$0xff] %v12202_v4  ;;  %v12205_v35 = vadd.f32 %v8714_v15, %v8713_v26  ;;  %9459 = vmatprep.subr.bf16.mxu1 %v10524_v48  ;;  %v12209_v36 = vpack.c.bf16 %v12202_v4, %v12192_v37  ;;  %v12259_v46 = vpack.c.bf16 %v12247_v10, %v12251_v45  ;;  %v10533_v26 = vld [vmem:[#allocation8 + $0x98] sm:$0xff]   ;;  %v10559_v37 = vld [vmem:[#allocation8 + $0x168] sm:$0xff]  }
 0x4bc   : > { %v12261_v56 = vld [vmem:[#allocation3 + $0x27] sm:$0xff]  ;;  %v12311_v11 = vld [vmem:[#allocation3 + $0x19] sm:$0xff] }
 0x4bd   : > { %3988 = vst [vmem:[#allocation3 + $0x38] sm:$0xff] %v12205_v35  ;;  %9451 = vmatprep.mubr.bf16.mxu1 %v12209_v36  ;;  %v4632_v27 = vpack.c.bf16 %v12205_v35, %v12202_v4  ;;  %v8191_v45 = vpack.c.bf16 %v12261_v56, %v12247_v10  ;;  %v10561_v4 = vld [vmem:[#allocation8 + $0x178] sm:$0xff]  }
 0x4be   : > { %9460 = vmatpush3.bf16.msra.mxu1 %v10524_v48  ;;  %v4306_v48 = vld [vmem:[#allocation3 + $0x9] sm:$0xff] }
 0x4bf   : > { %v8716_v39 = vpop.f32.mrb[12].mxu1  ;;  %9461 = vmatprep.subr.bf16.mxu1 %v10525_v24  ;;  %v8168_v15 = vpack.c.bf16 %v12285_v60, %v4306_v48 }
 0x4c0   : > { %v8717_v16 = vpop.f32.mrb[13].mxu1 }
 0x4c1   : > { %v12221_v17 = vadd.f32 %v8717_v16, %v8716_v39  ;;  %v8719_v20 = vpop.f32.mrb[14].mxu1  ;;  %v10537_v39 = vld [vmem:[#allocation8 + $0xb8] sm:$0xff]   ;;  %v12307_v16 = vld [vmem:[#allocation3 + $0x21] sm:$0xff] }
 0x4c2   : > { %v8720_v63 = vpop.f32.mrb[15].mxu1  ;;  %9462 = vmatpush3.bf16.msra.mxu1 %v10525_v24  ;;  %v12249_v34 = vld [vmem:[#allocation3 + $0x2f] sm:$0xff]  ;;  %v10534_v24 = vld [vmem:[#allocation8 + $0xa0] sm:$0xff]  }
 0x4c3   : > { %3989 = vst [vmem:[#allocation3 + $0x40] sm:$0xff] %v12221_v17  ;;  %v12226_v22 = vadd.f32 %v8720_v63, %v8719_v20  ;;  %9463 = vmatprep.subr.bf16.mxu1 %v10526_v19  ;;  %v12230_v61 = vpack.c.bf16 %v12221_v17, %v12205_v35  ;;  %v12271_v44 = vpack.c.bf16 %v12249_v34, %v12261_v56  ;;  %v10549_v56 = vld [vmem:[#allocation8 + $0x118] sm:$0xff]   ;;  %v10562_v35 = vld [vmem:[#allocation8 + $0x180] sm:$0xff]  }
 0x4c4   : > { %v12287_v18 = vld [vmem:[#allocation3 + $0x37] sm:$0xff]  ;;  %v10588_v63 = vld [vmem:[#allocation10 + $0x200] sm:$0xff]  }
 0x4c5   : > { %3990 = vst [vmem:[#allocation3 + $0x48] sm:$0xff] %v12226_v22  ;;  %9452 = vmatmul.mubr.bf16.gmra.mrb[20].mxu1 %v12230_v61  ;;  %v4633_v31 = vpack.c.bf16 %v12226_v22, %v12221_v17  ;;  %v12309_v20 = vld [vmem:[#allocation3 + $0x31] sm:$0xff]  ;;  %v8194_v5 = vpack.c.bf16 %v12287_v18, %v12249_v34  ;;  %v10550_v34 = vld [vmem:[#allocation8 + $0x120] sm:$0xff]   ;;  %v10563_v17 = vld [vmem:[#allocation8 + $0x188] sm:$0xff]   ;;  %9820 = vmatpush3.bf16.msra.mxu0 %v10588_v63 }
 0x4c6   : > { %9464 = vmatpush3.bf16.msra.mxu1 %v10526_v19  ;;  %9471 = vmatprep.mubr.msk.bf16.mxu1 %vm12232_vm5, %v8148_v12  ;;  %v10538_v19 = vld [vmem:[#allocation8 + $0xc0] sm:$0xff]   ;;  %v12321_v12 = vld [vmem:[#allocation3 + $0x29] sm:$0xff] }
 0x4c7   : > { %9465 = vmatprep.subr.bf16.mxu1 %v10527_v25  ;;  %v12329_v38 = vpack.c.bf16 %v12309_v20, %v12321_v12  ;;  %v10589_v63 = vld [vmem:[#allocation10 + $0x48] sm:$0xff]  }
 0x4ca   : > { %9466 = vmatpush3.bf16.msra.mxu1 %v10527_v25  ;;  %v12279_v2 = vld [vmem:[#allocation3 + $0x3f] sm:$0xff]  ;;  %v12319_v25 = vpack.c.bf16 %v12307_v16, %v12311_v11 }
 0x4cb   : > { %9467 = vmatprep.subr.bf16.mxu1 %v10528_v43  ;;  %v12295_v14 = vpack.c.bf16 %v12279_v2, %v12287_v18  ;;  %v12339_v9 = vld [vmem:[#allocation3 + $0x39] sm:$0xff]  ;;  %v10551_v18 = vld [vmem:[#allocation8 + $0x128] sm:$0xff]  }
 0x4cc   : > { %v12337_v58 = vld [vmem:[#allocation3 + $0x41] sm:$0xff] }
 0x4cd   : > { %v12347_v49 = vpack.c.bf16 %v12337_v58, %v12339_v9  ;;  %v12364_v48 = vld [vmem:[#allocation3 + $0x47] sm:$0xff] }
 0x4ce   : > { %9468 = vmatpush3.bf16.msra.mxu1 %v10528_v43  ;;  %v8197_v10 = vpack.c.bf16 %v12364_v48, %v12279_v2  ;;  %v10553_v2 = vld [vmem:[#allocation8 + $0x138] sm:$0xff]   ;;  %v10592_v43 = vld [vmem:[#allocation10 + $0x210] sm:$0xff]  }
 0x4cf   : > { %9469 = vmatprep.subr.bf16.mxu1 %v10529_v32 }
 0x4d2   : > { %9470 = vmatpush3.bf16.msra.mxu1 %v10529_v32  ;;  %v10539_v32 = vld [vmem:[#allocation8 + $0xc8] sm:$0xff]  }
 0x4d3   : > { %9479 = vmatprep.subr.bf16.mxu1 %v10530_v42 }
 0x4d5   : > { %9472 = vmatmul.mubr.msk.bf16.vlgmr.msra.gmra.mrb[16].mxu1 %vm12253_vm6, %v12259_v46 }
 0x4d6   : > { %9475 = vmatprep.mubr.msk.bf16.mxu1 %vm12263_vm3, %v12271_v44  ;;  %9480 = vmatpush3.bf16.msra.mxu1 %v10530_v42  ;;  %v10542_v42 = vld [vmem:[#allocation8 + $0xe0] sm:$0xff]  }
 0x4d7   : > { %9481 = vmatprep.subr.bf16.mxu1 %v10531_v62 }
 0x4da   : > { %9482 = vmatpush3.bf16.msra.mxu1 %v10531_v62  ;;  %v10543_v62 = vld [vmem:[#allocation8 + $0xe8] sm:$0xff]  }
 0x4db   : > { %9483 = vmatprep.subr.bf16.mxu1 %v10532_v28 }
 0x4dd   : > { %9476 = vmatmul.mubr.msk.bf16.gmra.mrb[20].mxu1 %vm12289_vm7, %v12295_v14 }
 0x4de   : > { %9484 = vmatpush3.bf16.msra.mxu1 %v10532_v28  ;;  %9495 = vmatprep.mubr.msk.bf16.mxu1 %vm12297_vm14, %v8168_v15  ;;  %v10548_v28 = vld [vmem:[#allocation8 + $0x110] sm:$0xff]   ;;  %v10554_v15 = vld [vmem:[#allocation8 + $0x140] sm:$0xff]  }
 0x4df   : > { %9485 = vmatprep.subr.bf16.mxu1 %v10533_v26 }
 0x4e2   : > { %9486 = vmatpush3.bf16.msra.mxu1 %v10533_v26  ;;  %v10552_v26 = vld [vmem:[#allocation8 + $0x130] sm:$0xff]  }
 0x4e3   : > { %9487 = vmatprep.subr.bf16.mxu1 %v10534_v24 }
 0x4e6   : > { %9488 = vmatpush3.bf16.msra.mxu1 %v10534_v24  ;;  %v10555_v24 = vld [vmem:[#allocation8 + $0x148] sm:$0xff]  }
 0x4e7   : > { %9489 = vmatprep.subr.bf16.mxu1 %v10535_v30 }
 0x4ea   : > { %9490 = vmatpush3.bf16.msra.mxu1 %v10535_v30  ;;  %v12394_v30 = vld [vmem:[#allocation3 + $0x49] sm:$0xff] }
 0x4eb   : > { %9491 = vmatprep.subr.bf16.mxu1 %v10536_v59 }
 0x4ee   : > { %9492 = vmatpush3.bf16.msra.mxu1 %v10536_v59  ;;  %v8225_v59 = vpack.c.bf16 %v12394_v30, %v12337_v58  ;;  %v10573_v58 = vld [vmem:[#allocation8 + $0x1d8] sm:$0xff]  }
 0x4ef   : > { %9493 = vmatprep.subr.bf16.mxu1 %v10537_v39 }
 0x4f2   : > { %9494 = vmatpush3.bf16.msra.mxu1 %v10537_v39  ;;  %v10565_v39 = vld [vmem:[#allocation8 + $0x198] sm:$0xff]  }
 0x4f3   : > { %9503 = vmatprep.subr.bf16.mxu1 %v10538_v19 }
 0x4f5   : > { %9496 = vmatmul.mubr.msk.bf16.vlgmr.msra.gmra.mrb[16].mxu1 %vm12313_vm11, %v12319_v25 }
 0x4f6   : > { %9499 = vmatprep.mubr.msk.bf16.mxu1 %vm12323_vm0, %v12329_v38  ;;  %9504 = vmatpush3.bf16.msra.mxu1 %v10538_v19  ;;  %v10566_v19 = vld [vmem:[#allocation8 + $0x1a0] sm:$0xff]  }
 0x4f7   : > { %9505 = vmatprep.subr.bf16.mxu1 %v10539_v32 }
 0x4fa   : > { %9506 = vmatpush3.bf16.msra.mxu1 %v10539_v32  ;;  %v10571_v32 = vld [vmem:[#allocation8 + $0x1c8] sm:$0xff]  }
 0x4fb   : > { %9507 = vmatprep.subr.bf16.mxu1 %v10540_v55 }
 0x4fd   : > { %9500 = vmatmul.mubr.msk.bf16.gmra.mrb[20].mxu1 %vm12341_vm12, %v12347_v49 }
 0x4fe   : > { %9508 = vmatpush3.bf16.msra.mxu1 %v10540_v55  ;;  %9519 = vmatprep.mubr.msk.bf16.mxu1 %vm12232_vm5, %v8188_v3 }
 0x4ff   : > { %9509 = vmatprep.subr.bf16.mxu1 %v10541_v51 }
 0x502   : > { %9510 = vmatpush3.bf16.msra.mxu1 %v10541_v51  ;;  %v12415_v51 = vld [vmem:[#allocation2 + $0x8] sm:$0xff] }
 0x503   : > { %9511 = vmatprep.subr.bf16.mxu1 %v10542_v42  ;;  %v5099_v3 = vpack.c.bf16 %v12415_v51, %v12226_v22  ;;  %v12429_v22 = vld [vmem:[#allocation3 + $0x51] sm:$0xff]  ;;  %9821 = vmatprep.subr.bf16.mxu0 %v12415_v51 }
 0x504   : > { %v8273_v52 = vpack.c.bf16 %v12429_v22, %v12394_v30 }
 0x506   : > { %9512 = vmatpush3.bf16.msra.mxu1 %v10542_v42  ;;  %v10581_v42 = vld [vmem:[#allocation8 + $0x218] sm:$0xff]  }
 0x507   : > { %9513 = vmatprep.subr.bf16.mxu1 %v10543_v62 }
 0x50a   : > { %9514 = vmatpush3.bf16.msra.mxu1 %v10543_v62  ;;  %v10584_v62 = vld [vmem:[#allocation8 + $0x230] sm:$0xff]  }
 0x50b   : > { %9515 = vmatprep.subr.bf16.mxu1 %v10544_v6 }
 0x50e   : > { %9516 = vmatpush3.bf16.msra.mxu1 %v10544_v6  ;;  %v10585_v6 = vld [vmem:[#allocation8 + $0x238] sm:$0xff]  }
 0x50f   : > { %9517 = vmatprep.subr.bf16.mxu1 %v10545_v57 }
 0x512   : > { %9518 = vmatpush3.bf16.msra.mxu1 %v10545_v57 }
 0x513   : > { %9527 = vmatprep.subr.bf16.mxu1 %v10546_v21 }
 0x515   : > { %9520 = vmatmul.mubr.msk.bf16.vlgmr.msra.gmra.mrb[16].mxu1 %vm12253_vm6, %v8191_v45 }
 0x516   : > { %9523 = vmatprep.mubr.msk.bf16.mxu1 %vm12263_vm3, %v8194_v5  ;;  %9528 = vmatpush3.bf16.msra.mxu1 %v10546_v21 }
 0x517   : > { %9529 = vmatprep.subr.bf16.mxu1 %v10547_v7 }
 0x51a   : > { %9530 = vmatpush3.bf16.msra.mxu1 %v10547_v7 }
 0x51b   : > { %9531 = vmatprep.subr.bf16.mxu1 %v10548_v28 }
 0x51d   : > { %9524 = vmatmul.mubr.msk.bf16.gmra.mrb[20].mxu1 %vm12289_vm7, %v8197_v10 }
 0x51e   : > { %9532 = vmatpush3.bf16.msra.mxu1 %v10548_v28  ;;  %9543 = vmatprep.mubr.bf16.mxu1 %v4630_v23  ;;  %v8216_v23 = vpack.c.bf16 %v12311_v11, %v12285_v60  ;;  %v10564_v60 = vld [vmem:[#allocation8 + $0x190] sm:$0xff]   ;;  %v10569_v11 = vld [vmem:[#allocation8 + $0x1b8] sm:$0xff]  }
 0x51f   : > { %9533 = vmatprep.subr.bf16.mxu1 %v10549_v56 }
 0x522   : > { %9534 = vmatpush3.bf16.msra.mxu1 %v10549_v56 }
 0x523   : > { %9535 = vmatprep.subr.bf16.mxu1 %v10550_v34 }
 0x526   : > { %9536 = vmatpush3.bf16.msra.mxu1 %v10550_v34 }
 0x527   : > { %9537 = vmatprep.subr.bf16.mxu1 %v10551_v18 }
 0x52a   : > { %9538 = vmatpush3.bf16.msra.mxu1 %v10551_v18 }
 0x52b   : > { %9539 = vmatprep.subr.bf16.mxu1 %v10552_v26 }
 0x52e   : > { %9540 = vmatpush3.bf16.msra.mxu1 %v10552_v26 }
 0x52f   : > { %9541 = vmatprep.subr.bf16.mxu1 %v10553_v2 }
 0x532   : > { %9542 = vmatpush3.bf16.msra.mxu1 %v10553_v2 }
 0x533   : > { %9551 = vmatprep.subr.bf16.mxu1 %v10554_v15 }
 0x535   : > { %9544 = vmatmul.mubr.bf16.vlgmr.msra.gmra.mrb[16].mxu1 %v4631_v54  ;;  %v10560_v54 = vld [vmem:[#allocation8 + $0x170] sm:$0xff]  }
 0x536   : > { %9547 = vmatprep.mubr.bf16.mxu1 %v4632_v27  ;;  %9552 = vmatpush3.bf16.msra.mxu1 %v10554_v15  ;;  %v8219_v27 = vpack.c.bf16 %v12321_v12, %v12307_v16  ;;  %v10567_v16 = vld [vmem:[#allocation8 + $0x1a8] sm:$0xff]   ;;  %v10570_v12 = vld [vmem:[#allocation8 + $0x1c0] sm:$0xff]  }
 0x537   : > { %9553 = vmatprep.subr.bf16.mxu1 %v10555_v24 }
 0x53a   : > { %9554 = vmatpush3.bf16.msra.mxu1 %v10555_v24 }
 0x53b   : > { %9555 = vmatprep.subr.bf16.mxu1 %v10556_v53 }
 0x53d   : > { %9548 = vmatmul.mubr.bf16.gmra.mrb[20].mxu1 %v4633_v31  ;;  %v8222_v31 = vpack.c.bf16 %v12339_v9, %v12309_v20  ;;  %v10568_v20 = vld [vmem:[#allocation8 + $0x1b0] sm:$0xff]   ;;  %v10578_v9 = vld [vmem:[#allocation8 + $0x200] sm:$0xff]  }
 0x53e   : > { %9556 = vmatpush3.bf16.msra.mxu1 %v10556_v53  ;;  %9567 = vmatprep.mubr.msk.bf16.mxu1 %vm12297_vm14, %v8216_v23 }
 0x53f   : > { %9557 = vmatprep.subr.bf16.mxu1 %v10557_v13 }
 0x542   : > { %9558 = vmatpush3.bf16.msra.mxu1 %v10557_v13 }
 0x543   : > { %9559 = vmatprep.subr.bf16.mxu1 %v10558_v1 }
 0x546   : > { %9560 = vmatpush3.bf16.msra.mxu1 %v10558_v1 }
 0x547   : > { %9561 = vmatprep.subr.bf16.mxu1 %v10559_v37 }
 0x54a   : > { %9562 = vmatpush3.bf16.msra.mxu1 %v10559_v37 }
 0x54b   : > { %9563 = vmatprep.subr.bf16.mxu1 %v10560_v54 }
 0x54e   : > { %9564 = vmatpush3.bf16.msra.mxu1 %v10560_v54 }
 0x54f   : > { %9565 = vmatprep.subr.bf16.mxu1 %v10561_v4 }
 0x552   : > { %9566 = vmatpush3.bf16.msra.mxu1 %v10561_v4 }
 0x553   : > { %9575 = vmatprep.subr.bf16.mxu1 %v10562_v35 }
 0x555   : > { %9568 = vmatmul.mubr.msk.bf16.vlgmr.msra.gmra.mrb[16].mxu1 %vm12313_vm11, %v8219_v27 }
 0x556   : > { %9571 = vmatprep.mubr.msk.bf16.mxu1 %vm12323_vm0, %v8222_v31  ;;  %9576 = vmatpush3.bf16.msra.mxu1 %v10562_v35 }
 0x557   : > { %9577 = vmatprep.subr.bf16.mxu1 %v10563_v17 }
 0x55a   : > { %9578 = vmatpush3.bf16.msra.mxu1 %v10563_v17 }
 0x55b   : > { %9579 = vmatprep.subr.bf16.mxu1 %v10564_v60 }
 0x55d   : > { %9572 = vmatmul.mubr.msk.bf16.gmra.mrb[20].mxu1 %vm12341_vm12, %v8225_v59 }
 0x55e   : > { %9580 = vmatpush3.bf16.msra.mxu1 %v10564_v60  ;;  %9591 = vmatprep.mubr.msk.bf16.mxu1 %vm12232_vm5, %v12259_v46  ;;  %v4937_v46 = vld [vmem:[#allocation3 + $0x4f] sm:$0xff]  ;;  %vm10931_vm5 = vmmov 0  }
 0x55f   : > { %9581 = vmatprep.subr.bf16.mxu1 %v10565_v39  ;;  %v8245_v55 = vpack.c.bf16 %v4937_v46, %v12364_v48  ;;  %9835 = vmatprep.mubr.msk.bf16.mxu0 %vm10931_vm5, %v12415_v51 }
 0x562   : > { %9582 = vmatpush3.bf16.msra.mxu1 %v10565_v39 }
 0x563   : > { %9583 = vmatprep.subr.bf16.mxu1 %v10566_v19 }
 0x566   : > { %9584 = vmatpush3.bf16.msra.mxu1 %v10566_v19 }
 0x567   : > { %9585 = vmatprep.subr.bf16.mxu1 %v10567_v16 }
 0x56a   : > { %9586 = vmatpush3.bf16.msra.mxu1 %v10567_v16 }
 0x56b   : > { %9587 = vmatprep.subr.bf16.mxu1 %v10568_v20 }
 0x56e   : > { %9588 = vmatpush3.bf16.msra.mxu1 %v10568_v20 }
 0x56f   : > { %9589 = vmatprep.subr.bf16.mxu1 %v10569_v11 }
 0x572   : > { %9590 = vmatpush3.bf16.msra.mxu1 %v10569_v11  ;;  %v5459_v11 = vmax.f32 %v12415_v51, %v12429_v22  ;;  %v10586_v22 = vld [vmem:[%s12789_s6] sm:$0xff]  }
 0x573   : > { %9599 = vmatprep.subr.bf16.mxu1 %v10570_v12 }
 0x575   : > { %9592 = vmatmul.mubr.msk.bf16.vlgmr.msra.gmra.mrb[16].mxu1 %vm12253_vm6, %v12271_v44  ;;  %v10576_v44 = vld [vmem:[#allocation8 + $0x1f0] sm:$0xff]   ;;  %vm5479_vm6 = vcmask 523264  }
 0x576   : > { %9595 = vmatprep.mubr.msk.bf16.mxu1 %vm12263_vm3, %v12295_v14  ;;  %9600 = vmatpush3.bf16.msra.mxu1 %v10570_v12  ;;  %v10577_v14 = vld [vmem:[#allocation8 + $0x1f8] sm:$0xff]  }
 0x577   : > { %9601 = vmatprep.subr.bf16.mxu1 %v10571_v32 }
 0x57a   : > { %9602 = vmatpush3.bf16.msra.mxu1 %v10571_v32 }
 0x57b   : > { %9603 = vmatprep.subr.bf16.mxu1 %v10572_v8 }
 0x57d   : > { %9596 = vmatmul.mubr.msk.bf16.gmra.mrb[20].mxu1 %vm12289_vm7, %v8245_v55 }
 0x57e   : > { %9604 = vmatpush3.bf16.msra.mxu1 %v10572_v8  ;;  %9615 = vmatprep.mubr.bf16.mxu1 %v12196_v47  ;;  %v10580_v47 = vld [vmem:[#allocation8 + $0x210] sm:$0xff]  }
 0x57f   : > { %9605 = vmatprep.subr.bf16.mxu1 %v10573_v58 }
 0x582   : > { %9606 = vmatpush3.bf16.msra.mxu1 %v10573_v58 }
 0x583   : > { %9607 = vmatprep.subr.bf16.mxu1 %v10574_v40 }
 0x586   : > { %9608 = vmatpush3.bf16.msra.mxu1 %v10574_v40 }
 0x587   : > { %9609 = vmatprep.subr.bf16.mxu1 %v10575_v0 }
 0x58a   : > { %9610 = vmatpush3.bf16.msra.mxu1 %v10575_v0 }
 0x58b   : > { %9611 = vmatprep.subr.bf16.mxu1 %v10576_v44 }
 0x58e   : > { %9612 = vmatpush3.bf16.msra.mxu1 %v10576_v44 }
 0x58f   : > { %9613 = vmatprep.subr.bf16.mxu1 %v10577_v14 }
 0x592   : > { %9614 = vmatpush3.bf16.msra.mxu1 %v10577_v14 }
 0x593   : > { %9623 = vmatprep.subr.bf16.mxu1 %v10578_v9 }
 0x595   : > { %9616 = vmatmul.mubr.bf16.vlgmr.msra.gmra.mrb[16].mxu1 %v12209_v36  ;;  %v10582_v36 = vld [vmem:[#allocation8 + $0x220] sm:$0xff]  }
 0x596   : > { %9619 = vmatprep.mubr.bf16.mxu1 %v12230_v61  ;;  %9624 = vmatpush3.bf16.msra.mxu1 %v10578_v9  ;;  %v10583_v61 = vld [vmem:[#allocation8 + $0x228] sm:$0xff]  }
 0x597   : > { %9625 = vmatprep.subr.bf16.mxu1 %v10579_v29 }
 0x59a   : > { %9626 = vmatpush3.bf16.msra.mxu1 %v10579_v29 }
 0x59b   : > { %9627 = vmatprep.subr.bf16.mxu1 %v10580_v47 }
 0x59d   : > { %9620 = vmatmul.mubr.bf16.gmra.mrb[20].mxu1 %v5099_v3 }
 0x59e   : > { %9628 = vmatpush3.bf16.msra.mxu1 %v10580_v47  ;;  %9639 = vmatprep.mubr.msk.bf16.mxu1 %vm12297_vm14, %v12319_v25  ;;  %v10590_v25 = vld [vmem:[#allocation10 + $0x208] sm:$0xff]  }
 0x59f   : > { %9629 = vmatprep.subr.bf16.mxu1 %v10581_v42  ;;  %9822 = vmatpush3.bf16.msra.mxu0 %v10590_v25  ;;  %v10591_v25 = vld [vmem:[#allocation10 + $0x50] sm:$0xff]  }
 0x5a0   : > { %9823 = vmatprep.subr.bf16.mxu0 %v12415_v51 }
 0x5a2   : > { %9630 = vmatpush3.bf16.msra.mxu1 %v10581_v42 }
 0x5a3   : > { %9631 = vmatprep.subr.bf16.mxu1 %v10582_v36  ;;  %9824 = vmatpush3.bf16.msra.mxu0 %v10592_v43  ;;  %v10593_v43 = vld [vmem:[#allocation10 + $0x58] sm:$0xff]  }
 0x5a4   : > { %9825 = vmatprep.subr.bf16.mxu0 %v12415_v51 }
 0x5a6   : > { %9632 = vmatpush3.bf16.msra.mxu1 %v10582_v36 }
 0x5a7   : > { %9633 = vmatprep.subr.bf16.mxu1 %v10583_v61 }
 0x5aa   : > { %9634 = vmatpush3.bf16.msra.mxu1 %v10583_v61 }
 0x5ab   : > { %9635 = vmatprep.subr.bf16.mxu1 %v10584_v62 }
 0x5ae   : > { %9636 = vmatpush3.bf16.msra.mxu1 %v10584_v62 }
 0x5af   : > { %9637 = vmatprep.subr.bf16.mxu1 %v10585_v6 }
 0x5b2   : > { %9638 = vmatpush3.bf16.msra.mxu1 %v10585_v6 }
 0x5b3   : > { %9647 = vmatprep.subr.bf16.mxu1 %v12415_v51 }
 0x5b5   : > { %9640 = vmatmul.mubr.msk.bf16.vlgmr.msra.gmra.mrb[16].mxu1 %vm12313_vm11, %v12329_v38  ;;  %v10594_v38 = vld [vmem:[#allocation10 + $0x218] sm:$0xff]  }
 0x5b6   : > { %9643 = vmatprep.mubr.msk.bf16.mxu1 %vm12323_vm0, %v12347_v49  ;;  %9826 = vmatpush3.bf16.msra.mxu0 %v10594_v38  ;;  %v8275_v49 = vld [vmem:[%s12788_s5] ss:$0 sm:$0xff]  ;;  %v10595_v38 = vld [vmem:[#allocation10 + $0x60] sm:$0xff]  }
 0x5b7   : > { %9827 = vmatprep.subr.bf16.mxu0 %v12415_v51 }
 0x5ba   : > { %9828 = vmatpush3.bf16.msra.mxu0 %v10596_v33  ;;  %v10597_v33 = vld [vmem:[#allocation10 + $0x68] sm:$0xff]  }
 0x5bb   : > { %9829 = vmatprep.subr.bf16.mxu0 %v12415_v51 }
 0x5bd   : > { %9644 = vmatmul.mubr.msk.bf16.gmra.mrb[20].mxu1 %vm12341_vm12, %v8273_v52  ;;  %v10587_v52 = vld [vmem:[#allocation10 + $0x40] sm:$0xff]  }
 0x5be   : > { %9655 = vmatprep.mubr.msk.bf16.mxu1 %vm10931_vm5, %v12415_v51 }
 0x688   : > { %v9641_v57 = vpop.f32.mrb[16].mxu1 }
 0x689   : > { %v5405_v21 = vadd.f32 %v9641_v57, %v8275_v49  ;;  %v5357_v45 = vpop.f32.mrb[17].mxu1  ;;  %v10599_v57 = vld [vmem:[#allocation10 + $0x70] sm:$0xff]  }
 0x68a   : > { %v5403_v7 = vadd.f32 %v8275_v49, %v5357_v45  ;;  %v9642_v5 = vpop.f32.mrb[18].mxu1  ;;  %v10601_v45 = vld [vmem:[#allocation10 + $0x78] sm:$0xff]  }
 0x68b   : > { %v5413_v28 = vmax.f32 %v5405_v21, 0.0  ;;  %v5406_v48 = vadd.f32 %v9642_v5, %v8275_v49  ;;  %v5360_v10 = vpop.f32.mrb[19].mxu1  ;;  %v10600_v21 = vld [vmem:[#allocation10 + $0x230] sm:$0xff]  }
 0x68c   : > { %v5411_v56 = vmax.f32 %v5403_v7, 0.0  ;;  %v5404_v34 = vadd.f32 %v8275_v49, %v5360_v10  ;;  %v10602_v7 = vld [vmem:[#allocation10 + $0x238] sm:$0xff]   ;;  %v5529_v10 = vand.u32 3, %v13070_v41 }
 0x68d   : > { %5421 = vst [vmem:[#allocation3 + $0x20] sm:$0xff] %v5413_v28  ;;  %v5414_v18 = vmax.f32 %v5406_v48, 0.0  ;;  %v5528_v48 = vand.u32 3, %v13069_v50 }
 0x68e   : > { %5419 = vst [vmem:[#allocation3 + $0x10] sm:$0xff] %v5411_v56  ;;  %v5412_v26 = vmax.f32 %v5404_v34, 0.0  ;;  %vm5533_vm13 = vcmp.le.s32.totalorder %v5529_v10, 2  ;;  %vm5531_vm14 = vcmp.ge.s32.totalorder %v5529_v10, 1 }
 0x68f   : > { %5422 = vst [vmem:[#allocation3 + $0x28] sm:$0xff] %v5414_v18  ;;  %vm5532_vm3 = vcmp.le.s32.totalorder %v5528_v48, 2  ;;  %vm5530_vm7 = vcmp.ge.s32.totalorder %v5528_v48, 1  ;;  %v10642_v48 = vld [vmem:[#allocation10 + $0x178] sm:$0xff]  }
 0x690   : > { %5420 = vst [vmem:[#allocation3 + $0x18] sm:$0xff] %v5412_v26  ;;  %v9645_v2 = vpop.f32.mrb[20].mxu1  ;;  %vm12479_vm1 = vmpackc.low %vm5533_vm13, %vm5532_vm3 }
 0x691   : > { %v5409_v15 = vadd.f32 %v9645_v2, %v8275_v49  ;;  %v5373_v24 = vpop.f32.mrb[21].mxu1  ;;  %v10603_v2 = vld [vmem:[#allocation10] sm:$0xff]   ;;  %vm12516_vm8 = vmpackc.low %vm5531_vm14, %vm5530_vm7 }
 0x692   : > { %v5407_v53 = vadd.f32 %v8275_v49, %v5373_v24  ;;  %v9646_v13 = vpop.f32.mrb[22].mxu1 }
 0x693   : > { %v5417_v23 = vmax.f32 %v5409_v15, 0.0  ;;  %v5410_v1 = vadd.f32 %v9646_v13, %v8275_v49  ;;  %v5376_v37 = vpop.f32.mrb[23].mxu1 }
 0x694   : > { %v5415_v54 = vmax.f32 %v5407_v53, 0.0  ;;  %v5408_v4 = vadd.f32 %v8275_v49, %v5376_v37  ;;  %v10598_v49 = vld [vmem:[#allocation10 + $0x228] sm:$0xff]  }
 0x695   : > { %5425 = vst [vmem:[#allocation3 + $0x40] sm:$0xff] %v5417_v23  ;;  %v5418_v35 = vmax.f32 %v5410_v1, 0.0  ;;  %9830 = vmatpush3.bf16.msra.mxu0 %v10598_v49  ;;  %v10635_v49 = vld [vmem:[#allocation10 + $0x140] sm:$0xff]  }
 0x696   : > { %v5429_v27 = vld [vmem:[#allocation3 + $0x21] sm:$0xff]  ;;  %5423 = vst [vmem:[#allocation3 + $0x30] sm:$0xff] %v5415_v54  ;;  %v5416_v17 = vmax.f32 %v5408_v4, 0.0  ;;  %9831 = vmatprep.subr.bf16.mxu0 %v12415_v51 }
 0x697   : > { %v5427_v31 = vld [vmem:[#allocation3 + $0x11] sm:$0xff]  ;;  %v5428_v60 = vld [vmem:[#allocation3 + $0x19] sm:$0xff]  ;;  %v5437_v30 = vmax.f32 %v5413_v28, %v5429_v27  ;;  %5426 = vst [vmem:[#allocation3 + $0x48] sm:$0xff] %v5418_v35  ;;  %v10604_v27 = vld [vmem:[#allocation10 + $0x8] sm:$0xff]  }
 0x698   : > { %v5435_v59 = vmax.f32 %v5411_v56, %v5427_v31  ;;  %v5436_v39 = vmax.f32 %v5412_v26, %v5428_v60  ;;  %5424 = vst [vmem:[#allocation3 + $0x38] sm:$0xff] %v5416_v17  ;;  %v10606_v31 = vld [vmem:[#allocation10 + $0x18] sm:$0xff]   ;;  %v10607_v60 = vld [vmem:[#allocation10 + $0x20] sm:$0xff]  }
 0x699   : > { %9832 = vmatpush3.bf16.msra.mxu0 %v10600_v21  ;;  %v10637_v21 = vld [vmem:[#allocation10 + $0x150] sm:$0xff]  }
 0x69a   : > { %v5460_v19 = vmax.f32 %v5435_v59, %v5436_v39  ;;  %v5461_v16 = vmax.f32 %v5436_v39, %v5437_v30  ;;  %9833 = vmatprep.subr.bf16.mxu0 %v12415_v51  ;;  %v10609_v59 = vld [vmem:[#allocation10 + $0x30] sm:$0xff]   ;;  %v10610_v39 = vld [vmem:[#allocation10 + $0x38] sm:$0xff]  }
 0x69c   : > { %v5470_v20 = vpack.c.bf16 %v5461_v16, %v5460_v19  ;;  %v10727_v16 = vld [vmem:[#allocation11 + $0x220] sm:$0xff]  }
 0x69d   : > { %v5430_v12 = vld [vmem:[#allocation3 + $0x29] sm:$0xff]  ;;  %9834 = vmatpush3.bf16.msra.mxu0 %v10602_v7  ;;  %v10639_v7 = vld [vmem:[#allocation10 + $0x160] sm:$0xff]  }
 0x69e   : > { %v5433_v32 = vld [vmem:[#allocation3 + $0x41] sm:$0xff]  ;;  %v5434_v8 = vld [vmem:[#allocation3 + $0x49] sm:$0xff]  ;;  %9648 = vmatpush3.bf16.msra.mxu1 %v5470_v20  ;;  %v5438_v46 = vmax.f32 %v5414_v18, %v5430_v12  ;;  %9859 = vmatprep.subr.bf16.mxu0 %v12415_v51 }
 0x69f   : > { %v5441_v55 = vmax.f32 %v5417_v23, %v5433_v32  ;;  %v5442_v58 = vmax.f32 %v5418_v35, %v5434_v8  ;;  %v5431_v40 = vld [vmem:[#allocation3 + $0x31] sm:$0xff]  ;;  %v5432_v0 = vld [vmem:[#allocation3 + $0x39] sm:$0xff]  ;;  %9649 = vmatprep.subr.bf16.mxu1 %v12415_v51  ;;  %v10612_v12 = vld [vmem:[#allocation10 + $0x88] sm:$0xff]  }
 0x6a0   : > { %v5439_v44 = vmax.f32 %v5415_v54, %v5431_v40  ;;  %v5440_v14 = vmax.f32 %v5416_v17, %v5432_v0  ;;  %v5462_v9 = vmax.f32 %v5437_v30, %v5438_v46  ;;  %v10605_v17 = vld [vmem:[#allocation10 + $0x10] sm:$0xff]   ;;  %v10608_v30 = vld [vmem:[#allocation10 + $0x28] sm:$0xff]   ;;  %v10611_v20 = vld [vmem:[#allocation10 + $0x80] sm:$0xff]  }
 0x6a1   : > { %v5466_v29 = vmax.f32 %v5441_v55, %v5442_v58  ;;  %v5467_v47 = vmax.f32 %v5442_v58, %v5459_v11  ;;  %v10613_v32 = vld [vmem:[#allocation10 + $0x90] sm:$0xff]   ;;  %v10614_v8 = vld [vmem:[#allocation10 + $0x98] sm:$0xff]   ;;  %v10619_v0 = vld [vmem:[#allocation10 + $0xc0] sm:$0xff]  }
 0x6a2   : > { %v5464_v3 = vmax.f32 %v5439_v44, %v5440_v14  ;;  %v5465_v42 = vmax.f32 %v5440_v14, %v5441_v55  ;;  %v5463_v36 = vmax.f32 %v5438_v46, %v5439_v44  ;;  %v10615_v46 = vld [vmem:[#allocation10 + $0xa0] sm:$0xff]   ;;  %v10616_v55 = vld [vmem:[#allocation10 + $0xa8] sm:$0xff]   ;;  %v10617_v58 = vld [vmem:[#allocation10 + $0xb0] sm:$0xff]  }
 0x6a3   : > { %v5473_v61 = vpack.c.bf16 %v5467_v47, %v5466_v29  ;;  %v10618_v40 = vld [vmem:[#allocation10 + $0xb8] sm:$0xff]   ;;  %v10620_v14 = vld [vmem:[#allocation10 + $0xc8] sm:$0xff]   ;;  %v10623_v47 = vld [vmem:[#allocation10 + $0xe0] sm:$0xff]  }
 0x6a4   : > { %v5472_v62 = vpack.c.bf16 %v5465_v42, %v5464_v3  ;;  %v5471_v6 = vpack.c.bf16 %v5463_v36, %v5462_v9  ;;  %v10621_v9 = vld [vmem:[#allocation10 + $0xd0] sm:$0xff]   ;;  %v10622_v29 = vld [vmem:[#allocation10 + $0xd8] sm:$0xff]   ;;  %v10624_v3 = vld [vmem:[#allocation10 + $0xe8] sm:$0xff]  }
 0x6a5   : > { %v10625_v42 = vld [vmem:[#allocation10 + $0xf0] sm:$0xff]   ;;  %v10626_v36 = vld [vmem:[#allocation10 + $0xf8] sm:$0xff]  }
 0x6a6   : > { %9650 = vmatpush3.bf16.msra.mxu1 %v5471_v6 }
 0x6a7   : > { %9651 = vmatprep.subr.bf16.mxu1 %v12415_v51 }
 0x6aa   : > { %9652 = vmatpush3.bf16.msra.mxu1 %v5472_v62  ;;  %v10627_v62 = vld [vmem:[#allocation10 + $0x100] sm:$0xff]  }
 0x6ab   : > { %9653 = vmatprep.subr.bf16.mxu1 %v12415_v51 }
 0x6ae   : > { %9654 = vmatpush3.bf16.msra.mxu1 %v5473_v61 }
 0x6af   : > { %9659 = vmatprep.subr.bf16.mxu1 %v12415_v51 }
 0x6b1   : > { %9656 = vmatmul.mubr.msk.bf16.vlgmr.msra.gmra.mrb[24].mxu1 %vm5479_vm6, %v10586_v22  ;;  %v10628_v22 = vld [vmem:[#allocation10 + $0x108] sm:$0xff]  }
 0x6b2   : > { %9660 = vmatpush3.bf16.msra.mxu1 %v10587_v52  ;;  %9675 = vmatprep.mubr.msk.bf16.mxu1 %vm10931_vm5, %v12415_v51  ;;  %v10629_v52 = vld [vmem:[#allocation10 + $0x110] sm:$0xff]  }
 0x6b3   : > { %9661 = vmatprep.subr.bf16.mxu1 %v12415_v51 }
 0x6b6   : > { %9662 = vmatpush3.bf16.msra.mxu1 %v10589_v63  ;;  %v10630_v63 = vld [vmem:[#allocation10 + $0x118] sm:$0xff]  }
 0x6b7   : > { %9663 = vmatprep.subr.bf16.mxu1 %v12415_v51 }
 0x6ba   : > { %9664 = vmatpush3.bf16.msra.mxu1 %v10591_v25  ;;  %v10631_v25 = vld [vmem:[#allocation10 + $0x120] sm:$0xff]  }
 0x6bb   : > { %9665 = vmatprep.subr.bf16.mxu1 %v12415_v51 }
 0x6be   : > { %9666 = vmatpush3.bf16.msra.mxu1 %v10593_v43  ;;  %v10632_v43 = vld [vmem:[#allocation10 + $0x128] sm:$0xff]  }
 0x6bf   : > { %9667 = vmatprep.subr.bf16.mxu1 %v12415_v51 }
 0x6c2   : > { %9668 = vmatpush3.bf16.msra.mxu1 %v10595_v38  ;;  %v10633_v38 = vld [vmem:[#allocation10 + $0x130] sm:$0xff]  }
 0x6c3   : > { %9669 = vmatprep.subr.bf16.mxu1 %v12415_v51 }
 0x6c6   : > { %9670 = vmatpush3.bf16.msra.mxu1 %v10597_v33  ;;  %v10634_v33 = vld [vmem:[#allocation10 + $0x138] sm:$0xff]  }
 0x6c7   : > { %9671 = vmatprep.subr.bf16.mxu1 %v12415_v51 }
 0x6ca   : > { %9672 = vmatpush3.bf16.msra.mxu1 %v10599_v57  ;;  %v10636_v57 = vld [vmem:[#allocation10 + $0x148] sm:$0xff]  }
 0x6cb   : > { %9673 = vmatprep.subr.bf16.mxu1 %v12415_v51 }
 0x6ce   : > { %9674 = vmatpush3.bf16.msra.mxu1 %v10601_v45  ;;  %v10638_v45 = vld [vmem:[#allocation10 + $0x158] sm:$0xff]  }
 0x6cf   : > { %9679 = vmatprep.subr.bf16.mxu1 %v12415_v51 }
 0x784   : > { %v12469_v5 = vpop.f32.mrb[24].mxu1 }
 0x785   : > { %5526 = vst [vmem:[#allocation4 + $0x8] sm:$0xff] %v12469_v5  ;;  %v9657_v28 = vpop.f32.mrb[25].mxu1 }
 0x786   : > { %v12474_v56 = vpop.f32.mrb[26].mxu1  ;;  %v10641_v28 = vld [vmem:[#allocation10 + $0x170] sm:$0xff]  }
 0x787   : > { %5527 = vst [vmem:[#allocation4 + $0x10] sm:$0xff] %v12474_v56  ;;  %v9658_v34 = vpop.f32.mrb[27].mxu1  ;;  %v5981_v18 = vpack.c.bf16 %v12474_v56, %v12469_v5  ;;  %v10640_v5 = vld [vmem:[#allocation10 + $0x168] sm:$0xff]   ;;  %v10643_v56 = vld [vmem:[#allocation10 + $0x180] sm:$0xff]  }
 0x78c   : > { %v5555_v26 = vld [vmem:[#allocation4 + $0x4] sm:$0xff] }
 0x78d   : > { %v5534_v24 = vld [vmem:[#allocation4 + $0x3] sm:$0xff] }
 0x78e   : > { %v12483_v50 = vld [vmem:[#allocation4 + $0x5] sm:$0xff]  ;;  %v12489_v13 = vld [vmem:[#allocation4 + $0xd] sm:$0xff]  ;;  %v6428_v23 = vld [vmem:[#allocation4 + $0x15] sm:$0xff] }
 0x78f   : > { %v12485_v41 = vld [vmem:[#allocation4 + $0x7] sm:$0xff]  ;;  %v8366_v37 = vpack.c.bf16 %v6428_v23, %v12489_v13  ;;  %v12496_v54 = vld [vmem:[#allocation4 + $0x11] sm:$0xff]  ;;  %v8306_v44 = vpack.c.bf16 %v12489_v13, %v12483_v50 }
 0x790   : > { %v12487_v53 = vld [vmem:[#allocation4 + $0xc] sm:$0xff]  ;;  %6551 = vst [vmem:[#allocation4] sm:$0xff] %v12415_v51  ;;  %v12500_v35 = vld [vmem:[#allocation4 + $0x14] sm:$0xff]  ;;  %v10651_v23 = vld [vmem:[#allocation10 + $0x1c0] sm:$0xff]  }
 0x791   : > { %v5557_v1 = vpack.c.bf16 %v12487_v53, %v5555_v26  ;;  %9836 = vmatmul.mubr.msk.bf16.vlgmr.msra.gmra.mrb[32].mxu0 %vm12479_vm1, %v8366_v37  ;;  %v12498_v4 = vld [vmem:[#allocation4 + $0x13] sm:$0xff]  ;;  %v12514_v19 = vld [vmem:[#allocation4 + $0xb] sm:$0xff] }
 0x792   : > { %6552 = vst [vmem:[#allocation4 + $0x18] sm:$0xff] %v12415_v51  ;;  %9875 = vmatprep.mubr.msk.bf16.mxu0 %vm10931_vm5, %v12415_v51  ;;  %v8295_v11 = vpack.c.bf16 %v12514_v19, %v5534_v24  ;;  %v5867_v61 = vld [vmem:[#allocation4 + $0xf] sm:$0xff]  ;;  %v10647_v24 = vld [vmem:[#allocation10 + $0x1a0] sm:$0xff]   ;;  %v10650_v13 = vld [vmem:[#allocation10 + $0x1b8] sm:$0xff]  }
 0x793   : > { %9676 = vmatmul.mubr.bf16.vlgmr.msra.gmra.mrb[28].mxu1 %v5557_v1  ;;  %v8317_v6 = vpack.c.bf16 %v5867_v61, %v12485_v41  ;;  %v6090_v10 = vld [vmem:[#allocation4 + $0x9] sm:$0xff]  ;;  %v8347_v1 = vpack.c.bf16 %v12498_v4, %v12514_v19  ;;  %v10655_v4 = vld [vmem:[#allocation10 + $0x1e0] sm:$0xff]  }
 0x794   : > { %9680 = vmatpush3.bf16.msra.mxu1 %v10603_v2  ;;  %9695 = vmatprep.mubr.msk.bf16.mxu1 %vm10931_vm5, %v12415_v51  ;;  %v8336_v34 = vpack.c.bf16 %v12496_v54, %v6090_v10  ;;  %v10645_v26 = vld [vmem:[#allocation10 + $0x190] sm:$0xff]   ;;  %v10646_v2 = vld [vmem:[#allocation10 + $0x198] sm:$0xff]   ;;  %v10648_v50 = vld [vmem:[#allocation10 + $0x1a8] sm:$0xff]  }
 0x795   : > { %9681 = vmatprep.subr.bf16.mxu1 %v12415_v51  ;;  %v10649_v41 = vld [vmem:[#allocation10 + $0x1b0] sm:$0xff]   ;;  %v10652_v37 = vld [vmem:[#allocation10 + $0x1c8] sm:$0xff]   ;;  %v10674_v10 = vld [vmem:[#allocation11 + $0x38] sm:$0xff]  }
 0x796   : > { %v10653_v54 = vld [vmem:[#allocation10 + $0x1d0] sm:$0xff]   ;;  %v10662_v61 = vld [vmem:[#allocation11 + $0x8] sm:$0xff]  }
 0x798   : > { %9682 = vmatpush3.bf16.msra.mxu1 %v10604_v27  ;;  %v10654_v27 = vld [vmem:[#allocation10 + $0x1d8] sm:$0xff]  }
 0x799   : > { %9683 = vmatprep.subr.bf16.mxu1 %v12415_v51 }
 0x79c   : > { %9684 = vmatpush3.bf16.msra.mxu1 %v10605_v17  ;;  %v10656_v17 = vld [vmem:[#allocation10 + $0x1e8] sm:$0xff]  }
 0x79d   : > { %9685 = vmatprep.subr.bf16.mxu1 %v12415_v51 }
 0x7a0   : > { %9686 = vmatpush3.bf16.msra.mxu1 %v10606_v31 }
 0x7a1   : > { %9687 = vmatprep.subr.bf16.mxu1 %v12415_v51 }
 0x7a4   : > { %9688 = vmatpush3.bf16.msra.mxu1 %v10607_v60 }
 0x7a5   : > { %9689 = vmatprep.subr.bf16.mxu1 %v12415_v51 }
 0x7a8   : > { %9690 = vmatpush3.bf16.msra.mxu1 %v10608_v30 }
 0x7a9   : > { %9691 = vmatprep.subr.bf16.mxu1 %v12415_v51 }
 0x7ac   : > { %9692 = vmatpush3.bf16.msra.mxu1 %v10609_v59 }
 0x7ad   : > { %9693 = vmatprep.subr.bf16.mxu1 %v12415_v51 }
 0x7b0   : > { %9694 = vmatpush3.bf16.msra.mxu1 %v10610_v39 }
 0x7b1   : > { %9699 = vmatprep.subr.bf16.mxu1 %v12415_v51 }
 0x7b3   : > { %9696 = vmatmul.mubr.msk.bf16.vlgmr.msra.gmra.mrb[32].mxu1 %vm12516_vm8, %v8295_v11 }
 0x7b4   : > { %9700 = vmatpush3.bf16.msra.mxu1 %v10611_v20  ;;  %9715 = vmatprep.mubr.msk.bf16.mxu1 %vm10931_vm5, %v12415_v51  ;;  %v10657_v20 = vld [vmem:[#allocation10 + $0x1f0] sm:$0xff]  }
 0x7b5   : > { %9701 = vmatprep.subr.bf16.mxu1 %v12415_v51 }
 0x7b8   : > { %9702 = vmatpush3.bf16.msra.mxu1 %v10612_v12 }
 0x7b9   : > { %9703 = vmatprep.subr.bf16.mxu1 %v12415_v51 }
 0x7bc   : > { %9704 = vmatpush3.bf16.msra.mxu1 %v10613_v32  ;;  %v10658_v32 = vld [vmem:[#allocation10 + $0x1f8] sm:$0xff]  }
 0x7bd   : > { %9705 = vmatprep.subr.bf16.mxu1 %v12415_v51 }
 0x7c0   : > { %9706 = vmatpush3.bf16.msra.mxu1 %v10614_v8  ;;  %v6318_v8 = vpack.c.bf16 %v12500_v35, %v12487_v53  ;;  %v10660_v53 = vld [vmem:[#allocation11] sm:$0xff]   ;;  %v10661_v35 = vld [vmem:[#allocation11 + $0x48] sm:$0xff]  }
 0x7c1   : > { %9707 = vmatprep.subr.bf16.mxu1 %v12415_v51  ;;  %9860 = vmatpush3.bf16.msra.mxu0 %v10660_v53 }
 0x7c2   : > { %9861 = vmatprep.subr.bf16.mxu0 %v12415_v51 }
 0x7c4   : > { %9708 = vmatpush3.bf16.msra.mxu1 %v10615_v46 }
 0x7c5   : > { %9709 = vmatprep.subr.bf16.mxu1 %v12415_v51  ;;  %9862 = vmatpush3.bf16.msra.mxu0 %v10662_v61  ;;  %v10679_v61 = vld [vmem:[#allocation11 + $0x90] sm:$0xff]  }
 0x7c6   : > { %9863 = vmatprep.subr.bf16.mxu0 %v12415_v51 }
 0x7c8   : > { %9710 = vmatpush3.bf16.msra.mxu1 %v10616_v55 }
 0x7c9   : > { %9711 = vmatprep.subr.bf16.mxu1 %v12415_v51 }
 0x7cc   : > { %9712 = vmatpush3.bf16.msra.mxu1 %v10617_v58 }
 0x7cd   : > { %9713 = vmatprep.subr.bf16.mxu1 %v12415_v51 }
 0x7d0   : > { %9714 = vmatpush3.bf16.msra.mxu1 %v10618_v40 }
 0x7d1   : > { %9719 = vmatprep.subr.bf16.mxu1 %v12415_v51 }
 0x7d3   : > { %9716 = vmatmul.mubr.msk.bf16.vlgmr.msra.gmra.mrb[36].mxu1 %vm12479_vm1, %v8306_v44 }
 0x7d4   : > { %9720 = vmatpush3.bf16.msra.mxu1 %v10619_v0  ;;  %9735 = vmatprep.mubr.msk.bf16.mxu1 %vm10931_vm5, %v12415_v51 }
 0x7d5   : > { %9721 = vmatprep.subr.bf16.mxu1 %v12415_v51 }
 0x7d8   : > { %9722 = vmatpush3.bf16.msra.mxu1 %v10620_v14 }
 0x7d9   : > { %9723 = vmatprep.subr.bf16.mxu1 %v12415_v51 }
 0x7dc   : > { %9724 = vmatpush3.bf16.msra.mxu1 %v10621_v9 }
 0x7dd   : > { %9725 = vmatprep.subr.bf16.mxu1 %v12415_v51 }
 0x7e0   : > { %9726 = vmatpush3.bf16.msra.mxu1 %v10622_v29 }
 0x7e1   : > { %9727 = vmatprep.subr.bf16.mxu1 %v12415_v51 }
 0x7e4   : > { %9728 = vmatpush3.bf16.msra.mxu1 %v10623_v47 }
 0x7e5   : > { %9729 = vmatprep.subr.bf16.mxu1 %v12415_v51 }
 0x7e8   : > { %9730 = vmatpush3.bf16.msra.mxu1 %v10624_v3 }
 0x7e9   : > { %9731 = vmatprep.subr.bf16.mxu1 %v12415_v51 }
 0x7ec   : > { %9732 = vmatpush3.bf16.msra.mxu1 %v10625_v42 }
 0x7ed   : > { %9733 = vmatprep.subr.bf16.mxu1 %v12415_v51 }
 0x7f0   : > { %9734 = vmatpush3.bf16.msra.mxu1 %v10626_v36  ;;  %v10659_v36 = vld [vmem:[#allocation11 + $0x40] sm:$0xff]  }
 0x7f1   : > { %9739 = vmatprep.subr.bf16.mxu1 %v12415_v51 }
 0x7f3   : > { %9736 = vmatmul.mubr.msk.bf16.vlgmr.msra.gmra.mrb[40].mxu1 %vm12516_vm8, %v8317_v6  ;;  %v10664_v6 = vld [vmem:[#allocation11 + $0x10] sm:$0xff]  }
 0x7f4   : > { %9740 = vmatpush3.bf16.msra.mxu1 %v10627_v62  ;;  %9755 = vmatprep.mubr.msk.bf16.mxu1 %vm10931_vm5, %v12415_v51  ;;  %v10663_v62 = vld [vmem:[#allocation11 + $0x50] sm:$0xff]  }
 0x7f5   : > { %9741 = vmatprep.subr.bf16.mxu1 %v12415_v51  ;;  %9864 = vmatpush3.bf16.msra.mxu0 %v10664_v6  ;;  %v10681_v6 = vld [vmem:[#allocation11 + $0x98] sm:$0xff]  }
 0x7f6   : > { %9865 = vmatprep.subr.bf16.mxu0 %v12415_v51 }
 0x7f8   : > { %9742 = vmatpush3.bf16.msra.mxu1 %v10628_v22 }
 0x7f9   : > { %9743 = vmatprep.subr.bf16.mxu1 %v12415_v51 }
 0x7fc   : > { %9744 = vmatpush3.bf16.msra.mxu1 %v10629_v52 }
 0x7fd   : > { %9745 = vmatprep.subr.bf16.mxu1 %v12415_v51 }
 0x800   : > { %9746 = vmatpush3.bf16.msra.mxu1 %v10630_v63 }
 0x801   : > { %9747 = vmatprep.subr.bf16.mxu1 %v12415_v51 }
 0x804   : > { %9748 = vmatpush3.bf16.msra.mxu1 %v10631_v25  ;;  %v10665_v25 = vld [vmem:[#allocation11 + $0x58] sm:$0xff]  }
 0x805   : > { %9749 = vmatprep.subr.bf16.mxu1 %v12415_v51 }
 0x808   : > { %9750 = vmatpush3.bf16.msra.mxu1 %v10632_v43  ;;  %v10666_v43 = vld [vmem:[#allocation11 + $0x18] sm:$0xff]  }
 0x809   : > { %9751 = vmatprep.subr.bf16.mxu1 %v12415_v51  ;;  %9866 = vmatpush3.bf16.msra.mxu0 %v10666_v43  ;;  %v10685_v43 = vld [vmem:[#allocation11 + $0xa8] sm:$0xff]  }
 0x80a   : > { %9867 = vmatprep.subr.bf16.mxu0 %v12415_v51 }
 0x80c   : > { %9752 = vmatpush3.bf16.msra.mxu1 %v10633_v38 }
 0x80d   : > { %9753 = vmatprep.subr.bf16.mxu1 %v12415_v51 }
 0x810   : > { %9754 = vmatpush3.bf16.msra.mxu1 %v10634_v33 }
 0x811   : > { %9759 = vmatprep.subr.bf16.mxu1 %v12415_v51 }
 0x813   : > { %9756 = vmatmul.mubr.bf16.vlgmr.msra.gmra.mrb[44].mxu1 %v5981_v18  ;;  %v10644_v18 = vld [vmem:[#allocation10 + $0x188] sm:$0xff]  }
 0x814   : > { %9760 = vmatpush3.bf16.msra.mxu1 %v10635_v49  ;;  %9775 = vmatprep.mubr.msk.bf16.mxu1 %vm10931_vm5, %v12415_v51 }
 0x815   : > { %9761 = vmatprep.subr.bf16.mxu1 %v12415_v51 }
 0x818   : > { %9762 = vmatpush3.bf16.msra.mxu1 %v10636_v57  ;;  %v10667_v57 = vld [vmem:[#allocation11 + $0x60] sm:$0xff]  }
 0x819   : > { %9763 = vmatprep.subr.bf16.mxu1 %v12415_v51 }
 0x81c   : > { %9764 = vmatpush3.bf16.msra.mxu1 %v10637_v21  ;;  %v10668_v21 = vld [vmem:[#allocation11 + $0x20] sm:$0xff]  }
 0x81d   : > { %9765 = vmatprep.subr.bf16.mxu1 %v12415_v51  ;;  %9868 = vmatpush3.bf16.msra.mxu0 %v10668_v21 }
 0x81e   : > { %9869 = vmatprep.subr.bf16.mxu0 %v12415_v51 }
 0x820   : > { %9766 = vmatpush3.bf16.msra.mxu1 %v10638_v45  ;;  %v10669_v45 = vld [vmem:[#allocation11 + $0x68] sm:$0xff]  }
 0x821   : > { %9767 = vmatprep.subr.bf16.mxu1 %v12415_v51 }
 0x824   : > { %9768 = vmatpush3.bf16.msra.mxu1 %v10639_v7  ;;  %v10670_v7 = vld [vmem:[#allocation11 + $0x28] sm:$0xff]  }
 0x825   : > { %9769 = vmatprep.subr.bf16.mxu1 %v12415_v51  ;;  %9870 = vmatpush3.bf16.msra.mxu0 %v10670_v7  ;;  %v10691_v7 = vld [vmem:[#allocation11 + $0x100] sm:$0xff]  }
 0x826   : > { %9871 = vmatprep.subr.bf16.mxu0 %v12415_v51 }
 0x828   : > { %9770 = vmatpush3.bf16.msra.mxu1 %v10640_v5  ;;  %v10671_v5 = vld [vmem:[#allocation11 + $0x70] sm:$0xff]  }
 0x829   : > { %9771 = vmatprep.subr.bf16.mxu1 %v12415_v51 }
 0x82c   : > { %9772 = vmatpush3.bf16.msra.mxu1 %v10641_v28  ;;  %v10672_v28 = vld [vmem:[#allocation11 + $0x30] sm:$0xff]  }
 0x82d   : > { %9773 = vmatprep.subr.bf16.mxu1 %v12415_v51  ;;  %9872 = vmatpush3.bf16.msra.mxu0 %v10672_v28 }
 0x82e   : > { %9873 = vmatprep.subr.bf16.mxu0 %v12415_v51 }
 0x830   : > { %9774 = vmatpush3.bf16.msra.mxu1 %v10642_v48  ;;  %v10673_v48 = vld [vmem:[#allocation11 + $0x78] sm:$0xff]  }
 0x831   : > { %9779 = vmatprep.subr.bf16.mxu1 %v12415_v51  ;;  %9874 = vmatpush3.bf16.msra.mxu0 %v10674_v10 }
 0x832   : > { %9899 = vmatprep.subr.bf16.mxu0 %v12415_v51 }
 0x833   : > { %9776 = vmatmul.mubr.msk.bf16.vlgmr.msra.gmra.mrb[48].mxu1 %vm12479_vm1, %v8336_v34 }
 0x834   : > { %9780 = vmatpush3.bf16.msra.mxu1 %v10643_v56  ;;  %9795 = vmatprep.mubr.msk.bf16.mxu1 %vm10931_vm5, %v12415_v51 }
 0x835   : > { %9781 = vmatprep.subr.bf16.mxu1 %v12415_v51 }
 0x838   : > { %9782 = vmatpush3.bf16.msra.mxu1 %v10644_v18 }
 0x839   : > { %9783 = vmatprep.subr.bf16.mxu1 %v12415_v51 }
 0x83c   : > { %9784 = vmatpush3.bf16.msra.mxu1 %v10645_v26 }
 0x83d   : > { %9785 = vmatprep.subr.bf16.mxu1 %v12415_v51 }
 0x840   : > { %9786 = vmatpush3.bf16.msra.mxu1 %v10646_v2 }
 0x841   : > { %9787 = vmatprep.subr.bf16.mxu1 %v12415_v51 }
 0x844   : > { %9788 = vmatpush3.bf16.msra.mxu1 %v10647_v24 }
 0x845   : > { %9789 = vmatprep.subr.bf16.mxu1 %v12415_v51 }
 0x848   : > { %9790 = vmatpush3.bf16.msra.mxu1 %v10648_v50 }
 0x849   : > { %9791 = vmatprep.subr.bf16.mxu1 %v12415_v51 }
 0x84c   : > { %9792 = vmatpush3.bf16.msra.mxu1 %v10649_v41 }
 0x84d   : > { %9793 = vmatprep.subr.bf16.mxu1 %v12415_v51 }
 0x850   : > { %9794 = vmatpush3.bf16.msra.mxu1 %v10650_v13 }
 0x851   : > { %9799 = vmatprep.subr.bf16.mxu1 %v12415_v51 }
 0x853   : > { %9796 = vmatmul.mubr.msk.bf16.vlgmr.msra.gmra.mrb[52].mxu1 %vm12516_vm8, %v8347_v1 }
 0x854   : > { %9800 = vmatpush3.bf16.msra.mxu1 %v10651_v23  ;;  %9815 = vmatprep.mubr.msk.bf16.mxu1 %vm10931_vm5, %v12415_v51 }
 0x855   : > { %9801 = vmatprep.subr.bf16.mxu1 %v12415_v51 }
 0x858   : > { %9802 = vmatpush3.bf16.msra.mxu1 %v10652_v37 }
 0x859   : > { %9803 = vmatprep.subr.bf16.mxu1 %v12415_v51 }
 0x85c   : > { %9804 = vmatpush3.bf16.msra.mxu1 %v10653_v54 }
 0x85d   : > { %9805 = vmatprep.subr.bf16.mxu1 %v12415_v51 }
 0x860   : > { %9806 = vmatpush3.bf16.msra.mxu1 %v10654_v27 }
 0x861   : > { %9807 = vmatprep.subr.bf16.mxu1 %v12415_v51 }
 0x864   : > { %9808 = vmatpush3.bf16.msra.mxu1 %v10655_v4  ;;  %v12598_v60 = vpop.f32.mrb[32].mxu0 }
 0x865   : > { %9809 = vmatprep.subr.bf16.mxu1 %v12415_v51  ;;  %v9837_v59 = vpop.f32.mrb[33].mxu0 }
 0x866   : > { %v5657_v31 = vpop.f32.mrb[28].mxu1  ;;  %v12600_v19 = vpop.f32.mrb[34].mxu0 }
 0x867   : > { %v9677_v30 = vpop.f32.mrb[29].mxu1  ;;  %v9838_v12 = vpop.f32.mrb[35].mxu0 }
 0x868   : > { %9810 = vmatpush3.bf16.msra.mxu1 %v10656_v17  ;;  %v5660_v39 = vpop.f32.mrb[30].mxu1 }
 0x869   : > { %v9678_v11 = vpop.f32.mrb[31].mxu1  ;;  %9811 = vmatprep.subr.bf16.mxu1 %v12415_v51 }
 0x86a   : > { %v8368_v11 = vld [vmem:[%s12791_s8] ss:$0 sm:$0xff] }
 0x86c   : > { %9812 = vmatpush3.bf16.msra.mxu1 %v10657_v20 }
 0x86d   : > { %9813 = vmatprep.subr.bf16.mxu1 %v12415_v51 }
 0x870   : > { %9814 = vmatpush3.bf16.msra.mxu1 %v10658_v32 }
 0x871   : > { %9839 = vmatprep.subr.bf16.mxu1 %v12415_v51 }
 0x873   : > { %9816 = vmatmul.mubr.bf16.vlgmr.msra.gmra.mrb[56].mxu1 %v6318_v8 }
 0x874   : > { %9855 = vmatprep.mubr.msk.bf16.mxu1 %vm10931_vm5, %v12415_v51  ;;  %9840 = vmatpush3.bf16.msra.mxu1 %v10659_v36 }
 0x875   : > { %9841 = vmatprep.subr.bf16.mxu1 %v12415_v51 }
 0x878   : > { %9842 = vmatpush3.bf16.msra.mxu1 %v10661_v35  ;;  %v10678_v35 = vld [vmem:[#allocation11 + $0xc8] sm:$0xff]  }
 0x879   : > { %9843 = vmatprep.subr.bf16.mxu1 %v12415_v51 }
 0x87c   : > { %9844 = vmatpush3.bf16.msra.mxu1 %v10663_v62  ;;  %v10680_v62 = vld [vmem:[#allocation11 + $0xd0] sm:$0xff]  }
 0x87d   : > { %9845 = vmatprep.subr.bf16.mxu1 %v12415_v51 }
 0x880   : > { %9846 = vmatpush3.bf16.msra.mxu1 %v10665_v25  ;;  %v10684_v25 = vld [vmem:[#allocation11 + $0xe0] sm:$0xff]  }
 0x881   : > { %9847 = vmatprep.subr.bf16.mxu1 %v12415_v51 }
 0x884   : > { %9848 = vmatpush3.bf16.msra.mxu1 %v10667_v57  ;;  %v10690_v57 = vld [vmem:[#allocation11 + $0xf8] sm:$0xff]  }
 0x885   : > { %9849 = vmatprep.subr.bf16.mxu1 %v12415_v51 }
 0x886   : > { %v5746_v46 = vpop.f32.mrb[32].mxu1 }
 0x887   : > { %v5747_v55 = vadd.f32 %v5746_v46, %v5657_v31  ;;  %v9697_v58 = vpop.f32.mrb[33].mxu1 }
 0x888   : > { %v5749_v40 = vpop.f32.mrb[34].mxu1  ;;  %9850 = vmatpush3.bf16.msra.mxu1 %v10669_v45 }
 0x889   : > { %v5750_v0 = vadd.f32 %v5749_v40, %v5660_v39  ;;  %v9698_v44 = vpop.f32.mrb[35].mxu1  ;;  %9851 = vmatprep.subr.bf16.mxu1 %v12415_v51 }
 0x88c   : > { %9852 = vmatpush3.bf16.msra.mxu1 %v10671_v5 }
 0x88d   : > { %9853 = vmatprep.subr.bf16.mxu1 %v12415_v51 }
 0x890   : > { %9854 = vmatpush3.bf16.msra.mxu1 %v10673_v48  ;;  %v10692_v48 = vld [vmem:[#allocation11 + $0x140] sm:$0xff]  }
 0x891   : > { %9879 = vmatprep.subr.bf16.mxu1 %v12415_v51 }
 0x8a6   : > { %v5857_v14 = vpop.f32.mrb[36].mxu1 }
 0x8a7   : > { %v5864_v9 = vadd.f32 %v5857_v14, %v5747_v55  ;;  %v9717_v29 = vpop.f32.mrb[37].mxu1 }
 0x8a8   : > { %v5860_v47 = vpop.f32.mrb[38].mxu1  ;;  %v10675_v29 = vld [vmem:[#allocation11 + $0x80] sm:$0xff]  }
 0x8a9   : > { %v5865_v3 = vadd.f32 %v5860_v47, %v5750_v0  ;;  %v9718_v42 = vpop.f32.mrb[39].mxu1  ;;  %v10676_v47 = vld [vmem:[#allocation11 + $0xc0] sm:$0xff]  }
 0x8c6   : > { %v5970_v22 = vpop.f32.mrb[40].mxu1 }
 0x8c7   : > { %v5977_v52 = vadd.f32 %v5970_v22, %v5864_v9  ;;  %v9737_v63 = vpop.f32.mrb[41].mxu1  ;;  %v10682_v22 = vld [vmem:[#allocation11 + $0xd8] sm:$0xff]  }
 0x8c8   : > { %v5973_v38 = vpop.f32.mrb[42].mxu1  ;;  %v10683_v63 = vld [vmem:[#allocation11 + $0xa0] sm:$0xff]  }
 0x8c9   : > { %v5978_v33 = vadd.f32 %v5973_v38, %v5865_v3  ;;  %v9738_v49 = vpop.f32.mrb[43].mxu1  ;;  %v10686_v38 = vld [vmem:[#allocation11 + $0xe8] sm:$0xff]  }
 0x8ca   : > { %v10689_v49 = vld [vmem:[#allocation11 + $0xb8] sm:$0xff]  }
 0x8e6   : > { %v6081_v56 = vpop.f32.mrb[44].mxu1 }
 0x8e7   : > { %v6088_v34 = vadd.f32 %v6081_v56, %v5977_v52  ;;  %v9757_v18 = vpop.f32.mrb[45].mxu1  ;;  %v12649_v52 = vld [vmem:[#allocation2 + $0x8] sm:$0xff] }
 0x8e8   : > { %v6084_v26 = vpop.f32.mrb[46].mxu1  ;;  %v10694_v18 = vld [vmem:[#allocation11 + $0x148] sm:$0xff]  }
 0x8e9   : > { %v6089_v2 = vadd.f32 %v6084_v26, %v5978_v33  ;;  %v9758_v24 = vpop.f32.mrb[47].mxu1  ;;  %v10688_v33 = vld [vmem:[#allocation11 + $0xf0] sm:$0xff]  }
 0x8ea   : > { %v10695_v26 = vld [vmem:[#allocation11 + $0x110] sm:$0xff]   ;;  %v10697_v24 = vld [vmem:[#allocation11 + $0x118] sm:$0xff]  }
 0x906   : > { %v6194_v50 = vpop.f32.mrb[48].mxu1 }
 0x907   : > { %v6201_v41 = vadd.f32 %v6194_v50, %v6088_v34  ;;  %v9777_v13 = vpop.f32.mrb[49].mxu1  ;;  %v10693_v34 = vld [vmem:[#allocation11 + $0x108] sm:$0xff]   ;;  %v10698_v50 = vld [vmem:[#allocation11 + $0x158] sm:$0xff]  }
 0x908   : > { %v6197_v23 = vpop.f32.mrb[50].mxu1  ;;  %v10700_v13 = vld [vmem:[#allocation11 + $0x160] sm:$0xff]  }
 0x909   : > { %v6202_v1 = vadd.f32 %v6197_v23, %v6089_v2  ;;  %v9778_v37 = vpop.f32.mrb[51].mxu1  ;;  %v10696_v2 = vld [vmem:[#allocation11 + $0x150] sm:$0xff]   ;;  %v10701_v23 = vld [vmem:[#allocation11 + $0x128] sm:$0xff]  }
 0x90a   : > { %v10703_v37 = vld [vmem:[#allocation11 + $0x130] sm:$0xff]  }
 0x926   : > { %v6307_v54 = vpop.f32.mrb[52].mxu1 }
 0x927   : > { %v6314_v27 = vadd.f32 %v6307_v54, %v6201_v41  ;;  %v9797_v4 = vpop.f32.mrb[53].mxu1  ;;  %v10699_v41 = vld [vmem:[#allocation11 + $0x120] sm:$0xff]   ;;  %v10704_v54 = vld [vmem:[#allocation11 + $0x170] sm:$0xff]  }
 0x928   : > { %v6310_v17 = vpop.f32.mrb[54].mxu1  ;;  %v10706_v4 = vld [vmem:[#allocation11 + $0x178] sm:$0xff]  }
 0x929   : > { %v6315_v31 = vadd.f32 %v6310_v17, %v6202_v1  ;;  %v9798_v30 = vpop.f32.mrb[55].mxu1  ;;  %v10702_v1 = vld [vmem:[#allocation11 + $0x168] sm:$0xff]  }
 0x92a   : > { %v10707_v30 = vld [vmem:[#allocation11 + $0x180] sm:$0xff]  }
 0x946   : > { %v6418_v59 = vpop.f32.mrb[56].mxu1 }
 0x947   : > { %v6425_v39 = vadd.f32 %v6418_v59, %v6314_v27  ;;  %v9817_v20 = vpop.f32.mrb[57].mxu1  ;;  %v10705_v27 = vld [vmem:[#allocation11 + $0x138] sm:$0xff]   ;;  %v10708_v59 = vld [vmem:[#allocation11 + $0x1c0] sm:$0xff]  }
 0x948   : > { %v6421_v12 = vpop.f32.mrb[58].mxu1  ;;  %v10709_v20 = vld [vmem:[#allocation11 + $0x188] sm:$0xff]  }
 0x949   : > { %v6538_v32 = vadd.f32 %v12598_v60, %v6425_v39  ;;  %v6426_v8 = vadd.f32 %v6421_v12, %v6315_v31  ;;  %v9818_v46 = vpop.f32.mrb[59].mxu1  ;;  %v10711_v12 = vld [vmem:[#allocation11 + $0x190] sm:$0xff]  }
 0x94a   : > { %v10714_v46 = vld [vmem:[#allocation11 + $0x1d8] sm:$0xff]  }
 0x94b   : > { %v6547_v55 = vadd.f32 %v8368_v11, %v6538_v32  ;;  %v6539_v58 = vadd.f32 %v12600_v19, %v6426_v8  ;;  %v10677_v19 = vld [vmem:[#allocation11 + $0x88] sm:$0xff]   ;;  %v10712_v32 = vld [vmem:[#allocation11 + $0x1d0] sm:$0xff]   ;;  %v10713_v8 = vld [vmem:[#allocation11 + $0x198] sm:$0xff]  }
 0x94d   : > { %v6549_v40 = vmax.f32 %v6547_v55, 0.0  ;;  %v6548_v0 = vadd.f32 %v8368_v11, %v6539_v58  ;;  %v10710_v11 = vld [vmem:[#allocation11 + $0x1c8] sm:$0xff]   ;;  %v10715_v55 = vld [vmem:[#allocation11 + $0x1a0] sm:$0xff]  }
 0x94e   : > { %v10716_v58 = vld [vmem:[#allocation11 + $0x1e0] sm:$0xff]  }
 0x94f   : > { %6553 = vst [vmem:[#allocation4 + $0x8] sm:$0xff] %v6549_v40  ;;  %v6550_v44 = vmax.f32 %v6548_v0, 0.0  ;;  %v10718_v0 = vld [vmem:[#allocation11 + $0x1e8] sm:$0xff]  }
 0x951   : > { %6554 = vst [vmem:[#allocation4 + $0x10] sm:$0xff] %v6550_v44  ;;  %v12630_v14 = vpack.c.bf16 %v6550_v44, %v6549_v40  ;;  %v10717_v40 = vld [vmem:[#allocation11 + $0x1a8] sm:$0xff]   ;;  %v10719_v44 = vld [vmem:[#allocation11 + $0x1b0] sm:$0xff]  }
 0x956   : > { %v6576_v9 = vld [vmem:[#allocation4 + $0x4] sm:$0xff] }
 0x957   : > { %v6555_v42 = vld [vmem:[#allocation4 + $0x3] sm:$0xff] }
 0x958   : > { %v12632_v3 = vld [vmem:[#allocation4 + $0xc] sm:$0xff] }
 0x959   : > { %v12634_v36 = vld [vmem:[#allocation4 + $0xb] sm:$0xff]  ;;  %v6578_v60 = vpack.c.bf16 %v12632_v3, %v6576_v9  ;;  %v10721_v9 = vld [vmem:[#allocation11 + $0x1b8] sm:$0xff]  }
 0x95a   : > { %v8386_v53 = vpack.c.bf16 %v12634_v36, %v6555_v42  ;;  %v12660_v21 = vld [vmem:[#allocation4 + $0xd] sm:$0xff]  ;;  %v6774_v5 = vld [vmem:[#allocation4 + $0x5] sm:$0xff] }
 0x95b   : > { %9856 = vmatmul.mubr.bf16.vlgmr.msra.gmra.mrb[60].mxu1 %v6578_v60  ;;  %v6888_v45 = vld [vmem:[#allocation4 + $0xf] sm:$0xff]  ;;  %v6887_v28 = vld [vmem:[#allocation4 + $0x7] sm:$0xff]  ;;  %v8397_v10 = vpack.c.bf16 %v12660_v21, %v6774_v5 }
 0x95c   : > { %9876 = vmatmul.mubr.msk.bf16.vlgmr.msra.gmra.mrb[36].mxu0 %vm12516_vm8, %v8386_v53  ;;  %9880 = vmatpush3.bf16.msra.mxu1 %v10675_v29  ;;  %v8408_v56 = vpack.c.bf16 %v6888_v45, %v6887_v28  ;;  %v7111_v17 = vld [vmem:[#allocation4 + $0x9] sm:$0xff]  ;;  %v7112_v31 = vld [vmem:[#allocation4 + $0x11] sm:$0xff]  ;;  %v10723_v60 = vld [vmem:[#allocation11 + $0x200] sm:$0xff]  }
 0x95d   : > { %9900 = vmatpush3.bf16.msra.mxu0 %v10676_v47  ;;  %9881 = vmatprep.subr.bf16.mxu1 %v12415_v51  ;;  %v8427_v39 = vpack.c.bf16 %v7112_v31, %v7111_v17  ;;  %v10722_v29 = vld [vmem:[#allocation11 + $0x1f8] sm:$0xff]  }
 0x95e   : > { %9901 = vmatprep.subr.bf16.mxu0 %v12415_v51  ;;  %9895 = vmatprep.mubr.msk.bf16.mxu1 %vm10931_vm5, %v12415_v51  ;;  %v7225_v47 = vld [vmem:[#allocation4 + $0x13] sm:$0xff] }
 0x95f   : > { %9915 = vmatprep.mubr.msk.bf16.mxu0 %vm10931_vm5, %v12415_v51  ;;  %v7338_v42 = vld [vmem:[#allocation4 + $0x14] sm:$0xff]  ;;  %v8438_v53 = vpack.c.bf16 %v7225_v47, %v12634_v36 }
 0x960   : > { %9882 = vmatpush3.bf16.msra.mxu1 %v10677_v19  ;;  %v7339_v19 = vpack.c.bf16 %v7338_v42, %v12632_v3  ;;  %v10725_v3 = vld [vmem:[#allocation11 + $0x210] sm:$0xff]   ;;  %v10726_v36 = vld [vmem:[#allocation11 + $0x218] sm:$0xff]  }
 0x961   : > { %9902 = vmatpush3.bf16.msra.mxu0 %v10678_v35  ;;  %9883 = vmatprep.subr.bf16.mxu1 %v12415_v51  ;;  %v10724_v35 = vld [vmem:[#allocation11 + $0x208] sm:$0xff]  }
 0x962   : > { %9903 = vmatprep.subr.bf16.mxu0 %v12415_v51 }
 0x964   : > { %9884 = vmatpush3.bf16.msra.mxu1 %v10679_v61  ;;  %v10728_v61 = vld [vmem:[#allocation11 + $0x228] sm:$0xff]  }
 0x965   : > { %9904 = vmatpush3.bf16.msra.mxu0 %v10680_v62  ;;  %9885 = vmatprep.subr.bf16.mxu1 %v12415_v51  ;;  %v10687_v51 = vld [vmem:[#allocation11 + $0xb0] sm:$0xff]  }
 0x966   : > { %9905 = vmatprep.subr.bf16.mxu0 %v12649_v52  ;;  %v10729_v62 = vld [vmem:[#allocation11 + $0x230] sm:$0xff]  }
 0x968   : > { %9886 = vmatpush3.bf16.msra.mxu1 %v10681_v6  ;;  %v10730_v6 = vld [vmem:[#allocation11 + $0x238] sm:$0xff]  }
 0x969   : > { %9906 = vmatpush3.bf16.msra.mxu0 %v10682_v22  ;;  %9887 = vmatprep.subr.bf16.mxu1 %v12649_v52  ;;  %v7449_v22 = vld [vmem:[#allocation4 + $0x15] sm:$0xff] }
 0x96a   : > { %9907 = vmatprep.subr.bf16.mxu0 %v12649_v52 }
 0x96c   : > { %9888 = vmatpush3.bf16.msra.mxu1 %v10683_v63  ;;  %v8457_v63 = vpack.c.bf16 %v7449_v22, %v12660_v21 }
 0x96d   : > { %9908 = vmatpush3.bf16.msra.mxu0 %v10684_v25  ;;  %9889 = vmatprep.subr.bf16.mxu1 %v12649_v52 }
 0x96e   : > { %9909 = vmatprep.subr.bf16.mxu0 %v12649_v52 }
 0x970   : > { %9890 = vmatpush3.bf16.msra.mxu1 %v10685_v43 }
 0x971   : > { %9910 = vmatpush3.bf16.msra.mxu0 %v10686_v38  ;;  %9891 = vmatprep.subr.bf16.mxu1 %v12649_v52 }
 0x972   : > { %9911 = vmatprep.subr.bf16.mxu0 %v12649_v52 }
 0x974   : > { %9892 = vmatpush3.bf16.msra.mxu1 %v10687_v51 }
 0x975   : > { %9912 = vmatpush3.bf16.msra.mxu0 %v10688_v33  ;;  %9893 = vmatprep.subr.bf16.mxu1 %v12649_v52 }
 0x976   : > { %9913 = vmatprep.subr.bf16.mxu0 %v12649_v52 }
 0x978   : > { %9894 = vmatpush3.bf16.msra.mxu1 %v10689_v49 }
 0x979   : > { %9914 = vmatpush3.bf16.msra.mxu0 %v10690_v57  ;;  %9919 = vmatprep.subr.bf16.mxu1 %v12649_v52 }
 0x97a   : > { %9939 = vmatprep.subr.bf16.mxu0 %v12649_v52 }
 0x97b   : > { %9896 = vmatmul.mubr.msk.bf16.vlgmr.msra.gmra.mrb[64].mxu1 %vm12479_vm1, %v8397_v10 }
 0x97c   : > { %9916 = vmatmul.mubr.msk.bf16.vlgmr.msra.gmra.mrb[40].mxu0 %vm12516_vm8, %v8408_v56  ;;  %9920 = vmatpush3.bf16.msra.mxu1 %v10691_v7 }
 0x97d   : > { %9940 = vmatpush3.bf16.msra.mxu0 %v10692_v48  ;;  %9921 = vmatprep.subr.bf16.mxu1 %v12649_v52 }
 0x97e   : > { %9941 = vmatprep.subr.bf16.mxu0 %v12649_v52  ;;  %9935 = vmatprep.mubr.msk.bf16.mxu1 %vm10931_vm5, %v12649_v52 }
 0x97f   : > { %9955 = vmatprep.mubr.msk.bf16.mxu0 %vm10931_vm5, %v12649_v52 }
 0x980   : > { %9922 = vmatpush3.bf16.msra.mxu1 %v10693_v34 }
 0x981   : > { %9942 = vmatpush3.bf16.msra.mxu0 %v10694_v18  ;;  %9923 = vmatprep.subr.bf16.mxu1 %v12649_v52 }
 0x982   : > { %9943 = vmatprep.subr.bf16.mxu0 %v12649_v52 }
 0x984   : > { %9924 = vmatpush3.bf16.msra.mxu1 %v10695_v26 }
 0x985   : > { %9944 = vmatpush3.bf16.msra.mxu0 %v10696_v2  ;;  %9925 = vmatprep.subr.bf16.mxu1 %v12649_v52 }
 0x986   : > { %9945 = vmatprep.subr.bf16.mxu0 %v12649_v52 }
 0x988   : > { %9926 = vmatpush3.bf16.msra.mxu1 %v10697_v24 }
 0x989   : > { %9946 = vmatpush3.bf16.msra.mxu0 %v10698_v50  ;;  %9927 = vmatprep.subr.bf16.mxu1 %v12649_v52 }
 0x98a   : > { %9947 = vmatprep.subr.bf16.mxu0 %v12649_v52 }
 0x98c   : > { %9928 = vmatpush3.bf16.msra.mxu1 %v10699_v41 }
 0x98d   : > { %9948 = vmatpush3.bf16.msra.mxu0 %v10700_v13  ;;  %9929 = vmatprep.subr.bf16.mxu1 %v12649_v52 }
 0x98e   : > { %9949 = vmatprep.subr.bf16.mxu0 %v12649_v52 }
 0x990   : > { %9930 = vmatpush3.bf16.msra.mxu1 %v10701_v23 }
 0x991   : > { %9950 = vmatpush3.bf16.msra.mxu0 %v10702_v1  ;;  %9931 = vmatprep.subr.bf16.mxu1 %v12649_v52 }
 0x992   : > { %9951 = vmatprep.subr.bf16.mxu0 %v12649_v52 }
 0x994   : > { %9932 = vmatpush3.bf16.msra.mxu1 %v10703_v37 }
 0x995   : > { %9952 = vmatpush3.bf16.msra.mxu0 %v10704_v54  ;;  %9933 = vmatprep.subr.bf16.mxu1 %v12649_v52 }
 0x996   : > { %9953 = vmatprep.subr.bf16.mxu0 %v12649_v52 }
 0x998   : > { %9934 = vmatpush3.bf16.msra.mxu1 %v10705_v27 }
 0x999   : > { %9954 = vmatpush3.bf16.msra.mxu0 %v10706_v4  ;;  %9959 = vmatprep.subr.bf16.mxu1 %v12649_v52 }
 0x99a   : > { %9979 = vmatprep.subr.bf16.mxu0 %v12649_v52 }
 0x99b   : > { %9936 = vmatmul.mubr.bf16.vlgmr.msra.gmra.mrb[68].mxu1 %v12630_v14  ;;  %v10720_v14 = vld [vmem:[#allocation11 + $0x1f0] sm:$0xff]  }
 0x99c   : > { %9956 = vmatmul.mubr.msk.bf16.vlgmr.msra.gmra.mrb[44].mxu0 %vm12479_vm1, %v8427_v39  ;;  %9960 = vmatpush3.bf16.msra.mxu1 %v10707_v30 }
 0x99d   : > { %9980 = vmatpush3.bf16.msra.mxu0 %v10708_v59  ;;  %9961 = vmatprep.subr.bf16.mxu1 %v12649_v52 }
 0x99e   : > { %9981 = vmatprep.subr.bf16.mxu0 %v12649_v52  ;;  %9975 = vmatprep.mubr.msk.bf16.mxu1 %vm10931_vm5, %v12649_v52 }
 0x99f   : > { %9995 = vmatprep.mubr.msk.bf16.mxu0 %vm10931_vm5, %v12649_v52 }
 0x9a0   : > { %9962 = vmatpush3.bf16.msra.mxu1 %v10709_v20 }
 0x9a1   : > { %9982 = vmatpush3.bf16.msra.mxu0 %v10710_v11  ;;  %9963 = vmatprep.subr.bf16.mxu1 %v12649_v52 }
 0x9a2   : > { %9983 = vmatprep.subr.bf16.mxu0 %v12649_v52 }
 0x9a4   : > { %9964 = vmatpush3.bf16.msra.mxu1 %v10711_v12 }
 0x9a5   : > { %9984 = vmatpush3.bf16.msra.mxu0 %v10712_v32  ;;  %9965 = vmatprep.subr.bf16.mxu1 %v12649_v52 }
 0x9a6   : > { %9985 = vmatprep.subr.bf16.mxu0 %v12649_v52 }
 0x9a8   : > { %9966 = vmatpush3.bf16.msra.mxu1 %v10713_v8 }
 0x9a9   : > { %9986 = vmatpush3.bf16.msra.mxu0 %v10714_v46  ;;  %9967 = vmatprep.subr.bf16.mxu1 %v12649_v52 }
 0x9aa   : > { %9987 = vmatprep.subr.bf16.mxu0 %v12649_v52 }
 0x9ac   : > { %9968 = vmatpush3.bf16.msra.mxu1 %v10715_v55 }
 0x9ad   : > { %9988 = vmatpush3.bf16.msra.mxu0 %v10716_v58  ;;  %9969 = vmatprep.subr.bf16.mxu1 %v12649_v52 }
 0x9ae   : > { %9989 = vmatprep.subr.bf16.mxu0 %v12649_v52 }
 0x9b0   : > { %9970 = vmatpush3.bf16.msra.mxu1 %v10717_v40 }
 0x9b1   : > { %9990 = vmatpush3.bf16.msra.mxu0 %v10718_v0  ;;  %9971 = vmatprep.subr.bf16.mxu1 %v12649_v52 }
 0x9b2   : > { %9991 = vmatprep.subr.bf16.mxu0 %v12649_v52 }
 0x9b4   : > { %9972 = vmatpush3.bf16.msra.mxu1 %v10719_v44 }
 0x9b5   : > { %9992 = vmatpush3.bf16.msra.mxu0 %v10720_v14  ;;  %9973 = vmatprep.subr.bf16.mxu1 %v12649_v52  ;;  %v8459_v14 = vld [vmem:[%s12793_s10] ss:$0 sm:$0xff] }
 0x9b6   : > { %9993 = vmatprep.subr.bf16.mxu0 %v12649_v52 }
 0x9b8   : > { %9974 = vmatpush3.bf16.msra.mxu1 %v10721_v9 }
 0x9b9   : > { %9994 = vmatpush3.bf16.msra.mxu0 %v10722_v29  ;;  %9999 = vmatprep.subr.bf16.mxu1 %v12649_v52 }
 0x9ba   : > { %10019 = vmatprep.subr.bf16.mxu0 %v12649_v52 }
 0x9bb   : > { %9976 = vmatmul.mubr.msk.bf16.vlgmr.msra.gmra.mrb[72].mxu1 %vm12516_vm8, %v8438_v53 }
 0x9bc   : > { %9996 = vmatmul.mubr.bf16.vlgmr.msra.gmra.mrb[48].mxu0 %v7339_v19  ;;  %10000 = vmatpush3.bf16.msra.mxu1 %v10723_v60 }
 0x9bd   : > { %10015 = vmatprep.mubr.msk.bf16.mxu1 %vm10931_vm5, %v12649_v52  ;;  %10001 = vmatprep.subr.bf16.mxu1 %v12649_v52 }
 0x9be   : > { %10021 = vmatprep.mubr.msk.bf16.mxu0 %vm10931_vm5, %v12649_v52 }
 0x9c0   : > { %10002 = vmatpush3.bf16.msra.mxu1 %v10724_v35 }
 0x9c1   : > { %10003 = vmatprep.subr.bf16.mxu1 %v12649_v52 }
 0x9c4   : > { %10004 = vmatpush3.bf16.msra.mxu1 %v10725_v3 }
 0x9c5   : > { %10005 = vmatprep.subr.bf16.mxu1 %v12649_v52 }
 0x9c8   : > { %10006 = vmatpush3.bf16.msra.mxu1 %v10726_v36 }
 0x9c9   : > { %10007 = vmatprep.subr.bf16.mxu1 %v12649_v52 }
 0x9cc   : > { %10008 = vmatpush3.bf16.msra.mxu1 %v10727_v16 }
 0x9cd   : > { %10009 = vmatprep.subr.bf16.mxu1 %v12649_v52 }
 0x9d0   : > { %10010 = vmatpush3.bf16.msra.mxu1 %v10728_v61 }
 0x9d1   : > { %10011 = vmatprep.subr.bf16.mxu1 %v12649_v52 }
 0x9d4   : > { %10012 = vmatpush3.bf16.msra.mxu1 %v10729_v62 }
 0x9d5   : > { %10013 = vmatprep.subr.bf16.mxu1 %v12649_v52 }
 0x9d8   : > { %10014 = vmatpush3.bf16.msra.mxu1 %v10730_v6 }
 0x9db   : > { %10016 = vmatmul.mubr.msk.bf16.vlgmr.msra.gmra.mrb[76].mxu1 %vm12479_vm1, %v8457_v63 }
 0xa2e   : > { %v6678_v25 = vpop.f32.mrb[60].mxu1 }
 0xa2f   : > { %v6767_v43 = vpop.f32.mrb[36].mxu0  ;;  %v9857_v51 = vpop.f32.mrb[61].mxu1 }
 0xa30   : > { %v6768_v38 = vadd.f32 %v6767_v43, %v6678_v25  ;;  %v9877_v33 = vpop.f32.mrb[37].mxu0  ;;  %v6681_v49 = vpop.f32.mrb[62].mxu1 }
 0xa31   : > { %v6770_v57 = vpop.f32.mrb[38].mxu0  ;;  %v9858_v7 = vpop.f32.mrb[63].mxu1 }
 0xa32   : > { %v6771_v45 = vadd.f32 %v6770_v57, %v6681_v49  ;;  %v9878_v5 = vpop.f32.mrb[39].mxu0  ;;  %v7586_v57 = vld [vmem:[%s12794_s11] sm:$0x3] }
 0xa4e   : > { %v6878_v28 = vpop.f32.mrb[64].mxu1 }
 0xa4f   : > { %v6991_v48 = vpop.f32.mrb[40].mxu0  ;;  %v6885_v52 = vadd.f32 %v6878_v28, %v6768_v38  ;;  %v9897_v10 = vpop.f32.mrb[65].mxu1 }
 0xa50   : > { %v9917_v56 = vpop.f32.mrb[41].mxu0  ;;  %v6881_v34 = vpop.f32.mrb[66].mxu1 }
 0xa51   : > { %v6994_v21 = vpop.f32.mrb[42].mxu0  ;;  %v6998_v18 = vadd.f32 %v6991_v48, %v6885_v52  ;;  %v6886_v15 = vadd.f32 %v6881_v34, %v6771_v45  ;;  %v9898_v26 = vpop.f32.mrb[67].mxu1 }
 0xa52   : > { %v9918_v2 = vpop.f32.mrb[43].mxu0 }
 0xa53   : > { %v6999_v24 = vadd.f32 %v6994_v21, %v6886_v15 }
 0xa6e   : > { %v7102_v50 = vpop.f32.mrb[68].mxu1 }
 0xa6f   : > { %v7215_v41 = vpop.f32.mrb[44].mxu0  ;;  %v7109_v13 = vadd.f32 %v7102_v50, %v6998_v18  ;;  %v9937_v23 = vpop.f32.mrb[69].mxu1 }
 0xa70   : > { %v9957_v1 = vpop.f32.mrb[45].mxu0  ;;  %v7105_v37 = vpop.f32.mrb[70].mxu1 }
 0xa71   : > { %v7218_v54 = vpop.f32.mrb[46].mxu0  ;;  %v7222_v27 = vadd.f32 %v7215_v41, %v7109_v13  ;;  %v7110_v4 = vadd.f32 %v7105_v37, %v6999_v24  ;;  %v9938_v17 = vpop.f32.mrb[71].mxu1 }
 0xa72   : > { %v9958_v31 = vpop.f32.mrb[47].mxu0 }
 0xa73   : > { %v7223_v30 = vadd.f32 %v7218_v54, %v7110_v4 }
 0xa8e   : > { %v7328_v59 = vpop.f32.mrb[72].mxu1 }
 0xa8f   : > { %v7439_v39 = vpop.f32.mrb[48].mxu0  ;;  %v7335_v20 = vadd.f32 %v7328_v59, %v7222_v27  ;;  %v9977_v11 = vpop.f32.mrb[73].mxu1 }
 0xa90   : > { %v9997_v12 = vpop.f32.mrb[49].mxu0  ;;  %v7331_v32 = vpop.f32.mrb[74].mxu1 }
 0xa91   : > { %v7442_v8 = vpop.f32.mrb[50].mxu0  ;;  %v7446_v46 = vadd.f32 %v7439_v39, %v7335_v20  ;;  %v7336_v55 = vadd.f32 %v7331_v32, %v7223_v30  ;;  %v9978_v58 = vpop.f32.mrb[75].mxu1 }
 0xa92   : > { %v9998_v40 = vpop.f32.mrb[51].mxu0 }
 0xa93   : > { %v7447_v0 = vadd.f32 %v7442_v8, %v7336_v55 }
 0xaae   : > { %v7552_v44 = vpop.f32.mrb[76].mxu1 }
 0xaaf   : > { %v7559_v9 = vadd.f32 %v7552_v44, %v7446_v46  ;;  %v10017_v29 = vpop.f32.mrb[77].mxu1 }
 0xab0   : > { %v7555_v47 = vpop.f32.mrb[78].mxu1 }
 0xab1   : > { %v7568_v42 = vadd.f32 %v8459_v14, %v7559_v9  ;;  %v7560_v60 = vadd.f32 %v7555_v47, %v7447_v0  ;;  %v10018_v53 = vpop.f32.mrb[79].mxu1 }
 0xab3   : > { %v7570_v19 = vmax.f32 %v7568_v42, 0.0  ;;  %v7569_v35 = vadd.f32 %v8459_v14, %v7560_v60 }
 0xab5   : > { %7572 = vst [vmem:[#allocation4 + $0x8] sm:$0xff] %v7570_v19  ;;  %v7571_v3 = vmax.f32 %v7569_v35, 0.0 }
 0xab7   : > { %7573 = vst [vmem:[#allocation4 + $0x10] sm:$0xff] %v7571_v3 }
 0xabe   : > { %v7575_v36 = vld [vmem:[#allocation4 + $0x11] sm:$0xff]  ;;  %v7574_v22 = vld [vmem:[#allocation4 + $0x9] sm:$0xff] }
 0xabf   : > { %v7579_v16 = vld [vmem:[#allocation4 + $0x14] sm:$0xff]  ;;  %v7577_v62 = vmax.f32 %v7571_v3, %v7575_v36  ;;  %v7578_v63 = vld [vmem:[#allocation4 + $0xc] sm:$0xff]  ;;  %v7576_v43 = vmax.f32 %v7570_v19, %v7574_v22 }
 0xac0   : > { %v7581_v61 = vld [vmem:[#allocation4 + $0x15] sm:$0xff]  ;;  %v7580_v25 = vld [vmem:[#allocation4 + $0xd] sm:$0xff] }
 0xac1   : > { %v7583_v6 = vmax.f32 %v7579_v16, %v7581_v61  ;;  %v7582_v38 = vmax.f32 %v7578_v63, %v7580_v25 }
 0xac3   : > { %v7585_v51 = vmax.f32 %v7577_v62, %v7583_v6  ;;  %v7584_v33 = vmax.f32 %v7576_v43, %v7582_v38 }
 0xac5   : > { %v7587_v49 = vpack.c.bf16 %v7585_v51, %v7584_v33 }
 0xac7   : > { %10020 = vmatpush3.bf16.msra.mxu0 %v7587_v49 }
 0xaca   : > { %10022 = vmatmul.mubr.msk.bf16.vlgmr.msra.gmra.mrb[52].mxu0 %vm7588_vm2, %v7586_v57 }
 0xb9d   : > { %v7626_v45 = vpop.f32.mrb[52].mxu0 }
 0xb9e   : > { %7632 = vst [vmem:[%s465_s18] sm:$0xf] %v7626_v45  ;;  %v10023_v7 = vpop.f32.mrb[53].mxu0 }
 0xb9f   : > { %v7629_v5 = vpop.f32.mrb[54].mxu0 }
 0xba0   : > { %10859 = shalt.err (!%p10856_p0)
}
 0xba1   : > { %s10860_s17 = scalar_lea.hbm %s12743_s29, 64  ;;  %s10864_s14 = scalar_lea.hbm %s13098_s13, 128 }
 0xba2   : > { %p10861_p10 = scmp.ne.s32.totalorder %s12743_s29, %s10860_s17  ;;  %p10865_p4 = scmp.lt.u32.totalorder %s12743_s29, %s13098_s13 }
 0xba3   : > { %p10866_p12 = scmp.lt.u32.totalorder %s10864_s14, %s10860_s17  ;;  %p10868_p8 = scmp.lt.u32.totalorder %s10860_s17, %s12743_s29 }
 0xba4   : > { %p10862_p2 = pnand %p10861_p10, %p13099_p11 }
 0xba5   : > { %p10867_p7 = por %p10866_p12, %p10865_p4 }
 0xba6   : > { %p10863_p3 = pneg %p10862_p2 }
 0xba7   : > { %p10869_p13 = por %p10868_p8, %p10867_p7 }
 0xba9   : > { %p10870_p1 = pnand %p10869_p13, %p10863_p3 }
 0xbab   : > { %10873 = shalt.err (!%p10870_p1)
}
 0xbac   : > { %10361 = dma.vmem_to_hbm [thread:$0]  (%p13099_p11), %s12738_s30, 64, %s12743_s29, %s7634_s16   ;;  %v10024_v28 = vpop.f32.mrb[55].mxu0 }
 0xbad PF: > { %s13100_s23 = sld [smem:[#allocation20_spill]]  ;;  %s13101_s21 = sld [smem:[#allocation18_spill]] }
 0xbae   : > { %s13102_s24 = sld [smem:[#allocation24_spill]] }
 0xbb3   : > { %p10388_p6 = scmp.ge.s32.totalorder %s13100_s23, 2  ;;  %s7659_s19 = sand.u32 1, %s13101_s21  }
 0xbb4   : > { %p13103_p9 = scmp.ne.s32.totalorder %s13102_s24, 0  ;;  %s7660_s25 = scalar_lea.sflag [#allocation7], %s7659_s19 }
 0xbb6   : > { %p10377_p5 = pnand %p10388_p6, %p13103_p9 }
 0xbb8   : > { %10903 = dma.done.wait (!%p10377_p5), %s7660_s25, 64  }
 0xbb9   : > { %10905 = vsyncadd (!%p10377_p5), %s7660_s25, 4294967232  ;;  %s13104_s24 = sld [smem:[#allocation21_spill]]  ;;  %s13105_s26 = sld [smem:[#allocation19_spill]] }
 0xbba   : > { %s13106_s23 = sld [smem:[#allocation22_spill]]  ;;  %s13107_s21 = smov %s10912_s22 }
 0xbbf   : > { %p25_p0 = scmp.ge.s32.totalorder %s13104_s24, 4   ;;  %s13108_s22 = smov %s13105_s26 }
 0xbc1   :  { %27 = sbr.rel (!%p25_p0) target bundleno = 8 (0x8), region = 152 }
 0xbc8   :  { %7665 = vsyncpa [#allocation6], 1 }
 0xbc9   :  { %7667 = vsyncpa [#allocation6 + $0x1], 1 }
 0xbca   :  { %7668 = vsyncpa [#allocation9], 1 }
 0xbcb   :  { %7669 = vsyncpa [#allocation12], 1 }
 0xbcc   :  { %7670 = vsyncpa [#allocation7], 1 }
 0xbcd   :  { %7672 = vsyncpa [#allocation7 + $0x1], 1 }

</bundles_post_ra>
